<compile_context>
chip_gen: v7x
topology: tpu7x:2x2x1
jax: 0.10.0
libtpu: 0.0.40
codegen_flags: <defaults>
</compile_context>

<pallas_src>
import jax
import jax.numpy as jnp
from jax import lax
from jax.experimental import pallas as pl
from jax.experimental.pallas import tpu as pltpu

EPS = 1e-5


# --------------------------------------------------------------------------- #
# Weight folding: (3,3,3,Cin,Cout) -> (3,3, W*Cin, W*Cout) banded matrix.
# Wb[kd,kh][wi*Cin+ci, wo*Cout+co] = w[kd,kh, wi-wo+1, ci, co] if |wi-wo|<=1,
# else 0.  Out-of-range taps are simply dropped, which implements the W-axis
# zero padding, so the in-kernel pad buffer only needs a D/H halo.
# --------------------------------------------------------------------------- #
def fold_w(w, W):
    _, _, _, Cin, Cout = w.shape
    Wb = jnp.zeros((3, 3, W * Cin, W * Cout), jnp.float32)
    for kw in range(3):
        for wo in range(W):
            wi = wo + kw - 1
            if 0 <= wi < W:
                Wb = Wb.at[:, :, wi * Cin:(wi + 1) * Cin,
                           wo * Cout:(wo + 1) * Cout].set(w[:, :, kw])
    return Wb


def make_double_conv_kernel(D, H, W, Cin, Cout):
    K1 = W * Cin      # contraction size of conv1 (lane-dense input)
    K2 = W * Cout     # contraction size of conv2
    L = W * Cout      # lane width of activations / output

    def kernel(x_ref, w1_ref, w2_ref,
               b1_ref, g1_ref, be1_ref,
               b2_ref, g2_ref, be2_ref,
               a_ref, o_ref, pad1_ref, pad2_ref):

        a_mat = a_ref[...]                                    # (L, L) group-avg

        def conv_gn_relu(pad_ref, w_ref, K, b, g, be):
            # --- Conv3d as 9 (kd,kh) matmuls; kw folded into K (banded W) ----
            acc = jnp.zeros((D * H, L), jnp.float32)
            for kd in range(3):
                for kh in range(3):
                    patch = pad_ref[kd:kd + D, kh:kh + H, :]  # (D, H, K) bf16
                    patch = patch.reshape(D * H, K)
                    acc = acc + jnp.dot(patch, w_ref[kd, kh],
                                        preferred_element_type=jnp.float32)
            acc = acc + b                                      # tiled bias (1,L)

            # --- GroupNorm(8): per-lane stats -> group mix via constant A ----
            lane_mean = jnp.mean(acc, axis=0, keepdims=True)   # (1, L)
            gmean = jnp.dot(lane_mean, a_mat,
                            preferred_element_type=jnp.float32)
            dev = acc - gmean
            lane_var = jnp.mean(dev * dev, axis=0, keepdims=True)
            gvar = jnp.dot(lane_var, a_mat,
                           preferred_element_type=jnp.float32)
            y = dev * lax.rsqrt(gvar + EPS) * g + be
            # --- ReLU ---------------------------------------------------------
            return jnp.maximum(y, 0.0)                         # (D*H, L) f32

        # ---- stage 1: pad (D/H halo only) -> conv1 -> GN -> ReLU -------------
        pad1_ref[...] = jnp.zeros((D + 2, H + 2, K1), jnp.bfloat16)
        pad1_ref[1:D + 1, 1:H + 1, :] = x_ref[0].astype(jnp.bfloat16)
        y1 = conv_gn_relu(pad1_ref, w1_ref, K1,
                          b1_ref[...], g1_ref[...], be1_ref[...])

        # ---- stage 2: intermediate stays in VMEM (bf16), conv2 -> GN -> ReLU -
        pad2_ref[...] = jnp.zeros((D + 2, H + 2, K2), jnp.bfloat16)
        pad2_ref[1:D + 1, 1:H + 1, :] = y1.reshape(D, H, L).astype(jnp.bfloat16)
        y2 = conv_gn_relu(pad2_ref, w2_ref, K2,
                          b2_ref[...], g2_ref[...], be2_ref[...])

        # ---- lane-dense output store (last dim = W*Cout = 128) ---------------
        o_ref[0] = y2.reshape(D, H, L).astype(o_ref.dtype)

    return kernel


def double_conv(x_ncdhw, params, num_groups=8):
    """DoubleConv forward. Input/output in PyTorch NCDHW convention."""
    N, Cin, D, H, W = x_ncdhw.shape
    Cout = params["w1"].shape[-1]
    Cpg = Cout // num_groups
    L = W * Cout

    # NCDHW -> NDHWC -> fuse (W, Cin) into the lane axis (lane-dense input).
    x = jnp.transpose(x_ncdhw, (0, 2, 3, 4, 1)).reshape(N, D, H, W * Cin)

    # bf16 banded weights (kw + W-padding folded into the contraction dim).
    w1b = fold_w(params["w1"], W).astype(jnp.bfloat16)
    w2b = fold_w(params["w2"], W).astype(jnp.bfloat16)

    # Per-channel params tiled across W so they broadcast over the fused lanes.
    def tile(p):
        return jnp.tile(p.astype(jnp.float32), (1, W))
    b1t, g1t, be1t = tile(params["b1"]), tile(params["g1"]), tile(params["be1"])
    b2t, g2t, be2t = tile(params["b2"]), tile(params["g2"]), tile(params["be2"])

    # Constant group-averaging matrix for the fused (w, c) lane layout.
    lane_grp = (jnp.arange(L) % Cout) // Cpg
    A = (lane_grp[:, None] == lane_grp[None, :]).astype(jnp.float32) / (W * Cpg)

    kernel = make_double_conv_kernel(D, H, W, Cin, Cout)

    vec_spec = pl.BlockSpec((1, L), lambda n: (0, 0))
    out = pl.pallas_call(
        kernel,
        out_shape=jax.ShapeDtypeStruct((N, D, H, L), jnp.float32),
        grid=(N,),
        in_specs=[
            pl.BlockSpec((1, D, H, W * Cin), lambda n: (n, 0, 0, 0)),
            pl.BlockSpec((3, 3, W * Cin, L), lambda n: (0, 0, 0, 0)),
            pl.BlockSpec((3, 3, W * Cout, L), lambda n: (0, 0, 0, 0)),
            vec_spec, vec_spec, vec_spec,           # b1, gamma1, beta1 (tiled)
            vec_spec, vec_spec, vec_spec,           # b2, gamma2, beta2 (tiled)
            pl.BlockSpec((L, L), lambda n: (0, 0)),  # group-mixing matrix A
        ],
        out_specs=pl.BlockSpec((1, D, H, L), lambda n: (n, 0, 0, 0)),
        scratch_shapes=[
            pltpu.VMEM((D + 2, H + 2, W * Cin), jnp.bfloat16),   # padded input
            pltpu.VMEM((D + 2, H + 2, W * Cout), jnp.bfloat16),  # padded interm.
        ],
        compiler_params=pltpu.CompilerParams(
            dimension_semantics=("parallel",)),
    )(x, w1b, w2b, b1t, g1t, be1t, b2t, g2t, be2t, A)

    out = out.reshape(N, D, H, W, Cout)
    return jnp.transpose(out, (0, 4, 1, 2, 3))        # NDHWC -> NCDHW


# ------------------------- pure-JAX reference --------------------------------
def ref_conv_gn_relu(x, w, b, gamma, beta, num_groups=8):
    y = lax.conv_general_dilated(
        x, w, window_strides=(1, 1, 1), padding="SAME",
        dimension_numbers=("NDHWC", "DHWIO", "NDHWC"))
    y = y + b.reshape(1, 1, 1, 1, -1)
    N, D, H, W, C = y.shape
    Cpg = C // num_groups
    yg = y.reshape(N, D * H * W, num_groups, Cpg)
    mean = yg.mean(axis=(1, 3), keepdims=True)
    var = ((yg - mean) ** 2).mean(axis=(1, 3), keepdims=True)
    yn = (yg - mean) / jnp.sqrt(var + EPS)
    yn = yn.reshape(N, D, H, W, C) * gamma.reshape(1, 1, 1, 1, -1) \
         + beta.reshape(1, 1, 1, 1, -1)
    return jnp.maximum(yn, 0.0)


def ref_double_conv(x_ncdhw, params, num_groups=8):
    x = jnp.transpose(x_ncdhw, (0, 2, 3, 4, 1))
    y = ref_conv_gn_relu(x, params["w1"], params["b1"],
                         params["g1"], params["be1"], num_groups)
    y = ref_conv_gn_relu(y, params["w2"], params["b2"],
                         params["g2"], params["be2"], num_groups)
    return jnp.transpose(y, (0, 4, 1, 2, 3))


# ------------------------------- main -----------------------------------------
if __name__ == "__main__":
    N, Cin, Cout, D, H, W = 2, 4, 16, 8, 8, 8   # num_groups=8 => Cout % 8 == 0
    G = 8

    key = jax.random.PRNGKey(0)
    ks = jax.random.split(key, 9)

    def init_conv(kw, kb, cin, cout):
        scale = 1.0 / jnp.sqrt(27.0 * cin)
        w = scale * jax.random.normal(kw, (3, 3, 3, cin, cout), jnp.float32)
        b = 0.1 * jax.random.normal(kb, (1, cout), jnp.float32)
        return w, b

    w1, b1 = init_conv(ks[0], ks[1], Cin, Cout)
    w2, b2 = init_conv(ks[2], ks[3], Cout, Cout)
    params = {
        "w1": w1, "b1": b1,
        "g1": 1.0 + 0.1 * jax.random.normal(ks[4], (1, Cout), jnp.float32),
        "be1": 0.1 * jax.random.normal(ks[5], (1, Cout), jnp.float32),
        "w2": w2, "b2": b2,
        "g2": 1.0 + 0.1 * jax.random.normal(ks[6], (1, Cout), jnp.float32),
        "be2": 0.1 * jax.random.normal(ks[7], (1, Cout), jnp.float32),
    }

    x = jax.random.normal(ks[8], (N, Cin, D, H, W), jnp.float32)

    out = jax.block_until_ready(double_conv(x, params, num_groups=G))
    ref = jax.block_until_ready(ref_double_conv(x, params, num_groups=G))

    assert out.shape == (N, Cout, D, H, W), out.shape
    max_err = float(jnp.max(jnp.abs(out - ref)))
    if max_err > 5e-2:
        raise AssertionError(f"mismatch vs reference, max abs err = {max_err}")

    print("KERNEL_OK")
</pallas_src>

<mosaic_0001>
module attributes {stable_mosaic.version = 11 : i64} {
  func.func @kernel(%arg0: i32, %arg1: memref<1x8x8x32xf32, #tpu.memory_space<vmem>>, %arg2: memref<3x3x32x128xbf16, #tpu.memory_space<vmem>>, %arg3: memref<3x3x128x128xbf16, #tpu.memory_space<vmem>>, %arg4: memref<1x128xf32, #tpu.memory_space<vmem>>, %arg5: memref<1x128xf32, #tpu.memory_space<vmem>>, %arg6: memref<1x128xf32, #tpu.memory_space<vmem>>, %arg7: memref<1x128xf32, #tpu.memory_space<vmem>>, %arg8: memref<1x128xf32, #tpu.memory_space<vmem>>, %arg9: memref<1x128xf32, #tpu.memory_space<vmem>>, %arg10: memref<128x128xf32, #tpu.memory_space<vmem>>, %arg11: memref<1x8x8x128xf32, #tpu.memory_space<vmem>>, %arg12: memref<10x10x32xbf16, #tpu.memory_space<vmem>>, %arg13: memref<10x10x128xbf16, #tpu.memory_space<vmem>>) attributes {dimension_semantics = [#tpu.dimension_semantics<parallel>], iteration_bounds = array<i64: 2>, scalar_prefetch = 0 : i64, scratch_operands = 2 : i64, tpu.core_type = #tpu.core_type<tc>, window_params = [{transform_indices = @transform_0, window_bounds = array<i64: 1, 8, 8, 32>}, {pipeline_mode = #tpu.pipeline_mode<synchronous>, transform_indices = @transform_1, window_bounds = array<i64: 3, 3, 32, 128>}, {pipeline_mode = #tpu.pipeline_mode<synchronous>, transform_indices = @transform_2, window_bounds = array<i64: 3, 3, 128, 128>}, {pipeline_mode = #tpu.pipeline_mode<synchronous>, transform_indices = @transform_3, window_bounds = array<i64: 1, 128>}, {pipeline_mode = #tpu.pipeline_mode<synchronous>, transform_indices = @transform_4, window_bounds = array<i64: 1, 128>}, {pipeline_mode = #tpu.pipeline_mode<synchronous>, transform_indices = @transform_5, window_bounds = array<i64: 1, 128>}, {pipeline_mode = #tpu.pipeline_mode<synchronous>, transform_indices = @transform_6, window_bounds = array<i64: 1, 128>}, {pipeline_mode = #tpu.pipeline_mode<synchronous>, transform_indices = @transform_7, window_bounds = array<i64: 1, 128>}, {pipeline_mode = #tpu.pipeline_mode<synchronous>, transform_indices = @transform_8, window_bounds = array<i64: 1, 128>}, {pipeline_mode = #tpu.pipeline_mode<synchronous>, transform_indices = @transform_9, window_bounds = array<i64: 128, 128>}, {transform_indices = @transform_10, window_bounds = array<i64: 1, 8, 8, 128>}]} {
    %c0 = arith.constant 0 : index
    %c0_0 = arith.constant 0 : index
    %0 = vector.load %arg10[%c0, %c0_0] : memref<128x128xf32, #tpu.memory_space<vmem>>, vector<128x128xf32>
    %cst = arith.constant 0.000000e+00 : bf16
    %1 = vector.broadcast %cst : bf16 to vector<10x10x32xbf16>
    %c0_1 = arith.constant 0 : index
    %c0_2 = arith.constant 0 : index
    %c0_3 = arith.constant 0 : index
    %2 = vector.load %arg12[%c0_1, %c0_2, %c0_3] : memref<10x10x32xbf16, #tpu.memory_space<vmem>>, vector<10x10x32xbf16>
    tpu.vector_store %arg12[%c0_1, %c0_2, %c0_3], %1 {strides = array<i32>} : memref<10x10x32xbf16, #tpu.memory_space<vmem>>, vector<10x10x32xbf16>,
    %c0_4 = arith.constant 0 : index
    %c0_5 = arith.constant 0 : index
    %c0_6 = arith.constant 0 : index
    %c0_7 = arith.constant 0 : index
    %3 = vector.load %arg1[%c0_4, %c0_5, %c0_6, %c0_7] : memref<1x8x8x32xf32, #tpu.memory_space<vmem>>, vector<1x8x8x32xf32>
    %4 = vector.shape_cast %3 : vector<1x8x8x32xf32> to vector<8x8x32xf32>
    %5 = arith.truncf %4 : vector<8x8x32xf32> to vector<8x8x32xbf16>
    %c1 = arith.constant 1 : index
    %c1_8 = arith.constant 1 : index
    %c0_9 = arith.constant 0 : index
    %6 = vector.load %arg12[%c1, %c1_8, %c0_9] : memref<10x10x32xbf16, #tpu.memory_space<vmem>>, vector<8x8x32xbf16>
    tpu.vector_store %arg12[%c1, %c1_8, %c0_9], %5 {strides = array<i32>} : memref<10x10x32xbf16, #tpu.memory_space<vmem>>, vector<8x8x32xbf16>,
    %c0_10 = arith.constant 0 : index
    %c0_11 = arith.constant 0 : index
    %7 = vector.load %arg4[%c0_10, %c0_11] : memref<1x128xf32, #tpu.memory_space<vmem>>, vector<1x128xf32>
    %c0_12 = arith.constant 0 : index
    %c0_13 = arith.constant 0 : index
    %8 = vector.load %arg5[%c0_12, %c0_13] : memref<1x128xf32, #tpu.memory_space<vmem>>, vector<1x128xf32>
    %c0_14 = arith.constant 0 : index
    %c0_15 = arith.constant 0 : index
    %9 = vector.load %arg6[%c0_14, %c0_15] : memref<1x128xf32, #tpu.memory_space<vmem>>, vector<1x128xf32>
    %cst_16 = arith.constant 0.000000e+00 : f32
    %10 = vector.broadcast %cst_16 : f32 to vector<64x128xf32>
    %c0_17 = arith.constant 0 : index
    %c0_18 = arith.constant 0 : index
    %c0_19 = arith.constant 0 : index
    %11 = vector.load %arg12[%c0_17, %c0_18, %c0_19] : memref<10x10x32xbf16, #tpu.memory_space<vmem>>, vector<8x8x32xbf16>
    %12 = vector.shape_cast %11 : vector<8x8x32xbf16> to vector<64x32xbf16>
    %c0_20 = arith.constant 0 : index
    %c0_21 = arith.constant 0 : index
    %c0_22 = arith.constant 0 : index
    %c0_23 = arith.constant 0 : index
    %13 = vector.load %arg2[%c0_20, %c0_21, %c0_22, %c0_23] : memref<3x3x32x128xbf16, #tpu.memory_space<vmem>>, vector<1x1x32x128xbf16>
    %14 = vector.shape_cast %13 : vector<1x1x32x128xbf16> to vector<32x128xbf16>
    %cst_24 = arith.constant dense<0.000000e+00> : vector<64x128xf32>
    %15 = tpu.matmul %12, %14, %cst_24 {dimension_numbers = #tpu.dot_dimension_numbers<[1], [0], [0], [1], [0, 0, 1, 1], [], []>} : vector<64x32xbf16>, vector<32x128xbf16>, vector<64x128xf32> -> vector<64x128xf32>
    %16 = arith.addf %10, %15 : vector<64x128xf32>
    %c0_25 = arith.constant 0 : index
    %c1_26 = arith.constant 1 : index
    %c0_27 = arith.constant 0 : index
    %17 = vector.load %arg12[%c0_25, %c1_26, %c0_27] : memref<10x10x32xbf16, #tpu.memory_space<vmem>>, vector<8x8x32xbf16>
    %18 = vector.shape_cast %17 : vector<8x8x32xbf16> to vector<64x32xbf16>
    %c0_28 = arith.constant 0 : index
    %c1_29 = arith.constant 1 : index
    %c0_30 = arith.constant 0 : index
    %c0_31 = arith.constant 0 : index
    %19 = vector.load %arg2[%c0_28, %c1_29, %c0_30, %c0_31] : memref<3x3x32x128xbf16, #tpu.memory_space<vmem>>, vector<1x1x32x128xbf16>
    %20 = vector.shape_cast %19 : vector<1x1x32x128xbf16> to vector<32x128xbf16>
    %cst_32 = arith.constant dense<0.000000e+00> : vector<64x128xf32>
    %21 = tpu.matmul %18, %20, %cst_32 {dimension_numbers = #tpu.dot_dimension_numbers<[1], [0], [0], [1], [0, 0, 1, 1], [], []>} : vector<64x32xbf16>, vector<32x128xbf16>, vector<64x128xf32> -> vector<64x128xf32>
    %22 = arith.addf %16, %21 : vector<64x128xf32>
    %c0_33 = arith.constant 0 : index
    %c2 = arith.constant 2 : index
    %c0_34 = arith.constant 0 : index
    %23 = vector.load %arg12[%c0_33, %c2, %c0_34] : memref<10x10x32xbf16, #tpu.memory_space<vmem>>, vector<8x8x32xbf16>
    %24 = vector.shape_cast %23 : vector<8x8x32xbf16> to vector<64x32xbf16>
    %c0_35 = arith.constant 0 : index
    %c2_36 = arith.constant 2 : index
    %c0_37 = arith.constant 0 : index
    %c0_38 = arith.constant 0 : index
    %25 = vector.load %arg2[%c0_35, %c2_36, %c0_37, %c0_38] : memref<3x3x32x128xbf16, #tpu.memory_space<vmem>>, vector<1x1x32x128xbf16>
    %26 = vector.shape_cast %25 : vector<1x1x32x128xbf16> to vector<32x128xbf16>
    %cst_39 = arith.constant dense<0.000000e+00> : vector<64x128xf32>
    %27 = tpu.matmul %24, %26, %cst_39 {dimension_numbers = #tpu.dot_dimension_numbers<[1], [0], [0], [1], [0, 0, 1, 1], [], []>} : vector<64x32xbf16>, vector<32x128xbf16>, vector<64x128xf32> -> vector<64x128xf32>
    %28 = arith.addf %22, %27 : vector<64x128xf32>
    %c1_40 = arith.constant 1 : index
    %c0_41 = arith.constant 0 : index
    %c0_42 = arith.constant 0 : index
    %29 = vector.load %arg12[%c1_40, %c0_41, %c0_42] : memref<10x10x32xbf16, #tpu.memory_space<vmem>>, vector<8x8x32xbf16>
    %30 = vector.shape_cast %29 : vector<8x8x32xbf16> to vector<64x32xbf16>
    %c1_43 = arith.constant 1 : index
    %c0_44 = arith.constant 0 : index
    %c0_45 = arith.constant 0 : index
    %c0_46 = arith.constant 0 : index
    %31 = vector.load %arg2[%c1_43, %c0_44, %c0_45, %c0_46] : memref<3x3x32x128xbf16, #tpu.memory_space<vmem>>, vector<1x1x32x128xbf16>
    %32 = vector.shape_cast %31 : vector<1x1x32x128xbf16> to vector<32x128xbf16>
    %cst_47 = arith.constant dense<0.000000e+00> : vector<64x128xf32>
    %33 = tpu.matmul %30, %32, %cst_47 {dimension_numbers = #tpu.dot_dimension_numbers<[1], [0], [0], [1], [0, 0, 1, 1], [], []>} : vector<64x32xbf16>, vector<32x128xbf16>, vector<64x128xf32> -> vector<64x128xf32>
    %34 = arith.addf %28, %33 : vector<64x128xf32>
    %c1_48 = arith.constant 1 : index
    %c1_49 = arith.constant 1 : index
    %c0_50 = arith.constant 0 : index
    %35 = vector.load %arg12[%c1_48, %c1_49, %c0_50] : memref<10x10x32xbf16, #tpu.memory_space<vmem>>, vector<8x8x32xbf16>
    %36 = vector.shape_cast %35 : vector<8x8x32xbf16> to vector<64x32xbf16>
    %c1_51 = arith.constant 1 : index
    %c1_52 = arith.constant 1 : index
    %c0_53 = arith.constant 0 : index
    %c0_54 = arith.constant 0 : index
    %37 = vector.load %arg2[%c1_51, %c1_52, %c0_53, %c0_54] : memref<3x3x32x128xbf16, #tpu.memory_space<vmem>>, vector<1x1x32x128xbf16>
    %38 = vector.shape_cast %37 : vector<1x1x32x128xbf16> to vector<32x128xbf16>
    %cst_55 = arith.constant dense<0.000000e+00> : vector<64x128xf32>
    %39 = tpu.matmul %36, %38, %cst_55 {dimension_numbers = #tpu.dot_dimension_numbers<[1], [0], [0], [1], [0, 0, 1, 1], [], []>} : vector<64x32xbf16>, vector<32x128xbf16>, vector<64x128xf32> -> vector<64x128xf32>
    %40 = arith.addf %34, %39 : vector<64x128xf32>
    %c1_56 = arith.constant 1 : index
    %c2_57 = arith.constant 2 : index
    %c0_58 = arith.constant 0 : index
    %41 = vector.load %arg12[%c1_56, %c2_57, %c0_58] : memref<10x10x32xbf16, #tpu.memory_space<vmem>>, vector<8x8x32xbf16>
    %42 = vector.shape_cast %41 : vector<8x8x32xbf16> to vector<64x32xbf16>
    %c1_59 = arith.constant 1 : index
    %c2_60 = arith.constant 2 : index
    %c0_61 = arith.constant 0 : index
    %c0_62 = arith.constant 0 : index
    %43 = vector.load %arg2[%c1_59, %c2_60, %c0_61, %c0_62] : memref<3x3x32x128xbf16, #tpu.memory_space<vmem>>, vector<1x1x32x128xbf16>
    %44 = vector.shape_cast %43 : vector<1x1x32x128xbf16> to vector<32x128xbf16>
    %cst_63 = arith.constant dense<0.000000e+00> : vector<64x128xf32>
    %45 = tpu.matmul %42, %44, %cst_63 {dimension_numbers = #tpu.dot_dimension_numbers<[1], [0], [0], [1], [0, 0, 1, 1], [], []>} : vector<64x32xbf16>, vector<32x128xbf16>, vector<64x128xf32> -> vector<64x128xf32>
    %46 = arith.addf %40, %45 : vector<64x128xf32>
    %c2_64 = arith.constant 2 : index
    %c0_65 = arith.constant 0 : index
    %c0_66 = arith.constant 0 : index
    %47 = vector.load %arg12[%c2_64, %c0_65, %c0_66] : memref<10x10x32xbf16, #tpu.memory_space<vmem>>, vector<8x8x32xbf16>
    %48 = vector.shape_cast %47 : vector<8x8x32xbf16> to vector<64x32xbf16>
    %c2_67 = arith.constant 2 : index
    %c0_68 = arith.constant 0 : index
    %c0_69 = arith.constant 0 : index
    %c0_70 = arith.constant 0 : index
    %49 = vector.load %arg2[%c2_67, %c0_68, %c0_69, %c0_70] : memref<3x3x32x128xbf16, #tpu.memory_space<vmem>>, vector<1x1x32x128xbf16>
    %50 = vector.shape_cast %49 : vector<1x1x32x128xbf16> to vector<32x128xbf16>
    %cst_71 = arith.constant dense<0.000000e+00> : vector<64x128xf32>
    %51 = tpu.matmul %48, %50, %cst_71 {dimension_numbers = #tpu.dot_dimension_numbers<[1], [0], [0], [1], [0, 0, 1, 1], [], []>} : vector<64x32xbf16>, vector<32x128xbf16>, vector<64x128xf32> -> vector<64x128xf32>
    %52 = arith.addf %46, %51 : vector<64x128xf32>
    %c2_72 = arith.constant 2 : index
    %c1_73 = arith.constant 1 : index
    %c0_74 = arith.constant 0 : index
    %53 = vector.load %arg12[%c2_72, %c1_73, %c0_74] : memref<10x10x32xbf16, #tpu.memory_space<vmem>>, vector<8x8x32xbf16>
    %54 = vector.shape_cast %53 : vector<8x8x32xbf16> to vector<64x32xbf16>
    %c2_75 = arith.constant 2 : index
    %c1_76 = arith.constant 1 : index
    %c0_77 = arith.constant 0 : index
    %c0_78 = arith.constant 0 : index
    %55 = vector.load %arg2[%c2_75, %c1_76, %c0_77, %c0_78] : memref<3x3x32x128xbf16, #tpu.memory_space<vmem>>, vector<1x1x32x128xbf16>
    %56 = vector.shape_cast %55 : vector<1x1x32x128xbf16> to vector<32x128xbf16>
    %cst_79 = arith.constant dense<0.000000e+00> : vector<64x128xf32>
    %57 = tpu.matmul %54, %56, %cst_79 {dimension_numbers = #tpu.dot_dimension_numbers<[1], [0], [0], [1], [0, 0, 1, 1], [], []>} : vector<64x32xbf16>, vector<32x128xbf16>, vector<64x128xf32> -> vector<64x128xf32>
    %58 = arith.addf %52, %57 : vector<64x128xf32>
    %c2_80 = arith.constant 2 : index
    %c2_81 = arith.constant 2 : index
    %c0_82 = arith.constant 0 : index
    %59 = vector.load %arg12[%c2_80, %c2_81, %c0_82] : memref<10x10x32xbf16, #tpu.memory_space<vmem>>, vector<8x8x32xbf16>
    %60 = vector.shape_cast %59 : vector<8x8x32xbf16> to vector<64x32xbf16>
    %c2_83 = arith.constant 2 : index
    %c2_84 = arith.constant 2 : index
    %c0_85 = arith.constant 0 : index
    %c0_86 = arith.constant 0 : index
    %61 = vector.load %arg2[%c2_83, %c2_84, %c0_85, %c0_86] : memref<3x3x32x128xbf16, #tpu.memory_space<vmem>>, vector<1x1x32x128xbf16>
    %62 = vector.shape_cast %61 : vector<1x1x32x128xbf16> to vector<32x128xbf16>
    %cst_87 = arith.constant dense<0.000000e+00> : vector<64x128xf32>
    %63 = tpu.matmul %60, %62, %cst_87 {dimension_numbers = #tpu.dot_dimension_numbers<[1], [0], [0], [1], [0, 0, 1, 1], [], []>} : vector<64x32xbf16>, vector<32x128xbf16>, vector<64x128xf32> -> vector<64x128xf32>
    %64 = arith.addf %58, %63 : vector<64x128xf32>
    %65 = vector.broadcast %7 : vector<1x128xf32> to vector<64x128xf32>
    %66 = arith.addf %64, %65 : vector<64x128xf32>
    %cst_88 = arith.constant dense<0.000000e+00> : vector<128xf32>
    %67 = vector.multi_reduction <add>, %66, %cst_88 [0] : vector<64x128xf32> to vector<128xf32>
    %68 = vector.shape_cast %67 : vector<128xf32> to vector<1x128xf32>
    %cst_89 = arith.constant 6.400000e+01 : f32
    %69 = vector.broadcast %cst_89 : f32 to vector<1x128xf32>
    %70 = arith.divf %68, %69 : vector<1x128xf32>
    %cst_90 = arith.constant dense<0.000000e+00> : vector<1x128xf32>
    %71 = tpu.matmul %70, %0, %cst_90 {dimension_numbers = #tpu.dot_dimension_numbers<[1], [0], [0], [1], [0, 0, 1, 1], [], []>} : vector<1x128xf32>, vector<128x128xf32>, vector<1x128xf32> -> vector<1x128xf32>
    %72 = vector.broadcast %71 : vector<1x128xf32> to vector<64x128xf32>
    %73 = arith.subf %66, %72 : vector<64x128xf32>
    %74 = arith.mulf %73, %73 : vector<64x128xf32>
    %cst_91 = arith.constant dense<0.000000e+00> : vector<128xf32>
    %75 = vector.multi_reduction <add>, %74, %cst_91 [0] : vector<64x128xf32> to vector<128xf32>
    %76 = vector.shape_cast %75 : vector<128xf32> to vector<1x128xf32>
    %cst_92 = arith.constant 6.400000e+01 : f32
    %77 = vector.broadcast %cst_92 : f32 to vector<1x128xf32>
    %78 = arith.divf %76, %77 : vector<1x128xf32>
    %cst_93 = arith.constant dense<0.000000e+00> : vector<1x128xf32>
    %79 = tpu.matmul %78, %0, %cst_93 {dimension_numbers = #tpu.dot_dimension_numbers<[1], [0], [0], [1], [0, 0, 1, 1], [], []>} : vector<1x128xf32>, vector<128x128xf32>, vector<1x128xf32> -> vector<1x128xf32>
    %cst_94 = arith.constant 9.99999974E-6 : f32
    %80 = vector.broadcast %cst_94 : f32 to vector<1x128xf32>
    %81 = arith.addf %79, %80 : vector<1x128xf32>
    %82 = math.rsqrt %81 : vector<1x128xf32>
    %83 = vector.broadcast %82 : vector<1x128xf32> to vector<64x128xf32>
    %84 = arith.mulf %73, %83 : vector<64x128xf32>
    %85 = vector.broadcast %8 : vector<1x128xf32> to vector<64x128xf32>
    %86 = arith.mulf %84, %85 : vector<64x128xf32>
    %87 = vector.broadcast %9 : vector<1x128xf32> to vector<64x128xf32>
    %88 = arith.addf %86, %87 : vector<64x128xf32>
    %cst_95 = arith.constant 0.000000e+00 : f32
    %89 = vector.broadcast %cst_95 : f32 to vector<64x128xf32>
    %90 = arith.maximumf %88, %89 : vector<64x128xf32>
    %cst_96 = arith.constant 0.000000e+00 : bf16
    %91 = vector.broadcast %cst_96 : bf16 to vector<10x10x128xbf16>
    %c0_97 = arith.constant 0 : index
    %c0_98 = arith.constant 0 : index
    %c0_99 = arith.constant 0 : index
    %92 = vector.load %arg13[%c0_97, %c0_98, %c0_99] : memref<10x10x128xbf16, #tpu.memory_space<vmem>>, vector<10x10x128xbf16>
    tpu.vector_store %arg13[%c0_97, %c0_98, %c0_99], %91 {strides = array<i32>} : memref<10x10x128xbf16, #tpu.memory_space<vmem>>, vector<10x10x128xbf16>,
    %93 = vector.shape_cast %90 : vector<64x128xf32> to vector<8x8x128xf32>
    %94 = arith.truncf %93 : vector<8x8x128xf32> to vector<8x8x128xbf16>
    %c1_100 = arith.constant 1 : index
    %c1_101 = arith.constant 1 : index
    %c0_102 = arith.constant 0 : index
    %95 = vector.load %arg13[%c1_100, %c1_101, %c0_102] : memref<10x10x128xbf16, #tpu.memory_space<vmem>>, vector<8x8x128xbf16>
    tpu.vector_store %arg13[%c1_100, %c1_101, %c0_102], %94 {strides = array<i32>} : memref<10x10x128xbf16, #tpu.memory_space<vmem>>, vector<8x8x128xbf16>,
    %c0_103 = arith.constant 0 : index
    %c0_104 = arith.constant 0 : index
    %96 = vector.load %arg7[%c0_103, %c0_104] : memref<1x128xf32, #tpu.memory_space<vmem>>, vector<1x128xf32>
    %c0_105 = arith.constant 0 : index
    %c0_106 = arith.constant 0 : index
    %97 = vector.load %arg8[%c0_105, %c0_106] : memref<1x128xf32, #tpu.memory_space<vmem>>, vector<1x128xf32>
    %c0_107 = arith.constant 0 : index
    %c0_108 = arith.constant 0 : index
    %98 = vector.load %arg9[%c0_107, %c0_108] : memref<1x128xf32, #tpu.memory_space<vmem>>, vector<1x128xf32>
    %cst_109 = arith.constant 0.000000e+00 : f32
    %99 = vector.broadcast %cst_109 : f32 to vector<64x128xf32>
    %c0_110 = arith.constant 0 : index
    %c0_111 = arith.constant 0 : index
    %c0_112 = arith.constant 0 : index
    %100 = vector.load %arg13[%c0_110, %c0_111, %c0_112] : memref<10x10x128xbf16, #tpu.memory_space<vmem>>, vector<8x8x128xbf16>
    %101 = vector.shape_cast %100 : vector<8x8x128xbf16> to vector<64x128xbf16>
    %c0_113 = arith.constant 0 : index
    %c0_114 = arith.constant 0 : index
    %c0_115 = arith.constant 0 : index
    %c0_116 = arith.constant 0 : index
    %102 = vector.load %arg3[%c0_113, %c0_114, %c0_115, %c0_116] : memref<3x3x128x128xbf16, #tpu.memory_space<vmem>>, vector<1x1x128x128xbf16>
    %103 = vector.shape_cast %102 : vector<1x1x128x128xbf16> to vector<128x128xbf16>
    %cst_117 = arith.constant dense<0.000000e+00> : vector<64x128xf32>
    %104 = tpu.matmul %101, %103, %cst_117 {dimension_numbers = #tpu.dot_dimension_numbers<[1], [0], [0], [1], [0, 0, 1, 1], [], []>} : vector<64x128xbf16>, vector<128x128xbf16>, vector<64x128xf32> -> vector<64x128xf32>
    %105 = arith.addf %99, %104 : vector<64x128xf32>
    %c0_118 = arith.constant 0 : index
    %c1_119 = arith.constant 1 : index
    %c0_120 = arith.constant 0 : index
    %106 = vector.load %arg13[%c0_118, %c1_119, %c0_120] : memref<10x10x128xbf16, #tpu.memory_space<vmem>>, vector<8x8x128xbf16>
    %107 = vector.shape_cast %106 : vector<8x8x128xbf16> to vector<64x128xbf16>
    %c0_121 = arith.constant 0 : index
    %c1_122 = arith.constant 1 : index
    %c0_123 = arith.constant 0 : index
    %c0_124 = arith.constant 0 : index
    %108 = vector.load %arg3[%c0_121, %c1_122, %c0_123, %c0_124] : memref<3x3x128x128xbf16, #tpu.memory_space<vmem>>, vector<1x1x128x128xbf16>
    %109 = vector.shape_cast %108 : vector<1x1x128x128xbf16> to vector<128x128xbf16>
    %cst_125 = arith.constant dense<0.000000e+00> : vector<64x128xf32>
    %110 = tpu.matmul %107, %109, %cst_125 {dimension_numbers = #tpu.dot_dimension_numbers<[1], [0], [0], [1], [0, 0, 1, 1], [], []>} : vector<64x128xbf16>, vector<128x128xbf16>, vector<64x128xf32> -> vector<64x128xf32>
    %111 = arith.addf %105, %110 : vector<64x128xf32>
    %c0_126 = arith.constant 0 : index
    %c2_127 = arith.constant 2 : index
    %c0_128 = arith.constant 0 : index
    %112 = vector.load %arg13[%c0_126, %c2_127, %c0_128] : memref<10x10x128xbf16, #tpu.memory_space<vmem>>, vector<8x8x128xbf16>
    %113 = vector.shape_cast %112 : vector<8x8x128xbf16> to vector<64x128xbf16>
    %c0_129 = arith.constant 0 : index
    %c2_130 = arith.constant 2 : index
    %c0_131 = arith.constant 0 : index
    %c0_132 = arith.constant 0 : index
    %114 = vector.load %arg3[%c0_129, %c2_130, %c0_131, %c0_132] : memref<3x3x128x128xbf16, #tpu.memory_space<vmem>>, vector<1x1x128x128xbf16>
    %115 = vector.shape_cast %114 : vector<1x1x128x128xbf16> to vector<128x128xbf16>
    %cst_133 = arith.constant dense<0.000000e+00> : vector<64x128xf32>
    %116 = tpu.matmul %113, %115, %cst_133 {dimension_numbers = #tpu.dot_dimension_numbers<[1], [0], [0], [1], [0, 0, 1, 1], [], []>} : vector<64x128xbf16>, vector<128x128xbf16>, vector<64x128xf32> -> vector<64x128xf32>
    %117 = arith.addf %111, %116 : vector<64x128xf32>
    %c1_134 = arith.constant 1 : index
    %c0_135 = arith.constant 0 : index
    %c0_136 = arith.constant 0 : index
    %118 = vector.load %arg13[%c1_134, %c0_135, %c0_136] : memref<10x10x128xbf16, #tpu.memory_space<vmem>>, vector<8x8x128xbf16>
    %119 = vector.shape_cast %118 : vector<8x8x128xbf16> to vector<64x128xbf16>
    %c1_137 = arith.constant 1 : index
    %c0_138 = arith.constant 0 : index
    %c0_139 = arith.constant 0 : index
    %c0_140 = arith.constant 0 : index
    %120 = vector.load %arg3[%c1_137, %c0_138, %c0_139, %c0_140] : memref<3x3x128x128xbf16, #tpu.memory_space<vmem>>, vector<1x1x128x128xbf16>
    %121 = vector.shape_cast %120 : vector<1x1x128x128xbf16> to vector<128x128xbf16>
    %cst_141 = arith.constant dense<0.000000e+00> : vector<64x128xf32>
    %122 = tpu.matmul %119, %121, %cst_141 {dimension_numbers = #tpu.dot_dimension_numbers<[1], [0], [0], [1], [0, 0, 1, 1], [], []>} : vector<64x128xbf16>, vector<128x128xbf16>, vector<64x128xf32> -> vector<64x128xf32>
    %123 = arith.addf %117, %122 : vector<64x128xf32>
    %c1_142 = arith.constant 1 : index
    %c1_143 = arith.constant 1 : index
    %c0_144 = arith.constant 0 : index
    %124 = vector.load %arg13[%c1_142, %c1_143, %c0_144] : memref<10x10x128xbf16, #tpu.memory_space<vmem>>, vector<8x8x128xbf16>
    %125 = vector.shape_cast %124 : vector<8x8x128xbf16> to vector<64x128xbf16>
    %c1_145 = arith.constant 1 : index
    %c1_146 = arith.constant 1 : index
    %c0_147 = arith.constant 0 : index
    %c0_148 = arith.constant 0 : index
    %126 = vector.load %arg3[%c1_145, %c1_146, %c0_147, %c0_148] : memref<3x3x128x128xbf16, #tpu.memory_space<vmem>>, vector<1x1x128x128xbf16>
    %127 = vector.shape_cast %126 : vector<1x1x128x128xbf16> to vector<128x128xbf16>
    %cst_149 = arith.constant dense<0.000000e+00> : vector<64x128xf32>
    %128 = tpu.matmul %125, %127, %cst_149 {dimension_numbers = #tpu.dot_dimension_numbers<[1], [0], [0], [1], [0, 0, 1, 1], [], []>} : vector<64x128xbf16>, vector<128x128xbf16>, vector<64x128xf32> -> vector<64x128xf32>
    %129 = arith.addf %123, %128 : vector<64x128xf32>
    %c1_150 = arith.constant 1 : index
    %c2_151 = arith.constant 2 : index
    %c0_152 = arith.constant 0 : index
    %130 = vector.load %arg13[%c1_150, %c2_151, %c0_152] : memref<10x10x128xbf16, #tpu.memory_space<vmem>>, vector<8x8x128xbf16>
    %131 = vector.shape_cast %130 : vector<8x8x128xbf16> to vector<64x128xbf16>
    %c1_153 = arith.constant 1 : index
    %c2_154 = arith.constant 2 : index
    %c0_155 = arith.constant 0 : index
    %c0_156 = arith.constant 0 : index
    %132 = vector.load %arg3[%c1_153, %c2_154, %c0_155, %c0_156] : memref<3x3x128x128xbf16, #tpu.memory_space<vmem>>, vector<1x1x128x128xbf16>
    %133 = vector.shape_cast %132 : vector<1x1x128x128xbf16> to vector<128x128xbf16>
    %cst_157 = arith.constant dense<0.000000e+00> : vector<64x128xf32>
    %134 = tpu.matmul %131, %133, %cst_157 {dimension_numbers = #tpu.dot_dimension_numbers<[1], [0], [0], [1], [0, 0, 1, 1], [], []>} : vector<64x128xbf16>, vector<128x128xbf16>, vector<64x128xf32> -> vector<64x128xf32>
    %135 = arith.addf %129, %134 : vector<64x128xf32>
    %c2_158 = arith.constant 2 : index
    %c0_159 = arith.constant 0 : index
    %c0_160 = arith.constant 0 : index
    %136 = vector.load %arg13[%c2_158, %c0_159, %c0_160] : memref<10x10x128xbf16, #tpu.memory_space<vmem>>, vector<8x8x128xbf16>
    %137 = vector.shape_cast %136 : vector<8x8x128xbf16> to vector<64x128xbf16>
    %c2_161 = arith.constant 2 : index
    %c0_162 = arith.constant 0 : index
    %c0_163 = arith.constant 0 : index
    %c0_164 = arith.constant 0 : index
    %138 = vector.load %arg3[%c2_161, %c0_162, %c0_163, %c0_164] : memref<3x3x128x128xbf16, #tpu.memory_space<vmem>>, vector<1x1x128x128xbf16>
    %139 = vector.shape_cast %138 : vector<1x1x128x128xbf16> to vector<128x128xbf16>
    %cst_165 = arith.constant dense<0.000000e+00> : vector<64x128xf32>
    %140 = tpu.matmul %137, %139, %cst_165 {dimension_numbers = #tpu.dot_dimension_numbers<[1], [0], [0], [1], [0, 0, 1, 1], [], []>} : vector<64x128xbf16>, vector<128x128xbf16>, vector<64x128xf32> -> vector<64x128xf32>
    %141 = arith.addf %135, %140 : vector<64x128xf32>
    %c2_166 = arith.constant 2 : index
    %c1_167 = arith.constant 1 : index
    %c0_168 = arith.constant 0 : index
    %142 = vector.load %arg13[%c2_166, %c1_167, %c0_168] : memref<10x10x128xbf16, #tpu.memory_space<vmem>>, vector<8x8x128xbf16>
    %143 = vector.shape_cast %142 : vector<8x8x128xbf16> to vector<64x128xbf16>
    %c2_169 = arith.constant 2 : index
    %c1_170 = arith.constant 1 : index
    %c0_171 = arith.constant 0 : index
    %c0_172 = arith.constant 0 : index
    %144 = vector.load %arg3[%c2_169, %c1_170, %c0_171, %c0_172] : memref<3x3x128x128xbf16, #tpu.memory_space<vmem>>, vector<1x1x128x128xbf16>
    %145 = vector.shape_cast %144 : vector<1x1x128x128xbf16> to vector<128x128xbf16>
    %cst_173 = arith.constant dense<0.000000e+00> : vector<64x128xf32>
    %146 = tpu.matmul %143, %145, %cst_173 {dimension_numbers = #tpu.dot_dimension_numbers<[1], [0], [0], [1], [0, 0, 1, 1], [], []>} : vector<64x128xbf16>, vector<128x128xbf16>, vector<64x128xf32> -> vector<64x128xf32>
    %147 = arith.addf %141, %146 : vector<64x128xf32>
    %c2_174 = arith.constant 2 : index
    %c2_175 = arith.constant 2 : index
    %c0_176 = arith.constant 0 : index
    %148 = vector.load %arg13[%c2_174, %c2_175, %c0_176] : memref<10x10x128xbf16, #tpu.memory_space<vmem>>, vector<8x8x128xbf16>
    %149 = vector.shape_cast %148 : vector<8x8x128xbf16> to vector<64x128xbf16>
    %c2_177 = arith.constant 2 : index
    %c2_178 = arith.constant 2 : index
    %c0_179 = arith.constant 0 : index
    %c0_180 = arith.constant 0 : index
    %150 = vector.load %arg3[%c2_177, %c2_178, %c0_179, %c0_180] : memref<3x3x128x128xbf16, #tpu.memory_space<vmem>>, vector<1x1x128x128xbf16>
    %151 = vector.shape_cast %150 : vector<1x1x128x128xbf16> to vector<128x128xbf16>
    %cst_181 = arith.constant dense<0.000000e+00> : vector<64x128xf32>
    %152 = tpu.matmul %149, %151, %cst_181 {dimension_numbers = #tpu.dot_dimension_numbers<[1], [0], [0], [1], [0, 0, 1, 1], [], []>} : vector<64x128xbf16>, vector<128x128xbf16>, vector<64x128xf32> -> vector<64x128xf32>
    %153 = arith.addf %147, %152 : vector<64x128xf32>
    %154 = vector.broadcast %96 : vector<1x128xf32> to vector<64x128xf32>
    %155 = arith.addf %153, %154 : vector<64x128xf32>
    %cst_182 = arith.constant dense<0.000000e+00> : vector<128xf32>
    %156 = vector.multi_reduction <add>, %155, %cst_182 [0] : vector<64x128xf32> to vector<128xf32>
    %157 = vector.shape_cast %156 : vector<128xf32> to vector<1x128xf32>
    %cst_183 = arith.constant 6.400000e+01 : f32
    %158 = vector.broadcast %cst_183 : f32 to vector<1x128xf32>
    %159 = arith.divf %157, %158 : vector<1x128xf32>
    %cst_184 = arith.constant dense<0.000000e+00> : vector<1x128xf32>
    %160 = tpu.matmul %159, %0, %cst_184 {dimension_numbers = #tpu.dot_dimension_numbers<[1], [0], [0], [1], [0, 0, 1, 1], [], []>} : vector<1x128xf32>, vector<128x128xf32>, vector<1x128xf32> -> vector<1x128xf32>
    %161 = vector.broadcast %160 : vector<1x128xf32> to vector<64x128xf32>
    %162 = arith.subf %155, %161 : vector<64x128xf32>
    %163 = arith.mulf %162, %162 : vector<64x128xf32>
    %cst_185 = arith.constant dense<0.000000e+00> : vector<128xf32>
    %164 = vector.multi_reduction <add>, %163, %cst_185 [0] : vector<64x128xf32> to vector<128xf32>
    %165 = vector.shape_cast %164 : vector<128xf32> to vector<1x128xf32>
    %cst_186 = arith.constant 6.400000e+01 : f32
    %166 = vector.broadcast %cst_186 : f32 to vector<1x128xf32>
    %167 = arith.divf %165, %166 : vector<1x128xf32>
    %cst_187 = arith.constant dense<0.000000e+00> : vector<1x128xf32>
    %168 = tpu.matmul %167, %0, %cst_187 {dimension_numbers = #tpu.dot_dimension_numbers<[1], [0], [0], [1], [0, 0, 1, 1], [], []>} : vector<1x128xf32>, vector<128x128xf32>, vector<1x128xf32> -> vector<1x128xf32>
    %cst_188 = arith.constant 9.99999974E-6 : f32
    %169 = vector.broadcast %cst_188 : f32 to vector<1x128xf32>
    %170 = arith.addf %168, %169 : vector<1x128xf32>
    %171 = math.rsqrt %170 : vector<1x128xf32>
    %172 = vector.broadcast %171 : vector<1x128xf32> to vector<64x128xf32>
    %173 = arith.mulf %162, %172 : vector<64x128xf32>
    %174 = vector.broadcast %97 : vector<1x128xf32> to vector<64x128xf32>
    %175 = arith.mulf %173, %174 : vector<64x128xf32>
    %176 = vector.broadcast %98 : vector<1x128xf32> to vector<64x128xf32>
    %177 = arith.addf %175, %176 : vector<64x128xf32>
    %cst_189 = arith.constant 0.000000e+00 : f32
    %178 = vector.broadcast %cst_189 : f32 to vector<64x128xf32>
    %179 = arith.maximumf %177, %178 : vector<64x128xf32>
    %180 = vector.shape_cast %179 : vector<64x128xf32> to vector<8x8x128xf32>
    %c0_190 = arith.constant 0 : index
    %c0_191 = arith.constant 0 : index
    %c0_192 = arith.constant 0 : index
    %c0_193 = arith.constant 0 : index
    %181 = vector.load %arg11[%c0_190, %c0_191, %c0_192, %c0_193] : memref<1x8x8x128xf32, #tpu.memory_space<vmem>>, vector<1x8x8x128xf32>
    %182 = vector.shape_cast %181 : vector<1x8x8x128xf32> to vector<8x8x128xf32>
    %183 = vector.shape_cast %180 : vector<8x8x128xf32> to vector<1x8x8x128xf32>
    tpu.vector_store %arg11[%c0_190, %c0_191, %c0_192, %c0_193], %183 {strides = array<i32>} : memref<1x8x8x128xf32, #tpu.memory_space<vmem>>, vector<1x8x8x128xf32>,
    return
  }
  func.func @transform_0(%arg0: i32) -> (i32, i32, i32, i32) {
    %c0_i32 = arith.constant 0 : i32
    %c0_i32_0 = arith.constant 0 : i32
    %c0_i32_1 = arith.constant 0 : i32
    %c0_i32_2 = arith.constant 0 : i32
    return %arg0, %c0_i32, %c0_i32_0, %c0_i32_1 : i32, i32, i32, i32
  }
  func.func @transform_1(%arg0: i32) -> (i32, i32, i32, i32) {
    %c0_i32 = arith.constant 0 : i32
    %c0_i32_0 = arith.constant 0 : i32
    %c0_i32_1 = arith.constant 0 : i32
    %c0_i32_2 = arith.constant 0 : i32
    %c0_i32_3 = arith.constant 0 : i32
    return %c0_i32, %c0_i32_0, %c0_i32_1, %c0_i32_2 : i32, i32, i32, i32
  }
  func.func @transform_2(%arg0: i32) -> (i32, i32, i32, i32) {
    %c0_i32 = arith.constant 0 : i32
    %c0_i32_0 = arith.constant 0 : i32
    %c0_i32_1 = arith.constant 0 : i32
    %c0_i32_2 = arith.constant 0 : i32
    %c0_i32_3 = arith.constant 0 : i32
    return %c0_i32, %c0_i32_0, %c0_i32_1, %c0_i32_2 : i32, i32, i32, i32
  }
  func.func @transform_3(%arg0: i32) -> (i32, i32) {
    %c0_i32 = arith.constant 0 : i32
    %c0_i32_0 = arith.constant 0 : i32
    %c0_i32_1 = arith.constant 0 : i32
    return %c0_i32, %c0_i32_0 : i32, i32
  }
  func.func @transform_4(%arg0: i32) -> (i32, i32) {
    %c0_i32 = arith.constant 0 : i32
    %c0_i32_0 = arith.constant 0 : i32
    %c0_i32_1 = arith.constant 0 : i32
    return %c0_i32, %c0_i32_0 : i32, i32
  }
  func.func @transform_5(%arg0: i32) -> (i32, i32) {
    %c0_i32 = arith.constant 0 : i32
    %c0_i32_0 = arith.constant 0 : i32
    %c0_i32_1 = arith.constant 0 : i32
    return %c0_i32, %c0_i32_0 : i32, i32
  }
  func.func @transform_6(%arg0: i32) -> (i32, i32) {
    %c0_i32 = arith.constant 0 : i32
    %c0_i32_0 = arith.constant 0 : i32
    %c0_i32_1 = arith.constant 0 : i32
    return %c0_i32, %c0_i32_0 : i32, i32
  }
  func.func @transform_7(%arg0: i32) -> (i32, i32) {
    %c0_i32 = arith.constant 0 : i32
    %c0_i32_0 = arith.constant 0 : i32
    %c0_i32_1 = arith.constant 0 : i32
    return %c0_i32, %c0_i32_0 : i32, i32
  }
  func.func @transform_8(%arg0: i32) -> (i32, i32) {
    %c0_i32 = arith.constant 0 : i32
    %c0_i32_0 = arith.constant 0 : i32
    %c0_i32_1 = arith.constant 0 : i32
    return %c0_i32, %c0_i32_0 : i32, i32
  }
  func.func @transform_9(%arg0: i32) -> (i32, i32) {
    %c0_i32 = arith.constant 0 : i32
    %c0_i32_0 = arith.constant 0 : i32
    %c0_i32_1 = arith.constant 0 : i32
    return %c0_i32, %c0_i32_0 : i32, i32
  }
  func.func @transform_10(%arg0: i32) -> (i32, i32, i32, i32) {
    %c0_i32 = arith.constant 0 : i32
    %c0_i32_0 = arith.constant 0 : i32
    %c0_i32_1 = arith.constant 0 : i32
    %c0_i32_2 = arith.constant 0 : i32
    return %arg0, %c0_i32, %c0_i32_0, %c0_i32_1 : i32, i32, i32, i32
  }
}

</mosaic_0001>

<bundles_post_ra>
// kernel: tpu_custom_call.1
= control target key start
LH: loop header
LB: loop body
LE: loop exit
PB: predicated region body
PF: predicated region fallthrough
CT: control target
= control target key end

     0   :  { %s7983_s0 = inlined_call_operand.hbm [shape: f32[2,8,8,32], index: 0, kind: input, shape index: {}]   ;;  %s7984_s1 = inlined_call_operand.hbm [shape: bf16[3,3,32,128], index: 1, kind: input, shape index: {}]   ;;  %s7985_s2 = inlined_call_operand.hbm [shape: bf16[3,3,128,128], index: 2, kind: input, shape index: {}]   ;;  %s7986_s3 = inlined_call_operand.vmem [shape: f32[1,128], index: 3, kind: input, shape index: {}]   ;;  %s7987_s4 = inlined_call_operand.vmem [shape: f32[1,128], index: 4, kind: input, shape index: {}]   ;;  %s7988_s5 = inlined_call_operand.vmem [shape: f32[1,128], index: 5, kind: input, shape index: {}]   ;;  %s7989_s6 = inlined_call_operand.vmem [shape: f32[1,128], index: 6, kind: input, shape index: {}]   ;;  %s7990_s7 = inlined_call_operand.vmem [shape: f32[1,128], index: 7, kind: input, shape index: {}]   ;;  %s7991_s8 = inlined_call_operand.vmem [shape: f32[1,128], index: 8, kind: input, shape index: {}]   ;;  %s7992_s9 = inlined_call_operand.hbm [shape: f32[128,128], index: 9, kind: input, shape index: {}]   ;;  %s7993_s10 = inlined_call_operand.hbm [shape: f32[2,8,8,128], index: 10, kind: output, shape index: {}]  }
   0x1   :  { %8004 = sst [smem:[#allocation28_spill]] %s7991_s8 }
   0x2   :  { %8005 = sst [smem:[#allocation29_spill]] %s7993_s10 }
   0x3   :  { %15 = vsyncpa [#allocation5], 0 }
   0x4   :  { %17 = vsyncpa [#allocation5 + $0x1], 0 }
   0x5   :  { %18 = vsyncpa [#allocation8], 0 }
   0x6   :  { %19 = vsyncpa [#allocation11], 0 }
   0x7   :  { %20 = vsyncpa [#allocation6], 0 }
   0x8   :  { %22 = vsyncpa [#allocation6 + $0x1], 0  ;;  %s6714_s13 = smov 0   ;;  %s6716_s14 = smov 0  }
   0x9   :  { %s6718_s15 = smov 0   ;;  %s6720_s16 = smov 0  }
   0xa LB: > { %8006 = sst [smem:[#allocation17_spill]] %s6630_s13  ;;  %s6735_s17 = sadd.s32 4294967295, %s6642_s16   ;;  %s6642_s16 = sphi %s6720_s16, %s8071_s16   ;;  %s6638_s15 = sphi %s6718_s15, %s8070_s15   ;;  %s6634_s14 = sphi %s6716_s14, %s8069_s14   ;;  %s6630_s13 = sphi %s6714_s13, %s8068_s13  }
   0xb   : > { %s5025_s18 = sadd.s32 4294967294, %s6642_s16   ;;  %p48_p0 = scmp.ne.s32.totalorder %s6634_s14, %s6630_s13 }
   0xc   : > { %p7994_p1 = scmp.eq.s32.totalorder %s6735_s17, 0  ;;  %p267_p3 = scmp.eq.s32.totalorder %s5025_s18, 1 }
   0xd   : > { %p5026_p5 = scmp.ge.s32.totalorder %s6642_s16, 1  ;;  %p274_p7 = scmp.lt.s32.totalorder %s6642_s16, 3 }
   0xe   : > { %p6744_p4 = por %p7994_p1, %p48_p0  ;;  %p6749_p6 = por %p267_p3, %p48_p0 }
   0xf   : > { %p6754_p8 = pnand %p5026_p5, %p274_p7  ;;  %s6644_s22 = smov [#allocation7]  }
  0x10   : > { %s8007_s19 = scalar_select %p6744_p4, 1, 0 }
  0x11   : > { %s8008_s20 = scalar_select %p6749_p6, 1, 0 }
  0x12   : > { %s8010_s21 = scalar_select %p6754_p8, 1, 0 }
  0x13   : > { %8009 = sst [smem:[#allocation18_spill]] %s8008_s20  ;;  %s286_s23 = sshll.u32 %s6644_s22, 4  ;;  %s6758_s23 = int_to_ptr.vmem [resolvable:$true] %s286_s23 }
  0x14   : > { %p6265_p9 = pneg %p6754_p8  ;;  %s6645_s25 = smov [#allocation9]  }
  0x15   : > { %s299_s26 = sshll.u32 %s6645_s25, 4  ;;  %s6646_s27 = smov [#allocation10]   ;;  %s6769_s26 = int_to_ptr.vmem [resolvable:$true] %s299_s26 }
  0x16   : > { %p6765_p11 = pnand %p6265_p9, %p7994_p1  ;;  %s6771_s28 = sshll.u32 %s6646_s27, 4  ;;  %s331_s28 = int_to_ptr.vmem [resolvable:$true] %s6771_s28 }
  0x17   : > { %s6454_s11 = scalar_lea.hbm %s7984_s1, 2304 }
  0x18   : > { %p6455_p12 = scmp.ne.s32.totalorder %s7984_s1, %s6454_s11  ;;  %p6781_p13 = pneg %p6765_p11 }
  0x19   : > { %p6461_p5 = scmp.lt.u32.totalorder %s6454_s11, %s7984_s1 }
  0x1a   : > { %p6457_p0 = pnand %p6781_p13, %p6455_p12 }
  0x1c   : > { %p6458_p3 = pneg %p6457_p0 }
  0x1e   : > { %p6463_p7 = pnand %p6461_p5, %p6458_p3 }
  0x20   : > { %6466 = shalt.err (!%p6463_p7)
}
  0x21   : > { %s6467_s29 = scalar_lea.vmem %s6758_s23, 2304  ;;  %p6475_p2 = scmp.lt.s32.totalorder %s6758_s23, %s6758_s23 }
  0x22   : > { %p6468_p9 = scmp.ne.s32.totalorder %s6758_s23, %s6467_s29  ;;  %p6476_p6 = scmp.lt.s32.totalorder %s6467_s29, %s6467_s29 }
  0x24   : > { %p6470_p10 = pnand %p6468_p9, %p6781_p13  ;;  %p6477_p12 = por %p6476_p6, %p6475_p2 }
  0x26   : > { %p6471_p1 = pneg %p6470_p10 }
  0x28   : > { %p6478_p0 = pnand %p6477_p12, %p6471_p1 }
  0x2a   : > { %6481 = shalt.err (!%p6478_p0)
}
  0x2b   : > { %s6647_s30 = smov 64   ;;  %s6648_s11 = smov 4  }
  0x2c   : > { %6268 = dma.hbm_to_vmem [thread:$0]  (!%p6765_p11), %s7984_s1, 2304, %s6758_s23, [#allocation8], %s6647_s30, %s6647_s30, %s6648_s11  }
  0x2d   : > { %s6482_s20 = scalar_lea.hbm %s7985_s2, 9216 }
  0x2e   : > { %p6483_p2 = scmp.ne.s32.totalorder %s7985_s2, %s6482_s20  ;;  %p6489_p10 = scmp.lt.u32.totalorder %s6482_s20, %s7985_s2 }
  0x30   : > { %p6485_p1 = pnand %p6483_p2, %p6781_p13 }
  0x32   : > { %p6486_p6 = pneg %p6485_p1 }
  0x34   : > { %p6491_p3 = pnand %p6489_p10, %p6486_p6 }
  0x36   : > { %6494 = shalt.err (!%p6491_p3)
}
  0x37   : > { %s6495_s23 = scalar_lea.vmem %s6769_s26, 9216  ;;  %p6503_p12 = scmp.lt.s32.totalorder %s6769_s26, %s6769_s26 }
  0x38   : > { %p6496_p5 = scmp.ne.s32.totalorder %s6769_s26, %s6495_s23  ;;  %p6504_p0 = scmp.lt.s32.totalorder %s6495_s23, %s6495_s23 }
  0x3a   : > { %p6498_p7 = pnand %p6496_p5, %p6781_p13  ;;  %p6505_p2 = por %p6504_p0, %p6503_p12 }
  0x3c   : > { %p6499_p9 = pneg %p6498_p7 }
  0x3e   : > { %p6506_p1 = pnand %p6505_p2, %p6499_p9 }
  0x40   : > { %6509 = shalt.err (!%p6506_p1)
}
  0x41   : > { %6271 = dma.hbm_to_vmem [thread:$0]  (!%p6765_p11), %s7985_s2, 9216, %s6769_s26, [#allocation8], %s6647_s30, %s6647_s30, %s6648_s11  }
  0x42   : > { %s6510_s12 = scalar_lea.hbm %s7992_s9, 2048 }
  0x43   : > { %p6511_p6 = scmp.ne.s32.totalorder %s7992_s9, %s6510_s12  ;;  %p6517_p5 = scmp.lt.u32.totalorder %s6510_s12, %s7992_s9 }
  0x45   : > { %p6513_p10 = pnand %p6511_p6, %p6781_p13 }
  0x47   : > { %p6514_p3 = pneg %p6513_p10 }
  0x49   : > { %p6519_p7 = pnand %p6517_p5, %p6514_p3 }
  0x4b   : > { %6522 = shalt.err (!%p6519_p7)
}
  0x4c   : > { %s6523_s23 = scalar_lea.vmem %s331_s28, 2048  ;;  %p6531_p2 = scmp.lt.s32.totalorder %s331_s28, %s331_s28 }
  0x4d   : > { %p6524_p9 = scmp.ne.s32.totalorder %s331_s28, %s6523_s23  ;;  %p6532_p1 = scmp.lt.s32.totalorder %s6523_s23, %s6523_s23 }
  0x4f   : > { %p6526_p12 = pnand %p6524_p9, %p6781_p13  ;;  %p6533_p4 = por %p6532_p1, %p6531_p2 }
  0x51   : > { %p6527_p0 = pneg %p6526_p12 }
  0x53   : > { %p6534_p8 = pnand %p6533_p4, %p6527_p0 }
  0x55   : > { %6537 = shalt.err (!%p6534_p8)
}
  0x56   : > { %s6649_s26 = smov 128   ;;  %s6650_s22 = smov 8  }
  0x57   : > { %6274 = dma.hbm_to_vmem [thread:$0]  (!%p6765_p11), %s7992_s9, 2048, %s331_s28, [#allocation11], %s6649_s26, %s6649_s26, %s6650_s22  }
  0x58   : > { %s6848_s8 = sadd.s32 1, %s6642_s16   ;;  %s35_s13 = sadd.s32 1, %s6638_s15 }
  0x59   : > { %s32_s10 = ssub.s32 %s6642_s16, %s6848_s8  ;;  %p42_p8 = scmp.ne.s32.totalorder %s6638_s15, %s6634_s14 }
  0x5a   : > { %p33_p4 = scmp.eq.s32.totalorder %s32_s10, 0  ;;  %p43_p13 = scmp.eq.s32.totalorder %s6642_s16, 0 }
  0x5b   : > { %p6286_p6 = scmp.lt.s32.totalorder %s6642_s16, 2  ;;  %p8013_p3 = scmp.eq.s32.totalorder %s6735_s17, 1 }
  0x5c   : > { %s6858_s20 = scalar_select %p33_p4, %s6638_s15, %s35_s13  }
  0x5d   : > { %p44_p10 = por %p43_p13, %p42_p8  ;;  %p6862_p5 = por %p8013_p3, %p42_p8 }
  0x5e   : > { %s344_s12 = sand.u32 1, %s6638_s15   ;;  %s5313_s18 = sshll.u32 %s6642_s16, 10 }
  0x5f   : > { %s5031_s28 = sshll.u32 %s344_s12, 6  ;;  %s6871_s29 = scalar_lea.hbm %s7983_s0, %s5313_s18 }
  0x60   : > { %s348_s23 = scalar_lea.vmem [#allocation4], %s5031_s28  ;;  %p6873_p11 = pnand %p6286_p6, %p44_p10 }
  0x61   : > { %s355_s30 = sshll.u32 %s348_s23, 4  ;;  %s6879_s10 = scalar_lea.sflag [#allocation5], %s344_s12  ;;  %s6877_s30 = int_to_ptr.vmem [resolvable:$true] %s355_s30 }
  0x62   : > { %s6538_s13 = scalar_lea.hbm %s6871_s29, 1024  ;;  %p6540_p9 = pneg %p6873_p11 }
  0x63   : > { %p6539_p7 = scmp.ne.s32.totalorder %s6871_s29, %s6538_s13  ;;  %s6543_s25 = scalar_lea.hbm %s7983_s0, 2048 }
  0x64   : > { %p6544_p2 = scmp.lt.u32.totalorder %s6871_s29, %s7983_s0  ;;  %p6545_p1 = scmp.lt.u32.totalorder %s6543_s25, %s6538_s13 }
  0x65   : > { %p6541_p12 = pnand %p6540_p9, %p6539_p7  ;;  %p6547_p8 = scmp.lt.u32.totalorder %s6538_s13, %s6871_s29 }
  0x66   : > { %p6546_p4 = por %p6545_p1, %p6544_p2 }
  0x67   : > { %p6542_p0 = pneg %p6541_p12 }
  0x68   : > { %p6548_p13 = por %p6547_p8, %p6546_p4 }
  0x6a   : > { %p6549_p6 = pnand %p6548_p13, %p6542_p0 }
  0x6c   : > { %6552 = shalt.err (!%p6549_p6)
}
  0x6d   : > { %s6553_s12 = scalar_lea.vmem %s6877_s30, 1024  ;;  %s6651_s18 = smov [#allocation4]  }
  0x6e   : > { %p6554_p10 = scmp.ne.s32.totalorder %s6877_s30, %s6553_s12  ;;  %s6558_s28 = sshll.u32 %s6651_s18, 4  ;;  %s6559_s28 = int_to_ptr.vmem [resolvable:$false] %s6558_s28 }
  0x6f   : > { %s6560_s27 = scalar_lea.vmem %s6559_s28, 2048  ;;  %p6561_p12 = scmp.lt.s32.totalorder %s6877_s30, %s6559_s28 }
  0x70   : > { %p6556_p3 = pnand %p6554_p10, %p6540_p9  ;;  %p6562_p2 = scmp.lt.s32.totalorder %s6560_s27, %s6553_s12 }
  0x72   : > { %p6557_p7 = pneg %p6556_p3  ;;  %p6563_p1 = por %p6562_p2, %p6561_p12 }
  0x74   : > { %p6564_p4 = pnand %p6563_p1, %p6557_p7 }
  0x76   : > { %6567 = shalt.err (!%p6564_p4)
}
  0x77   : > { %6278 = dma.hbm_to_vmem [thread:$0]  (!%p6873_p11), %s6871_s29, 1024, %s6877_s30, %s6879_s10, %s6649_s26, %s6649_s26, %s6650_s22  }
  0x78   : > { %p8016_p9 = scmp.ne.s32.totalorder %s8010_s21, 0 }
  0x7a   : > { %367 = sbr.rel (%p8016_p9) target bundleno = 2008 (0x7d8), region = 60 }
  0x81   : > { %s6913_s13 = sand.u32 1, %s6634_s14   ;;  %p8017_p0 = scmp.ne.s32.totalorder %s8007_s19, 0 }
  0x82   : > { %s5035_s25 = sshll.u32 %s6913_s13, 6  ;;  %s370_s23 = scalar_lea.sflag [#allocation5], %s6913_s13 }
  0x83   : > { %s6919_s11 = scalar_lea.vmem [#allocation4], %s5035_s25 }
  0x84   : > { %6613 = dma.done.wait (%p8017_p0), %s370_s23, 1024  }
  0x85   : > { %6615 = vsyncadd (%p8017_p0), %s370_s23, 4294966272  ;;  %p8018_p11 = scmp.eq.s32.totalorder %s6735_s17, 0 }
  0x87   : > { %6617 = dma.done.wait (%p8018_p11), [#allocation8], 11520   ;;  %p8019_p8 = pmov %p8018_p11 }
  0x89   : > { %6619 = vsyncadd (%p8019_p8), [#allocation8], 4294955776  ;;  %p8020_p13 = pmov %p8019_p8 }
  0x8a   : > { %p8021_p6 = pmov %p8019_p8 }
  0x8b   : > { %6621 = dma.done.wait (%p8020_p13), [#allocation11], 2048  }
  0x8c   : > { %6623 = vsyncadd (%p8021_p6), [#allocation11], 4294965248  ;;  %vm439_vm0 = vcmask 257024   ;;  %v6652_v0 = vmov 0   ;;  %vm441_vm1 = vcmask 253952   ;;  %v6336_v1 = vld [vmem:[#allocation7] sm:$0xff]  }
  0x8d   : > { %440 = vst.msk [vmem:[#allocation2] sm:$0xf] %vm439_vm0, %v6652_v0  ;;  %443 = vst.msk [vmem:[#allocation2 + $0x8] sm:$0xf] %vm439_vm0, %v6652_v0  ;;  %v6337_v2 = vld [vmem:[#allocation7 + $0x8] sm:$0xff]   ;;  %5573 = vmatprep.subr.bf16.mxu0 %v6336_v1  ;;  %v461_v3 = vld [vmem:[%s6919_s11] sm:$0xff] }
  0x8e   : > { %445 = vst.msk [vmem:[#allocation2 + $0x10] sm:$0xf] %vm439_vm0, %v6652_v0  ;;  %447 = vst.msk [vmem:[#allocation2 + $0x18] sm:$0xf] %vm439_vm0, %v6652_v0  ;;  %5574 = vmatpush3.bf16.msra.mxu0 %v6336_v1  ;;  %v5314_v4 = vpack.c.bf16 %v461_v3, %v461_v3  ;;  %v6954_v5 = vld [vmem:[#allocation7 + $0x20] sm:$0xff]   ;;  %v462_v6 = vld [vmem:[%s6919_s11 + $0x8] sm:$0xff] }
  0x8f   : > { %449 = vst.msk [vmem:[#allocation2 + $0x20] sm:$0xf] %vm439_vm0, %v6652_v0  ;;  %451 = vst.msk [vmem:[#allocation2 + $0x28] sm:$0xf] %vm439_vm0, %v6652_v0  ;;  %5575 = vmatprep.subr.bf16.mxu0 %v6337_v2  ;;  %v463_v7 = vld [vmem:[%s6919_s11 + $0x10] sm:$0xff]  ;;  %v5315_v10 = vpack.c.bf16 %v462_v6, %v462_v6  ;;  %v464_v13 = vld [vmem:[%s6919_s11 + $0x18] sm:$0xff] }
  0x90   : > { %453 = vst.msk [vmem:[#allocation2 + $0x30] sm:$0xf] %vm439_vm0, %v6652_v0  ;;  %455 = vst.msk [vmem:[#allocation2 + $0x38] sm:$0xf] %vm439_vm0, %v6652_v0  ;;  %v502_v8 = vshrl.u32 %v5314_v4, 16  ;;  %v505_v9 = vshll.u32 %v5314_v4, 16  ;;  %v5316_v11 = vpack.c.bf16 %v463_v7, %v463_v7  ;;  %v5317_v24 = vpack.c.bf16 %v464_v13, %v464_v13 }
  0x91   : > { %457 = vst.msk [vmem:[#allocation2 + $0x40] sm:$0xf] %vm439_vm0, %v6652_v0  ;;  %459 = vst.msk [vmem:[#allocation2 + $0x48] sm:$0xf] %vm439_vm0, %v6652_v0  ;;  %vm583_vm2 = vsmask.f32 7938 }
  0x92   : > { %2500 = vst [vmem:[#allocation3] sm:$0xf] %v6652_v0  ;;  %2501 = vst [vmem:[#allocation3 + $0x4] sm:$0x1] %v6652_v0  ;;  %5576 = vmatpush3.bf16.msra.mxu0 %v6337_v2  ;;  %v504_v12 = vrot.slane %v502_v8, 7  ;;  %v465_v14 = vld [vmem:[%s6919_s11 + $0x20] sm:$0xff] }
  0x93   : > { %2502 = vst [vmem:[#allocation3 + $0x8] sm:$0xf] %v6652_v0  ;;  %2503 = vst [vmem:[#allocation3 + $0xc] sm:$0x1] %v6652_v0  ;;  %vm589_vm3 = vsmask.f32 256  ;;  %5585 = vmatprep.subr.bf16.mxu0 %v6954_v5  ;;  %v5318_v25 = vpack.c.bf16 %v465_v14, %v465_v14 }
  0x94   : > { %2504 = vst [vmem:[#allocation3 + $0x10] sm:$0xf] %v6652_v0  ;;  %2505 = vst [vmem:[#allocation3 + $0x14] sm:$0x1] %v6652_v0  ;;  %v585_v16 = vld [vmem:[#allocation2 + $0x8] sm:$0xf]  ;;  %v507_v21 = vor.u32 %v505_v9, %v504_v12 }
  0x95   : > { %2506 = vst [vmem:[#allocation3 + $0x18] sm:$0xf] %v6652_v0  ;;  %2507 = vst [vmem:[#allocation3 + $0x1c] sm:$0x1] %v6652_v0  ;;  %v510_v17 = vshrl.u32 %v5315_v10, 16  ;;  %v513_v18 = vshll.u32 %v5315_v10, 16 }
  0x96   : > { %2508 = vst [vmem:[#allocation3 + $0x20] sm:$0xf] %v6652_v0  ;;  %2509 = vst [vmem:[#allocation3 + $0x24] sm:$0x1] %v6652_v0  ;;  %v518_v19 = vshrl.u32 %v5316_v11, 16  ;;  %v521_v20 = vshll.u32 %v5316_v11, 16 }
  0x97   : > { %2510 = vst [vmem:[#allocation3 + $0x28] sm:$0xf] %v6652_v0  ;;  %2511 = vst [vmem:[#allocation3 + $0x2c] sm:$0x1] %v6652_v0  ;;  %v594_v22 = vld [vmem:[#allocation2 + $0x10] sm:$0xf] }
  0x98   : > { %2512 = vst [vmem:[#allocation3 + $0x30] sm:$0xf] %v6652_v0  ;;  %2513 = vst [vmem:[#allocation3 + $0x34] sm:$0x1] %v6652_v0  ;;  %v508_v26 = vrot.slane %v504_v12, 4  ;;  %v512_v27 = vrot.slane %v510_v17, 7 }
  0x99   : > { %2514 = vst [vmem:[#allocation3 + $0x38] sm:$0xf] %v6652_v0  ;;  %2515 = vst [vmem:[#allocation3 + $0x3c] sm:$0x1] %v6652_v0  ;;  %v520_v28 = vrot.slane %v518_v19, 7  ;;  %v466_v30 = vld [vmem:[%s6919_s11 + $0x28] sm:$0xff] }
  0x9a   : > { %2516 = vst [vmem:[#allocation3 + $0x40] sm:$0xf] %v6652_v0  ;;  %2517 = vst [vmem:[#allocation3 + $0x44] sm:$0x1] %v6652_v0  ;;  %v600_v29 = vld [vmem:[#allocation2 + $0x18] sm:$0xf]  ;;  %v515_v37 = vor.u32 %v513_v18, %v512_v27  ;;  %v5319_v46 = vpack.c.bf16 %v466_v30, %v466_v30 }
  0x9b   : > { %2518 = vst [vmem:[#allocation3 + $0x48] sm:$0xf] %v6652_v0  ;;  %2519 = vst [vmem:[#allocation3 + $0x4c] sm:$0x1] %v6652_v0  ;;  %v526_v34 = vshrl.u32 %v5317_v24, 16  ;;  %v529_v35 = vshll.u32 %v5317_v24, 16  ;;  %v523_v39 = vor.u32 %v521_v20, %v520_v28 }
  0x9c   : > { %446 = vst.msk [vmem:[#allocation2 + $0x14] sm:$0x1] %vm441_vm1, %v6652_v0  ;;  %448 = vst.msk [vmem:[#allocation2 + $0x1c] sm:$0x1] %vm441_vm1, %v6652_v0  ;;  %v534_v36 = vshrl.u32 %v5318_v25, 16  ;;  %v516_v38 = vrot.slane %v512_v27, 4 }
  0x9d   : > { %442 = vst.msk [vmem:[#allocation2 + $0x4] sm:$0x1] %vm441_vm1, %v6652_v0  ;;  %444 = vst.msk [vmem:[#allocation2 + $0xc] sm:$0x1] %vm441_vm1, %v6652_v0  ;;  %v524_v40 = vrot.slane %v520_v28, 4  ;;  %v528_v42 = vrot.slane %v526_v34, 7 }
  0x9e   : > { %450 = vst.msk [vmem:[#allocation2 + $0x24] sm:$0x1] %vm441_vm1, %v6652_v0  ;;  %452 = vst.msk [vmem:[#allocation2 + $0x2c] sm:$0x1] %vm441_vm1, %v6652_v0  ;;  %v606_v41 = vld [vmem:[#allocation2 + $0x20] sm:$0xf] }
  0x9f   : > { %454 = vst.msk [vmem:[#allocation2 + $0x34] sm:$0x1] %vm441_vm1, %v6652_v0  ;;  %456 = vst.msk [vmem:[#allocation2 + $0x3c] sm:$0x1] %vm441_vm1, %v6652_v0  ;;  %v536_v43 = vrot.slane %v534_v36, 7  ;;  %v537_v44 = vshll.u32 %v5318_v25, 16  ;;  %v531_v53 = vor.u32 %v529_v35, %v528_v42 }
  0xa0   : > { %458 = vst.msk [vmem:[#allocation2 + $0x44] sm:$0x1] %vm441_vm1, %v6652_v0  ;;  %460 = vst.msk [vmem:[#allocation2 + $0x4c] sm:$0x1] %vm441_vm1, %v6652_v0  ;;  %v467_v45 = vld [vmem:[%s6919_s11 + $0x30] sm:$0xff]  ;;  %v532_v54 = vrot.slane %v528_v42, 4 }
  0xa1   : > { %vm6962_vm4 = vmand %vm439_vm0, %vm583_vm2  ;;  %v612_v52 = vld [vmem:[#allocation2 + $0x28] sm:$0xf]  ;;  %v539_v55 = vor.u32 %v537_v44, %v536_v43  ;;  %v540_v56 = vrot.slane %v536_v43, 4  ;;  %v5320_v58 = vpack.c.bf16 %v467_v45, %v467_v45  ;;  %v542_v59 = vshrl.u32 %v5319_v46, 16  ;;  %v639_v63 = vld [vmem:[#allocation2] sm:$0xf] }
  0xa2   : > { %v586_v31 = vsel %vm6962_vm4, %v507_v21, %v585_v16  ;;  %vm6972_vm5 = vmand %vm441_vm1, %vm589_vm3  ;;  %v595_v48 = vsel %vm6962_vm4, %v515_v37, %v594_v22  ;;  %v601_v50 = vsel %vm6962_vm4, %v523_v39, %v600_v29  ;;  %v545_v60 = vshll.u32 %v5319_v46, 16  ;;  %v618_v7 = vld [vmem:[#allocation2 + $0x30] sm:$0xf]  ;;  %v624_v16 = vld [vmem:[#allocation2 + $0x38] sm:$0xf]  ;;  %s5330_s19 = sshll.u32 %s6735_s17, 10 }
  0xa3   : > { %v597_v23 = vld [vmem:[#allocation2 + $0x14] sm:$0x1]  ;;  %v603_v33 = vld [vmem:[#allocation2 + $0x1c] sm:$0x1]  ;;  %587 = vst [vmem:[#allocation2 + $0x8] sm:$0xf] %v586_v31  ;;  %v607_v0 = vsel %vm6962_vm4, %v531_v53, %v606_v41  ;;  %v613_v1 = vsel %vm6962_vm4, %v539_v55, %v612_v52 }
  0xa4   : > { %v591_v47 = vld [vmem:[#allocation2 + $0xc] sm:$0x1]  ;;  %v598_v49 = vsel %vm6972_vm5, %v516_v38, %v597_v23  ;;  %v604_v51 = vsel %vm6972_vm5, %v524_v40, %v603_v33  ;;  %596 = vst [vmem:[#allocation2 + $0x10] sm:$0xf] %v595_v48  ;;  %602 = vst [vmem:[#allocation2 + $0x18] sm:$0xf] %v601_v50 }
  0xa5   : > { %599 = vst [vmem:[#allocation2 + $0x14] sm:$0x1] %v598_v49  ;;  %605 = vst [vmem:[#allocation2 + $0x1c] sm:$0x1] %v604_v51  ;;  %v609_v57 = vld [vmem:[#allocation2 + $0x24] sm:$0x1]  ;;  %v592_v61 = vsel %vm6972_vm5, %v508_v26, %v591_v47 }
  0xa6   : > { %v615_v62 = vld [vmem:[#allocation2 + $0x2c] sm:$0x1]  ;;  %593 = vst [vmem:[#allocation2 + $0xc] sm:$0x1] %v592_v61  ;;  %vm803_vm6 = vcmask 261120   ;;  %v544_v2 = vrot.slane %v542_v59, 7  ;;  %v610_v4 = vsel %vm6972_vm5, %v532_v54, %v609_v57 }
  0xa7   : > { %608 = vst [vmem:[#allocation2 + $0x20] sm:$0xf] %v607_v0  ;;  %614 = vst [vmem:[#allocation2 + $0x28] sm:$0xf] %v613_v1  ;;  %v550_v3 = vshrl.u32 %v5320_v58, 16  ;;  %v616_v8 = vsel %vm6972_vm5, %v540_v56, %v615_v62  ;;  %v553_v11 = vshll.u32 %v5320_v58, 16 }
  0xa8   : > { %611 = vst [vmem:[#allocation2 + $0x24] sm:$0x1] %v610_v4  ;;  %v547_v10 = vor.u32 %v545_v60, %v544_v2  ;;  %vm1014_vm7 = vcmask 1042432   ;;  %617 = vst [vmem:[#allocation2 + $0x2c] sm:$0x1] %v616_v8  ;;  %v663_v12 = vshrl.u32 %v639_v63, 16 }
  0xa9   : > { %v666_v13 = vshll.u32 %v639_v63, 16  ;;  %v552_v14 = vrot.slane %v550_v3, 7  ;;  %vm1015_vm8 = vcmask 1046532   ;;  %v990_v20 = vld [vmem:[#allocation2] sm:$0xe]  ;;  %v6342_v21 = vld [vmem:[#allocation7 + $0x28] sm:$0xff]  }
  0xaa   : > { %v640_v6 = vld [vmem:[#allocation2 + $0x8] sm:$0xf]  ;;  %v619_v19 = vsel %vm6962_vm4, %v547_v10, %v618_v7  ;;  %v548_v22 = vrot.slane %v544_v2, 4  ;;  %v7000_v23 = vld [vmem:[#allocation2 + $0x4] sm:$0x1]  ;;  %v7005_v31 = vrot.slane %v663_v12, 4  ;;  %vm7032_vm9 = vmor %vm1014_vm7, %vm1015_vm8 }
  0xab   : > { %v5058_v9 = vcombine.low %v639_v63, %v640_v6  ;;  %v641_v17 = vld [vmem:[#allocation2 + $0x10] sm:$0xf]  ;;  %v6996_v18 = vld [vmem:[#allocation2 + $0x18] sm:$0xf]  ;;  %620 = vst [vmem:[#allocation2 + $0x30] sm:$0xf] %v619_v19  ;;  %v555_v28 = vor.u32 %v553_v11, %v552_v14 }
  0xac   : > { %v621_v24 = vld [vmem:[#allocation2 + $0x34] sm:$0x1]  ;;  %v677_v25 = vshrl.u32 %v640_v6, 16  ;;  %v680_v26 = vshll.u32 %v640_v6, 16  ;;  %v5059_v27 = vcombine.low %v641_v17, %v6996_v18  ;;  %v991_v30 = vld [vmem:[#allocation2 + $0x8] sm:$0xe] }
  0xad   : > { %5577 = vmatprep.mubr.msk.bf16.mxu0 %vm803_vm6, %v5058_v9  ;;  %v7003_v29 = vld [vmem:[#allocation2 + $0xc] sm:$0x1]  ;;  %v7007_v33 = vrot.slane %v666_v13, 5  ;;  %v5068_v35 = vrot.slane %v990_v20, 9  ;;  %v468_v36 = vld [vmem:[%s6919_s11 + $0x38] sm:$0xff]  ;;  %v556_v38 = vrot.slane %v552_v14, 4  ;;  %v625_v39 = vsel %vm6962_vm4, %v555_v28, %v624_v16 }
  0xae   : > { %v7009_v34 = vld [vmem:[#allocation2 + $0x20] sm:$0xf]  ;;  %5578 = vmatmul.mubr.msk.bf16.vlgmr.msra.gmra.mrb[0].mxu0 %vm803_vm6, %v5059_v27  ;;  %v7013_v37 = vld [vmem:[#allocation2 + $0x28] sm:$0xf]  ;;  %v1019_v40 = vrot.slane %v7000_v23, 5  ;;  %v5069_v43 = vrot.slane %v991_v30, 9  ;;  %v622_v45 = vsel %vm6972_vm5, %v548_v22, %v621_v24  ;;  %v5321_v51 = vpack.c.bf16 %v468_v36, %v468_v36 }
  0xaf   : > { %v7018_v41 = vld [vmem:[#allocation2 + $0x14] sm:$0x1]  ;;  %5586 = vmatpush3.bf16.msra.mxu0 %v6954_v5  ;;  %v5060_v42 = vcombine.low %v7009_v34, %v7013_v37  ;;  %626 = vst [vmem:[#allocation2 + $0x38] sm:$0xf] %v625_v39  ;;  %v1023_v44 = vrot.slane %v7003_v29, 5  ;;  %v7026_v47 = vrot.slane %v677_v25, 4 }
  0xb0   : > { %v627_v46 = vld [vmem:[#allocation2 + $0x3c] sm:$0x1]  ;;  %v7028_v48 = vrot.slane %v680_v26, 5  ;;  %v691_v49 = vshrl.u32 %v641_v17, 16  ;;  %5587 = vmatprep.subr.bf16.mxu0 %v6342_v21  ;;  %v7036_v50 = vld [vmem:[#allocation7 + $0x30] sm:$0xff]   ;;  %v694_v52 = vshll.u32 %v641_v17, 16  ;;  %v1020_v62 = vsel %vm7032_vm9, %v5068_v35, %v1019_v40 }
  0xb1   : > { %623 = vst [vmem:[#allocation2 + $0x34] sm:$0x1] %v622_v45  ;;  %v705_v53 = vshrl.u32 %v6996_v18, 16  ;;  %v708_v54 = vshll.u32 %v6996_v18, 16  ;;  %5581 = vmatprep.mubr.msk.bf16.mxu0 %vm803_vm6, %v5060_v42  ;;  %v7041_v55 = vld [vmem:[#allocation2 + $0x1c] sm:$0x1]  ;;  %v628_v60 = vsel %vm6972_vm5, %v556_v38, %v627_v46  ;;  %v1024_v63 = vsel %vm7032_vm9, %v5069_v43, %v1023_v44 }
  0xb2   : > { %v1027_v56 = vrot.slane %v7018_v41, 5  ;;  %v992_v57 = vld [vmem:[#allocation2 + $0x10] sm:$0xe]  ;;  %v993_v58 = vld [vmem:[#allocation2 + $0x18] sm:$0xe]  ;;  %v7056_v2 = vrot.slane %v691_v49, 4  ;;  %v5076_v11 = vcombine.low %v1020_v62, %v1024_v63 }
  0xb3   : > { %v7044_v59 = vld [vmem:[#allocation2 + $0x24] sm:$0x1]  ;;  %v7048_v61 = vld [vmem:[#allocation2 + $0x30] sm:$0xf]  ;;  %5588 = vmatpush3.bf16.msra.mxu0 %v6342_v21  ;;  %v7054_v0 = vld [vmem:[#allocation2 + $0x2c] sm:$0x1] }
  0xb4   : > { %8028 = vst [vmem:[#allocation19_spill] sm:$0xff] %v7044_v59  ;;  %8029 = vst [vmem:[#allocation20_spill] sm:$0xff] %v7054_v0  ;;  %v994_v1 = vld [vmem:[#allocation2 + $0x20] sm:$0xe]  ;;  %5597 = vmatprep.subr.bf16.mxu0 %v7036_v50  ;;  %v995_v3 = vld [vmem:[#allocation2 + $0x28] sm:$0xe] }
  0xb5   : > { %629 = vst [vmem:[#allocation2 + $0x3c] sm:$0x1] %v628_v60  ;;  %v558_v4 = vshrl.u32 %v5321_v51, 16  ;;  %v7059_v6 = vrot.slane %v694_v52, 5  ;;  %v7061_v7 = vrot.slane %v705_v53, 4  ;;  %v719_v8 = vshrl.u32 %v7009_v34, 16 }
  0xb6   : > { %v5070_v9 = vrot.slane %v992_v57, 9  ;;  %v7064_v10 = vld [vmem:[#allocation2 + $0x38] sm:$0xf]  ;;  %v5071_v12 = vrot.slane %v993_v58, 9  ;;  %v1031_v13 = vrot.slane %v7041_v55, 5  ;;  %v1035_v14 = vrot.slane %v7044_v59, 5 }
  0xb7   : > { %v5061_v16 = vcombine.low %v7048_v61, %v7064_v10  ;;  %v5072_v17 = vrot.slane %v994_v1, 9  ;;  %v5073_v18 = vrot.slane %v995_v3, 9  ;;  %v1039_v19 = vrot.slane %v7054_v0, 5  ;;  %v996_v27 = vld [vmem:[#allocation2 + $0x30] sm:$0xe]  ;;  %v6345_v1 = vld [vmem:[#allocation7 + $0x38] sm:$0xff]  }
  0xb8   : > { %v7071_v20 = vrot.slane %v708_v54, 5  ;;  %v722_v21 = vshll.u32 %v7009_v34, 16  ;;  %v733_v22 = vshrl.u32 %v7013_v37, 16  ;;  %v7075_v24 = vrot.slane %v558_v4, 7  ;;  %v7087_v35 = vld [vmem:[#allocation2 + $0x34] sm:$0x1] }
  0xb9   : > { %v7077_v25 = vrot.slane %v719_v8, 4  ;;  %v736_v26 = vshll.u32 %v7013_v37, 16  ;;  %5582 = vmatmul.mubr.msk.bf16.gmra.mrb[4].mxu0 %vm803_vm6, %v5061_v16  ;;  %v747_v28 = vshrl.u32 %v7048_v61, 16  ;;  %v1028_v30 = vsel %vm7032_vm9, %v5070_v9, %v1027_v56  ;;  %8030 = vst [vmem:[#allocation21_spill] sm:$0xff] %v7087_v35  ;;  %v997_v36 = vld [vmem:[#allocation2 + $0x38] sm:$0xe] }
  0xba   : > { %5589 = vmatprep.mubr.msk.bf16.mxu0 %vm803_vm6, %v5076_v11  ;;  %v1032_v34 = vsel %vm7032_vm9, %v5071_v12, %v1031_v13  ;;  %v561_v38 = vshll.u32 %v5321_v51, 16  ;;  %v1036_v37 = vsel %vm7032_vm9, %v5072_v17, %v1035_v14  ;;  %v1040_v39 = vsel %vm7032_vm9, %v5073_v18, %v1039_v19  ;;  %v630_v42 = vld [vmem:[#allocation2 + $0x40] sm:$0xf]  ;;  %v1293_v49 = vld [vmem:[#allocation2 + $0x8] sm:$0xf]  ;;  %s8062_s11 = sld [smem:[#allocation28_spill]] }
  0xbb   : > { %v7095_v43 = vrot.slane %v722_v21, 5  ;;  %v7097_v44 = vrot.slane %v733_v22, 4  ;;  %v750_v45 = vshll.u32 %v7048_v61, 16  ;;  %v761_v51 = vshrl.u32 %v7064_v10, 16  ;;  %v1295_v62 = vld [vmem:[#allocation2 + $0x10] sm:$0xf] }
  0xbc   : > { %v7093_v40 = vld [vmem:[#allocation2 + $0x3c] sm:$0x1]  ;;  %v563_v46 = vor.u32 %v561_v38, %v7075_v24  ;;  %v5077_v52 = vcombine.low %v1028_v30, %v1032_v34  ;;  %v5074_v53 = vrot.slane %v996_v27, 9  ;;  %v1043_v54 = vrot.slane %v7087_v35, 5  ;;  %v7113_v11 = vld [vmem:[#allocation2 + $0xc] sm:$0x1] }
  0xbd   : > { %8031 = vst [vmem:[#allocation22_spill] sm:$0xff] %v7093_v40  ;;  %v5078_v56 = vcombine.low %v1036_v37, %v1040_v39  ;;  %v5075_v57 = vrot.slane %v997_v36, 9  ;;  %v1047_v58 = vrot.slane %v7093_v40, 5  ;;  %v7106_v63 = vrot.slane %v736_v26, 5  ;;  %v1297_v12 = vld [vmem:[#allocation2 + $0x18] sm:$0xf] }
  0xbe   : > { %v631_v60 = vsel %vm6962_vm4, %v563_v46, %v630_v42  ;;  %v7108_v61 = vrot.slane %v747_v28, 4  ;;  %v1310_v3 = vshrl.u32 %v1293_v49, 16  ;;  %v1313_v4 = vshll.u32 %v1293_v49, 16  ;;  %v7116_v15 = vld [vmem:[#allocation2 + $0x14] sm:$0x1]  ;;  %v7126_v21 = vld [vmem:[#allocation7 + $0x40] sm:$0xff]  }
  0xbf   : > { %632 = vst [vmem:[#allocation2 + $0x40] sm:$0xf] %v631_v60  ;;  %v7110_v8 = vrot.slane %v750_v45, 5  ;;  %v1324_v13 = vshrl.u32 %v1295_v62, 16  ;;  %v1327_v14 = vshll.u32 %v1295_v62, 16  ;;  %v7118_v17 = vrot.slane %v761_v51, 4 }
  0xc0   : > { %v1299_v16 = vld [vmem:[#allocation2 + $0x20] sm:$0xf]  ;;  %v1044_v18 = vsel %vm7032_vm9, %v5074_v53, %v1043_v54  ;;  %v1048_v19 = vsel %vm7032_vm9, %v5075_v57, %v1047_v58  ;;  %v564_v22 = vrot.slane %v7075_v24, 4  ;;  %v6363_v26 = vld [vmem:[#allocation7 + $0x10] sm:$0xff]   ;;  %v1312_v27 = vrot.slane %v1310_v3, 4  ;;  %s421_s21 = scalar_lea.vmem [#allocation12], %s5035_s25 }
  0xc1   : > { %5590 = vmatmul.mubr.msk.bf16.vlgmr.msra.gmra.mrb[0].mxu0 %vm803_vm6, %v5077_v52  ;;  %8032 = vst [vmem:[#allocation23_spill] sm:$0xff] %v7118_v17  ;;  %v1315_v28 = vrot.slane %v1313_v4, 5  ;;  %v1319_v30 = vshll.u32 %v7113_v11, 16  ;;  %v1338_v34 = vshrl.u32 %v1297_v12, 16  ;;  %v6346_v36 = vld [vmem:[#allocation2 + $0x8] ss:$8 sps:$4 sm:$0xff]   ;;  %5561 = vmatprep.subr.bf16.mxu1 %v6363_v26  ;;  %v5079_v46 = vcombine.low %v1044_v18, %v1048_v19 }
  0xc2   : > { %5598 = vmatpush3.bf16.msra.mxu0 %v7036_v50  ;;  %5593 = vmatprep.mubr.msk.bf16.mxu0 %vm803_vm6, %v5078_v56  ;;  %v1301_v50 = vld [vmem:[#allocation2 + $0x28] sm:$0xf]  ;;  %vm659_vm10 = vsmask.f32 3328  ;;  %vm660_vm11 = vsmask.f32 7440 }
  0xc3   : > { %5599 = vmatprep.subr.bf16.mxu0 %v6345_v1  ;;  %v1333_v38 = vshll.u32 %v7116_v15, 16  ;;  %v1341_v37 = vshll.u32 %v1297_v12, 16  ;;  %v1352_v39 = vshrl.u32 %v1299_v16, 16  ;;  %v1355_v42 = vshll.u32 %v1299_v16, 16  ;;  %v1303_v45 = vld [vmem:[#allocation2 + $0x30] sm:$0xf]  ;;  %5562 = vmatpush3.bf16.msra.mxu1 %v6363_v26  ;;  %vm7154_vm12 = vmor %vm659_vm10, %vm660_vm11 }
  0xc4   : > { %v1326_v24 = vrot.slane %v1324_v13, 4  ;;  %v1329_v49 = vrot.slane %v1327_v14, 5  ;;  %v7131_v51 = vld [vmem:[#allocation2 + $0x1c] sm:$0x1]  ;;  %v1366_v52 = vshrl.u32 %v1301_v50, 16  ;;  %v1369_v53 = vshll.u32 %v1301_v50, 16 }
  0xc5   : > { %v7134_v54 = vld [vmem:[#allocation2 + $0x24] sm:$0x1]  ;;  %v1340_v56 = vrot.slane %v1338_v34, 4  ;;  %v1380_v57 = vshrl.u32 %v1303_v45, 16  ;;  %v1343_v60 = vrot.slane %v1341_v37, 5  ;;  %v1354_v62 = vrot.slane %v1352_v39, 4 }
  0xc6   : > { %5600 = vmatpush3.bf16.msra.mxu0 %v6345_v1  ;;  %v633_v58 = vld [vmem:[#allocation2 + $0x44] sm:$0x1]  ;;  %v1357_v3 = vrot.slane %v1355_v42, 5  ;;  %v1383_v4 = vshll.u32 %v1303_v45, 16  ;;  %v1305_v12 = vld [vmem:[#allocation2 + $0x38] sm:$0xf]  ;;  %v1316_v13 = vor.u32 %v1315_v28, %v1312_v27  ;;  %v1330_v1 = vor.u32 %v1329_v49, %v1326_v24 }
  0xc7   : > { %5609 = vmatprep.subr.bf16.mxu0 %v7126_v21  ;;  %v1347_v14 = vshll.u32 %v7131_v51, 16  ;;  %v7138_v16 = vld [vmem:[#allocation2 + $0x2c] sm:$0x1]  ;;  %v7140_v18 = vld [vmem:[#allocation2 + $0x34] sm:$0x1]  ;;  %v634_v19 = vsel %vm6972_vm5, %v564_v22, %v633_v58  ;;  %v1361_v26 = vshll.u32 %v7134_v54, 16  ;;  %v1344_v49 = vor.u32 %v1343_v60, %v1340_v56 }
  0xc8   : > { %v1368_v34 = vrot.slane %v1366_v52, 4  ;;  %v1371_v50 = vrot.slane %v1369_v53, 5  ;;  %v1382_v37 = vrot.slane %v1380_v57, 4  ;;  %635 = vst [vmem:[#allocation2 + $0x44] sm:$0x1] %v634_v19  ;;  %v1385_v27 = vrot.slane %v1383_v4, 5 }
  0xc9   : > { %5594 = vmatmul.mubr.msk.bf16.gmra.mrb[4].mxu0 %vm803_vm6, %v5079_v46  ;;  %v1307_v39 = vld [vmem:[#allocation2 + $0x40] sm:$0xf]  ;;  %v1394_v28 = vshrl.u32 %v1305_v12, 16  ;;  %v1397_v42 = vshll.u32 %v1305_v12, 16  ;;  %v6365_v45 = vld [vmem:[#allocation7 + $0x18] sm:$0xff]   ;;  %v1321_v24 = vrot.slane %v1319_v30, 5  ;;  %v1358_v9 = vor.u32 %v1357_v3, %v1354_v62 }
  0xca   : > { %5601 = vmatprep.mubr.msk.bf16.mxu0 %vm803_vm6, %v6346_v36  ;;  %v6348_v46 = vld [vmem:[#allocation2 + $0x18] ss:$8 sps:$4 sm:$0xff]   ;;  %v1375_v32 = vshll.u32 %v7138_v16, 16  ;;  %v1317_v22 = vrot.slane %v1316_v13, 4  ;;  %v1331_v58 = vrot.slane %v1330_v1, 4  ;;  %v1335_v36 = vrot.slane %v1333_v38, 5  ;;  %5563 = vmatprep.subr.bf16.mxu1 %v6365_v45 }
  0xcb   : > { %v7147_v40 = vrot.slane %v1347_v14, 5  ;;  %v7149_v52 = vld [vmem:[#allocation2 + $0x3c] sm:$0x1]  ;;  %v6349_v53 = vld [vmem:[#allocation2 + $0x28] ss:$8 sps:$4 sm:$0xff]   ;;  %v1363_v57 = vrot.slane %v1361_v26, 5  ;;  %5564 = vmatpush3.bf16.msra.mxu1 %v6365_v45  ;;  %v1372_v38 = vor.u32 %v1371_v50, %v1368_v34  ;;  %v1386_v60 = vor.u32 %v1385_v27, %v1382_v37 }
  0xcc   : > { %v1389_v4 = vshll.u32 %v7140_v18, 16  ;;  %v1408_v12 = vshrl.u32 %v1307_v39, 16  ;;  %v1411_v19 = vshll.u32 %v1307_v39, 16  ;;  %v6350_v30 = vld [vmem:[#allocation7 + $0x48] sm:$0xff]   ;;  %v1396_v62 = vrot.slane %v1394_v28, 4  ;;  %v6447_v56 = vld [vmem:[#allocation9 + $0x228] sm:$0xff]  }
  0xcd   : > { %v1399_v3 = vrot.slane %v1397_v42, 5  ;;  %v1345_v13 = vrot.slane %v1344_v49, 4  ;;  %v1359_v1 = vrot.slane %v1358_v9, 4  ;;  %v1377_v14 = vrot.slane %v1375_v32, 5  ;;  %v1535_v39 = vld [vmem:[#allocation2 + $0x8] sm:$0xe] }
  0xce   : > { %v1403_v26 = vshll.u32 %v7149_v52, 16  ;;  %v1536_v45 = vld [vmem:[#allocation2 + $0x10] sm:$0xe]  ;;  %v1322_v35 = vsel %vm7154_vm12, %v1317_v22, %v1321_v24  ;;  %v1336_v34 = vsel %vm7154_vm12, %v1331_v58, %v1335_v36  ;;  %v1410_v9 = vrot.slane %v1408_v12, 4  ;;  %v1537_v27 = vld [vmem:[#allocation2 + $0x18] sm:$0xe] }
  0xcf   : > { %v7166_v50 = vld [vmem:[#allocation2 + $0x44] sm:$0x1]  ;;  %v1413_v37 = vrot.slane %v1411_v19, 5  ;;  %v6351_v28 = vld [vmem:[#allocation2 + $0x38] ss:$8 sps:$4 sm:$0xff]   ;;  %v7168_v42 = vld [vmem:[#allocation7 + $0x50] sm:$0xff]   ;;  %v1400_v32 = vor.u32 %v1399_v3, %v1396_v62 }
  0xd0   : > { %v1387_v49 = vrot.slane %v1386_v60, 4  ;;  %v7174_v24 = vrot.slane %v1403_v26, 5  ;;  %v5106_v22 = vrot.slane %v1535_v39, 9  ;;  %v1561_v58 = vrot.slane %v7113_v11, 5  ;;  %v1538_v59 = vld [vmem:[#allocation2 + $0x20] sm:$0xe] }
  0xd1   : > { %5602 = vmatmul.mubr.msk.bf16.vlgmr.msra.gmra.mrb[0].mxu0 %vm803_vm6, %v6348_v46  ;;  %v1373_v46 = vrot.slane %v1372_v38, 4  ;;  %v1417_v36 = vshll.u32 %v7166_v50, 16  ;;  %v5107_v12 = vrot.slane %v1536_v45, 9  ;;  %v1565_v19 = vrot.slane %v7116_v15, 5  ;;  %v1539_v62 = vld [vmem:[#allocation2 + $0x28] sm:$0xe] }
  0xd2   : > { %5610 = vmatpush3.bf16.msra.mxu0 %v7126_v21  ;;  %5605 = vmatprep.mubr.msk.bf16.mxu0 %vm803_vm6, %v6349_v53  ;;  %v1391_v21 = vrot.slane %v1389_v4, 5  ;;  %v8035_v53 = vshll.u32 %v7064_v10, 16  ;;  %v5108_v17 = vrot.slane %v1537_v27, 9  ;;  %v5096_v38 = vcombine.low %v1322_v35, %v1336_v34  ;;  %v7200_v39 = vld [vmem:[#allocation2 + $0x40] sm:$0xe]  ;;  %s4923_s26 = sshll.u32 %s421_s21, 4  ;;  %s7939_s26 = int_to_ptr.vmem [resolvable:$true] %s4923_s26 }
  0xd3   : > { %5611 = vmatprep.subr.bf16.mxu0 %v6350_v30  ;;  %v1350_v10 = vsel %vm7154_vm12, %v1345_v13, %v7147_v40  ;;  %v1364_v4 = vsel %vm7154_vm12, %v1359_v1, %v1363_v57  ;;  %v1414_v60 = vor.u32 %v1413_v37, %v1410_v9  ;;  %v1378_v11 = vsel %vm7154_vm12, %v1373_v46, %v1377_v14  ;;  %v7198_v14 = vld [vmem:[#allocation2 + $0x38] sm:$0xe]  ;;  %v1836_v27 = vld [vmem:[#allocation2 + $0x10] sm:$0xf]  ;;  %s8063_s30 = sld [smem:[#allocation29_spill]]  ;;  %s4910_s25 = scalar_lea.sflag [#allocation6], %s6913_s13 }
  0xd4   : > { %v7172_v0 = vrot.slane %v8035_v53, 5  ;;  %v1392_v15 = vsel %vm7154_vm12, %v1387_v49, %v1391_v21  ;;  %v7189_v3 = vrot.slane %v1400_v32, 4  ;;  %v1569_v35 = vrot.slane %v7131_v51, 5  ;;  %v1838_v32 = vld [vmem:[#allocation2 + $0x18] sm:$0xf]  ;;  %s6568_s10 = scalar_lea.vmem %s7939_s26, 1024 }
  0xd5   : > { %v5109_v26 = vrot.slane %v1538_v59, 9  ;;  %v1573_v40 = vrot.slane %v7134_v54, 5  ;;  %v5097_v1 = vcombine.low %v1350_v10, %v1364_v4  ;;  %v5098_v45 = vcombine.low %v1378_v11, %v1392_v15  ;;  %v6353_v4 = vld [vmem:[#allocation7 + $0x58] sm:$0xff]   ;;  %p6569_p10 = scmp.ne.s32.totalorder %s7939_s26, %s6568_s10  ;;  %s6656_s12 = smov [#allocation12]  }
  0xd6   : > { %5612 = vmatpush3.bf16.msra.mxu0 %v6350_v30  ;;  %v1540_v30 = vld [vmem:[#allocation2 + $0x30] sm:$0xe]  ;;  %v1415_v34 = vrot.slane %v1414_v60, 4  ;;  %v1419_v9 = vrot.slane %v1417_v36, 5  ;;  %v7211_v37 = vsel %vm7032_vm9, %v5106_v22, %v1561_v58  ;;  %v1577_v46 = vrot.slane %v7138_v16, 5  ;;  %s6572_s18 = sshll.u32 %s6656_s12, 4  ;;  %s6573_s18 = int_to_ptr.vmem [resolvable:$false] %s6572_s18 }
  0xd7   : > { %5621 = vmatprep.subr.bf16.mxu0 %v7168_v42  ;;  %v5111_v49 = vrot.slane %v1540_v30, 9  ;;  %v1581_v21 = vrot.slane %v7140_v18, 5  ;;  %v7217_v53 = vsel %vm7032_vm9, %v5107_v12, %v1565_v19  ;;  %v7223_v36 = vld [vmem:[#allocation2 + $0x14] sm:$0x1]  ;;  %v1853_v22 = vshrl.u32 %v1836_v27, 16  ;;  %p6570_p3 = pnand %p6569_p10, %p6862_p5  ;;  %s6574_s28 = scalar_lea.vmem %s6573_s18, 2048 }
  0xd8   : > { %v1856_v58 = vshll.u32 %v1836_v27, 16  ;;  %v1406_v16 = vsel %vm7154_vm12, %v7189_v3, %v7174_v24  ;;  %v7231_v18 = vsel %vm7032_vm9, %v5109_v26, %v1573_v40  ;;  %v1867_v10 = vshrl.u32 %v1838_v32, 16  ;;  %v1840_v19 = vld [vmem:[#allocation2 + $0x20] sm:$0xf]  ;;  %v7246_v3 = vld [vmem:[#allocation2 + $0x1c] sm:$0x1]  ;;  %p6575_p12 = scmp.lt.s32.totalorder %s7939_s26, %s6573_s18  ;;  %p6576_p2 = scmp.lt.s32.totalorder %s6574_s28, %s6568_s10 }
  0xd9   : > { %5606 = vmatmul.mubr.msk.bf16.gmra.mrb[4].mxu0 %vm803_vm6, %v6351_v28  ;;  %v5110_v28 = vrot.slane %v1539_v62, 9  ;;  %v1870_v12 = vshll.u32 %v1838_v32, 16  ;;  %v5112_v60 = vrot.slane %v7198_v14, 9  ;;  %v1585_v62 = vrot.slane %v7149_v52, 5  ;;  %v1842_v26 = vld [vmem:[#allocation2 + $0x28] sm:$0xf]  ;;  %s7937_s17 = scalar_lea.hbm %s8063_s30, %s5330_s19  ;;  %p6571_p7 = pneg %p6570_p3 }
  0xda   : > { %5613 = vmatprep.mubr.msk.bf16.mxu0 %vm803_vm6, %v5096_v38  ;;  %v7221_v38 = vsel %vm7032_vm9, %v5108_v17, %v1569_v35  ;;  %v1420_v17 = vsel %vm7154_vm12, %v1415_v34, %v1419_v9  ;;  %v7244_v15 = vsel %vm7032_vm9, %v5111_v49, %v1581_v21  ;;  %v1855_v35 = vrot.slane %v1853_v22, 4  ;;  %v7257_v32 = vld [vmem:[#allocation2 + $0x24] sm:$0x1]  ;;  %v1846_v11 = vld [vmem:[#allocation2 + $0x38] sm:$0xf]  ;;  %p6577_p1 = por %p6576_p2, %p6575_p12 }
  0xdb   : > { %v7240_v24 = vsel %vm7032_vm9, %v5110_v28, %v1577_v46  ;;  %v1858_v30 = vrot.slane %v1856_v58, 5  ;;  %v1862_v14 = vshll.u32 %v7223_v36, 16  ;;  %v1881_v52 = vshrl.u32 %v1840_v19, 16 }
  0xdc   : > { %v1884_v34 = vshll.u32 %v1840_v19, 16  ;;  %v1869_v9 = vrot.slane %v1867_v10, 4  ;;  %v1872_v27 = vrot.slane %v1870_v12, 5  ;;  %v1895_v28 = vshrl.u32 %v1842_v26, 16  ;;  %v1844_v19 = vld [vmem:[#allocation2 + $0x30] sm:$0xf]  ;;  %p6578_p4 = pnand %p6577_p1, %p6571_p7 }
  0xdd   : > { %v1898_v46 = vshll.u32 %v1842_v26, 16  ;;  %v5114_v49 = vcombine.low %v7211_v37, %v7217_v53  ;;  %v1883_v22 = vrot.slane %v1881_v52, 4  ;;  %v1859_v10 = vor.u32 %v1858_v30, %v1855_v35  ;;  %v7266_v53 = vld [vmem:[#allocation2 + $0x34] sm:$0x1]  ;;  %v1848_v37 = vld [vmem:[#allocation2 + $0x40] sm:$0xf] }
  0xde   : > { %v1886_v58 = vrot.slane %v1884_v34, 5  ;;  %v1876_v12 = vshll.u32 %v7246_v3, 16  ;;  %v5099_v54 = vcombine.low %v1406_v16, %v1420_v17  ;;  %v1909_v52 = vshrl.u32 %v1844_v19, 16 }
  0xdf   : > { %v1900_v26 = vrot.slane %v1898_v46, 5  ;;  %v1912_v34 = vshll.u32 %v1844_v19, 16  ;;  %v7270_v40 = vsel %vm7032_vm9, %v5112_v60, %v1585_v62  ;;  %v1873_v35 = vor.u32 %v1872_v27, %v1869_v9  ;;  %v7281_v60 = vld [vmem:[#allocation2 + $0x3c] sm:$0x1] }
  0xe0   : > { %v1890_v30 = vshll.u32 %v7257_v32, 16  ;;  %v1923_v59 = vshrl.u32 %v1846_v11, 16  ;;  %v1911_v17 = vrot.slane %v1909_v52, 4  ;;  %v7275_v21 = vrot.slane %v1859_v10, 4 }
  0xe1   : > { %5614 = vmatmul.mubr.msk.bf16.vlgmr.msra.gmra.mrb[0].mxu0 %vm803_vm6, %v5097_v1  ;;  %v7259_v1 = vld [vmem:[#allocation7 + $0x60] sm:$0xff]   ;;  %v1914_v46 = vrot.slane %v1912_v34, 5  ;;  %v7277_v19 = vrot.slane %v1862_v14, 5  ;;  %v7279_v51 = vrot.slane %v1876_v12, 5  ;;  %v1926_v62 = vshll.u32 %v1846_v11, 16 }
  0xe2   : > { %5622 = vmatpush3.bf16.msra.mxu0 %v7168_v42  ;;  %5617 = vmatprep.mubr.msk.bf16.mxu0 %vm803_vm6, %v5098_v45  ;;  %v7262_v42 = vld [vmem:[#allocation2 + $0x2c] sm:$0x1]  ;;  %v1897_v45 = vrot.slane %v1895_v28, 4  ;;  %v1887_v28 = vor.u32 %v1886_v58, %v1883_v22  ;;  %v7284_v22 = vld [vmem:[#allocation2 + $0x44] sm:$0x1]  ;;  %v1937_v52 = vshrl.u32 %v1848_v37, 16 }
  0xe3   : > { %5623 = vmatprep.subr.bf16.mxu0 %v6353_v4  ;;  %v1904_v16 = vshll.u32 %v7262_v42, 16  ;;  %v1915_v27 = vor.u32 %v1914_v46, %v1911_v17  ;;  %v1850_v58 = vld [vmem:[#allocation2 + $0x48] sm:$0xf]  ;;  %v7287_v34 = vrot.slane %v1890_v30, 5  ;;  %v1925_v10 = vrot.slane %v1923_v59, 4 }
  0xe4   : > { %v1901_v9 = vor.u32 %v1900_v26, %v1897_v45  ;;  %v1928_v14 = vrot.slane %v1926_v62, 5  ;;  %v1940_v13 = vshll.u32 %v1848_v37, 16  ;;  %v7290_v12 = vrot.slane %v1873_v35, 4  ;;  %v7297_v17 = vld [vmem:[#allocation2 + $0x4c] sm:$0x1] }
  0xe5   : > { %v7292_v11 = vrot.slane %v1887_v28, 4  ;;  %v7294_v45 = vrot.slane %v1904_v16, 5  ;;  %v1932_v26 = vshll.u32 %v7281_v60, 16  ;;  %v1939_v46 = vrot.slane %v1937_v52, 4 }
  0xe6   : > { %5624 = vmatpush3.bf16.msra.mxu0 %v6353_v4  ;;  %v1918_v4 = vshll.u32 %v7266_v53, 16  ;;  %v1942_v57 = vrot.slane %v1940_v13, 5  ;;  %v1951_v30 = vshrl.u32 %v1850_v58, 16  ;;  %v7300_v59 = vrot.slane %v1901_v9, 4 }
  0xe7   : > { %5633 = vmatprep.subr.bf16.mxu0 %v7259_v1  ;;  %8036 = vst [vmem:[#allocation24_spill] sm:$0xff] %v7292_v11  ;;  %8037 = vst [vmem:[#allocation25_spill] sm:$0xff] %v7294_v45  ;;  %v7302_v37 = vrot.slane %v1915_v27, 4  ;;  %v1954_v35 = vshll.u32 %v1850_v58, 16  ;;  %v1929_v28 = vor.u32 %v1928_v14, %v1925_v10  ;;  %v8040_v16 = vor.u32 %v7007_v33, %v7005_v31  ;;  %v7319_v31 = vld [vmem:[#allocation2 + $0x10] sm:$0xe] }
  0xe8   : > { %8038 = vst [vmem:[#allocation26_spill] sm:$0xff] %v7300_v59  ;;  %v1953_v62 = vrot.slane %v1951_v30, 4  ;;  %v672_v11 = vshll.u32 %v7000_v23, 16  ;;  %v1960_v13 = vshll.u32 %v7297_v17, 16  ;;  %v8041_v9 = vor.u32 %v7028_v48, %v7026_v47  ;;  %v7325_v48 = vld [vmem:[#allocation2 + $0x18] sm:$0xe] }
  0xe9   : > { %5618 = vmatmul.mubr.msk.bf16.gmra.mrb[4].mxu0 %vm803_vm6, %v5099_v54  ;;  %v1946_v54 = vshll.u32 %v7284_v22, 16  ;;  %8039 = vst [vmem:[#allocation27_spill] sm:$0xff] %v7302_v37  ;;  %v670_v45 = vrot.slane %v8040_v16, 4  ;;  %v1956_v52 = vrot.slane %v1954_v35, 5  ;;  %v686_v27 = vshll.u32 %v7003_v29, 16 }
  0xea   : > { %5625 = vmatprep.mubr.msk.bf16.mxu0 %vm803_vm6, %v5114_v49  ;;  %v7304_v49 = vrot.slane %v1918_v4, 5  ;;  %v684_v59 = vrot.slane %v8041_v9, 4  ;;  %v6355_v4 = vld [vmem:[#allocation7 + $0x68] sm:$0xff]   ;;  %v7315_v37 = vrot.slane %v1932_v26, 5  ;;  %v1943_v58 = vor.u32 %v1942_v57, %v1939_v46  ;;  %v7331_v57 = vld [vmem:[#allocation7 + $0x70] sm:$0xff]  }
  0xeb   : > { %v7317_v10 = vrot.slane %v1946_v54, 5  ;;  %v674_v14 = vrot.slane %v672_v11, 5  ;;  %v1957_v33 = vor.u32 %v1956_v52, %v1953_v62  ;;  %v688_v23 = vrot.slane %v686_v27, 5  ;;  %v7377_v27 = vld [vmem:[#allocation2 + $0x30] sm:$0xe] }
  0xec   : > { %v8042_v30 = vor.u32 %v7059_v6, %v7056_v2  ;;  %v700_v47 = vshll.u32 %v7018_v41, 16  ;;  %v8043_v29 = vcombine.low %v7221_v38, %v7231_v18  ;;  %v7333_v11 = vrot.slane %v1929_v28, 4  ;;  %v7360_v28 = vld [vmem:[#allocation2 + $0x28] sm:$0xe] }
  0xed   : > { %v675_v26 = vsel %vm7154_vm12, %v670_v45, %v674_v14  ;;  %v8044_v2 = vor.u32 %v7071_v20, %v7061_v7  ;;  %v714_v41 = vshll.u32 %v7041_v55, 16  ;;  %v8045_v38 = vcombine.low %v7240_v24, %v7244_v15  ;;  %v7356_v20 = vld [vmem:[#allocation2 + $0x20] sm:$0xe] }
  0xee   : > { %v698_v35 = vrot.slane %v8042_v30, 4  ;;  %v8046_v18 = vrot.slane %v7166_v50, 5  ;;  %v8047_v46 = vrot.slane %v7200_v39, 9  ;;  %v7352_v54 = vrot.slane %v1960_v13, 5  ;;  %v6356_v39 = vld [vmem:[#allocation2 + $0x10] ss:$8 sps:$4 sm:$0xff]  }
  0xef   : > { %v712_v6 = vrot.slane %v8044_v2, 4  ;;  %v689_v7 = vsel %vm7154_vm12, %v684_v59, %v688_v23  ;;  %v702_v55 = vrot.slane %v700_v47, 5  ;;  %v716_v15 = vrot.slane %v714_v41, 5  ;;  %v8051_v2 = vld [vmem:[#allocation20_spill] sm:$0xff] }
  0xf0   : > { %v1590_v45 = vsel %vm7032_vm9, %v8047_v46, %v8046_v18  ;;  %v5048_v24 = vcombine.low %v675_v26, %v689_v7  ;;  %v739_v50 = vor.u32 %v7106_v63, %v7097_v44  ;;  %v7364_v62 = vrot.slane %v1957_v33, 4  ;;  %v7399_v46 = vld [vmem:[#allocation2 + $0x48] sm:$0xe] }
  0xf1   : > { %5626 = vmatmul.mubr.msk.bf16.vlgmr.msra.gmra.mrb[0].mxu0 %vm803_vm6, %v8043_v29  ;;  %v703_v16 = vsel %vm7154_vm12, %v698_v35, %v702_v55  ;;  %v5144_v59 = vrot.slane %v7319_v31, 9  ;;  %v753_v52 = vor.u32 %v7110_v8, %v7108_v61  ;;  %v5117_v13 = vcombine.low %v7270_v40, %v1590_v45  ;;  %v8048_v61 = vld [vmem:[#allocation23_spill] sm:$0xff]  ;;  %v7383_v40 = vld [vmem:[#allocation2 + $0x38] sm:$0xe]  ;;  %v8053_v55 = vld [vmem:[#allocation22_spill] sm:$0xff] }
  0xf2   : > { %5634 = vmatpush3.bf16.msra.mxu0 %v7259_v1  ;;  %5629 = vmatprep.mubr.msk.bf16.mxu0 %vm803_vm6, %v8045_v38  ;;  %v7358_v1 = vrot.slane %v1943_v58, 4  ;;  %v717_v9 = vsel %vm7154_vm12, %v712_v6, %v716_v15  ;;  %v2104_v44 = vrot.slane %v7223_v36, 5  ;;  %v5145_v63 = vrot.slane %v7325_v48, 9  ;;  %v8050_v35 = vld [vmem:[#allocation19_spill] sm:$0xff] }
  0xf3   : > { %5635 = vmatprep.subr.bf16.mxu0 %v6355_v4  ;;  %5565 = vmatprep.mubr.msk.bf16.mxu1 %vm803_vm6, %v5048_v24  ;;  %v5049_v58 = vcombine.low %v703_v16, %v717_v9  ;;  %v2108_v14 = vrot.slane %v7246_v3, 5  ;;  %v5146_v33 = vrot.slane %v7356_v20, 9  ;;  %v767_v8 = vor.u32 %v7172_v0, %v8048_v61  ;;  %v7394_v0 = vld [vmem:[#allocation2 + $0x40] sm:$0xe] }
  0xf4   : > { %v8049_v23 = vor.u32 %v7095_v43, %v7077_v25  ;;  %v728_v47 = vshll.u32 %v8050_v35, 16  ;;  %v5147_v29 = vrot.slane %v7360_v28, 9  ;;  %v740_v26 = vrot.slane %v739_v50, 4  ;;  %v8052_v43 = vld [vmem:[#allocation21_spill] sm:$0xff] }
  0xf5   : > { %5566 = vmatmul.mubr.msk.bf16.vlgmr.msra.gmra.mrb[0].mxu1 %vm803_vm6, %v5049_v58  ;;  %v742_v6 = vshll.u32 %v8051_v2, 16  ;;  %v2116_v41 = vrot.slane %v7262_v42, 5  ;;  %v754_v25 = vrot.slane %v753_v52, 4  ;;  %v756_v18 = vshll.u32 %v8052_v43, 16  ;;  %v6358_v50 = vld [vmem:[#allocation2 + $0x20] ss:$8 sps:$4 sm:$0xff]  }
  0xf6   : > { %5636 = vmatpush3.bf16.msra.mxu0 %v6355_v4  ;;  %v726_v30 = vrot.slane %v8049_v23, 4  ;;  %v2112_v4 = vrot.slane %v7257_v32, 5  ;;  %v730_v38 = vrot.slane %v728_v47, 5  ;;  %v768_v7 = vrot.slane %v767_v8, 4  ;;  %v6359_v58 = vld [vmem:[#allocation2 + $0x30] ss:$8 sps:$4 sm:$0xff]  }
  0xf7   : > { %5645 = vmatprep.subr.bf16.mxu0 %v7331_v57  ;;  %v744_v45 = vrot.slane %v742_v6, 5  ;;  %v770_v24 = vshll.u32 %v8053_v55, 16  ;;  %v5148_v15 = vrot.slane %v7377_v27, 9  ;;  %v2120_v9 = vrot.slane %v7266_v53, 5  ;;  %v6360_v23 = vld [vmem:[#allocation7 + $0x78] sm:$0xff]   ;;  %v8056_v43 = vld [vmem:[#allocation26_spill] sm:$0xff] }
  0xf8   : > { %v731_v16 = vsel %vm7154_vm12, %v726_v30, %v730_v38  ;;  %v5149_v52 = vrot.slane %v7383_v40, 9  ;;  %v2124_v8 = vrot.slane %v7281_v60, 5  ;;  %v5150_v47 = vrot.slane %v7394_v0, 9  ;;  %v6362_v60 = vld [vmem:[#allocation7 + $0x80] sm:$0xff]  }
  0xf9   : > { %5630 = vmatmul.mubr.msk.bf16.gmra.mrb[4].mxu0 %vm803_vm6, %v5117_v13  ;;  %v758_v13 = vrot.slane %v756_v18, 5  ;;  %v745_v61 = vsel %vm7154_vm12, %v740_v26, %v744_v45  ;;  %v2128_v30 = vrot.slane %v7284_v22, 5  ;;  %v5151_v40 = vrot.slane %v7399_v46, 9  ;;  %v6361_v22 = vld [vmem:[#allocation2 + $0x40] ss:$8 sps:$4 sm:$0xff]  }
  0xfa   : > { %5637 = vmatprep.mubr.msk.bf16.mxu0 %vm803_vm6, %v6356_v39  ;;  %v772_v39 = vrot.slane %v770_v24, 5  ;;  %v5050_v35 = vcombine.low %v731_v16, %v745_v61  ;;  %v2132_v2 = vrot.slane %v7297_v17, 5  ;;  %v1865_v6 = vsel %vm7154_vm12, %v7275_v21, %v7277_v19  ;;  %v8057_v19 = vld [vmem:[#allocation27_spill] sm:$0xff]  ;;  %v6364_v46 = vld [vmem:[#allocation7 + $0x88] sm:$0xff]   ;;  %v429_v55 = vld [vmem:[#allocation10 + $0x30] sm:$0xff] }
  0xfb   : > { %v759_v27 = vsel %vm7154_vm12, %v754_v25, %v758_v13  ;;  %v1879_v17 = vsel %vm7154_vm12, %v7290_v12, %v7279_v51  ;;  %v8055_v25 = vld [vmem:[#allocation25_spill] sm:$0xff]  ;;  %v1921_v51 = vsel %vm7154_vm12, %v8057_v19, %v7304_v49  ;;  %v1935_v12 = vsel %vm7154_vm12, %v7333_v11, %v7315_v37  ;;  %v430_v24 = vld [vmem:[#allocation10 + $0x38] sm:$0xff]  ;;  %v432_v16 = vld [vmem:[#allocation10 + $0x48] sm:$0xff] }
  0xfc   : > { %v773_v53 = vsel %vm7154_vm12, %v768_v7, %v772_v39  ;;  %5569 = vmatprep.mubr.msk.bf16.mxu1 %vm803_vm6, %v5050_v35  ;;  %v5134_v0 = vcombine.low %v1865_v6, %v1879_v17  ;;  %v1907_v21 = vsel %vm7154_vm12, %v8056_v43, %v8055_v25  ;;  %v5136_v45 = vcombine.low %v1921_v51, %v1935_v12  ;;  %v435_v61 = vld [vmem:[#allocation10 + $0x60] sm:$0xff]  ;;  %v436_v39 = vld [vmem:[#allocation10 + $0x68] sm:$0xff]  ;;  %v438_v35 = vld [vmem:[#allocation10 + $0x78] sm:$0xff] }
  0xfd   : > { %v5051_v26 = vcombine.low %v759_v27, %v773_v53  ;;  %v1963_v49 = vsel %vm7154_vm12, %v7364_v62, %v7352_v54  ;;  %v2105_v37 = vsel %vm7032_vm9, %v5144_v59, %v2104_v44  ;;  %v2113_v36 = vsel %vm7032_vm9, %v5146_v33, %v2112_v4  ;;  %v423_v62 = vld [vmem:[#allocation10] sm:$0xff]  ;;  %v424_v59 = vld [vmem:[#allocation10 + $0x8] sm:$0xff]  ;;  %v426_v33 = vld [vmem:[#allocation10 + $0x18] sm:$0xff] }
  0xfe   : > { %v2117_v3 = vsel %vm7032_vm9, %v5147_v29, %v2116_v41  ;;  %v2121_v31 = vsel %vm7032_vm9, %v5148_v15, %v2120_v9  ;;  %v2125_v48 = vsel %vm7032_vm9, %v5149_v52, %v2124_v8  ;;  %v2129_v42 = vsel %vm7032_vm9, %v5150_v47, %v2128_v30  ;;  %v427_v29 = vld [vmem:[#allocation10 + $0x20] sm:$0xff]  ;;  %v428_v41 = vld [vmem:[#allocation10 + $0x28] sm:$0xff]  ;;  %v433_v9 = vld [vmem:[#allocation10 + $0x50] sm:$0xff] }
  0xff   : > { %5570 = vmatmul.mubr.msk.bf16.gmra.mrb[4].mxu1 %vm803_vm6, %v5051_v26  ;;  %v5153_v54 = vcombine.low %v2113_v36, %v2117_v3  ;;  %v5154_v32 = vcombine.low %v2121_v31, %v2125_v48  ;;  %v2133_v20 = vsel %vm7032_vm9, %v5151_v40, %v2132_v2  ;;  %v7497_v44 = vpack.c.bf16 %v424_v59, %v423_v62  ;;  %v434_v52 = vld [vmem:[#allocation10 + $0x58] sm:$0xff]  ;;  %v5162_v43 = vld [vmem:[%s7986_s3] ss:$0 sm:$0xff] }
 0x100   : > { %v5155_v28 = vcombine.low %v2129_v42, %v2133_v20  ;;  %v7506_v7 = vpack.c.bf16 %v428_v41, %v427_v29  ;;  %v7510_v15 = vpack.c.bf16 %v430_v24, %v429_v55  ;;  %v7522_v8 = vpack.c.bf16 %v436_v39, %v435_v61 }
 0x101   : > { %5638 = vmatmul.mubr.msk.bf16.vlgmr.msra.gmra.mrb[0].mxu0 %vm803_vm6, %v6358_v50  ;;  %v431_v50 = vld [vmem:[#allocation10 + $0x40] sm:$0xff]  ;;  %vm6654_vm13 = vmmov 0   ;;  %v6655_v47 = vmov 0.0   ;;  %vm2633_vm14 = vcmask 1043456   ;;  %vm2638_vm15 = vcmask 1040384  }
 0x102   : > { %5646 = vmatpush3.bf16.msra.mxu0 %v7331_v57  ;;  %5641 = vmatprep.mubr.msk.bf16.mxu0 %vm803_vm6, %v6359_v58  ;;  %v8054_v57 = vld [vmem:[#allocation24_spill] sm:$0xff]  ;;  %v7514_v13 = vpack.c.bf16 %v432_v16, %v431_v50  ;;  %v7518_v58 = vpack.c.bf16 %v434_v52, %v433_v9  ;;  %v2347_v52 = vlaneseq  ;;  %vm7625_vm0 = vmand %vm2633_vm14, %vm583_vm2 }
 0x103   : > { %5647 = vmatprep.subr.bf16.mxu0 %v6360_v23  ;;  %v1893_v38 = vsel %vm7154_vm12, %v8054_v57, %v7287_v34  ;;  %v1949_v34 = vsel %vm7154_vm12, %v7358_v1, %v7317_v10  ;;  %v2109_v10 = vsel %vm7032_vm9, %v5145_v63, %v2108_v14  ;;  %v6653_v63 = vmov 0.0|0.0   ;;  %v425_v14 = vld [vmem:[#allocation10 + $0x10] sm:$0xff]  ;;  %vm7631_vm1 = vmand %vm2638_vm15, %vm589_vm3 }
 0x104   : > { %v5135_v18 = vcombine.low %v1893_v38, %v1907_v21  ;;  %v5137_v11 = vcombine.low %v1949_v34, %v1963_v49  ;;  %v5152_v1 = vcombine.low %v2105_v37, %v2109_v10  ;;  %v7502_v4 = vpack.c.bf16 %v426_v33, %v425_v14 }
 0x105   : > { %v2348_v61 = vshrl.u32 %v2347_v52, 7  ;;  %v6386_v52 = vld [vmem:[#allocation9 + $0x78] sm:$0xff]  }
 0x106   : > { %5648 = vmatpush3.bf16.msra.mxu0 %v6360_v23  ;;  %v437_v23 = vld [vmem:[#allocation10 + $0x70] sm:$0xff] }
 0x107   : > { %5657 = vmatprep.subr.bf16.mxu0 %v6362_v60  ;;  %v7525_v27 = vpack.c.bf16 %v438_v35, %v437_v23  ;;  %v7552_v39 = vsub.s32 0, %v2348_v61 }
 0x109   : > { %5642 = vmatmul.mubr.msk.bf16.gmra.mrb[4].mxu0 %vm803_vm6, %v6361_v22 }
 0x10a   : > { %5649 = vmatprep.mubr.msk.bf16.mxu0 %vm803_vm6, %v5134_v0 }
 0x111   : > { %5650 = vmatmul.mubr.msk.bf16.vlgmr.msra.gmra.mrb[0].mxu0 %vm803_vm6, %v5135_v18 }
 0x112   : > { %5658 = vmatpush3.bf16.msra.mxu0 %v6362_v60  ;;  %5653 = vmatprep.mubr.msk.bf16.mxu0 %vm803_vm6, %v5136_v45 }
 0x113   : > { %5659 = vmatprep.subr.bf16.mxu0 %v6364_v46 }
 0x116   : > { %5660 = vmatpush3.bf16.msra.mxu0 %v6364_v46 }
 0x117   : > { %6025 = vmatprep.subr.bf16.mxu0 %v6653_v63 }
 0x119   : > { %5654 = vmatmul.mubr.msk.bf16.gmra.mrb[4].mxu0 %vm803_vm6, %v5137_v11 }
 0x11a   : > { %5661 = vmatprep.mubr.msk.bf16.mxu0 %vm803_vm6, %v5152_v1 }
 0x121   : > { %5662 = vmatmul.mubr.msk.bf16.vlgmr.msra.gmra.mrb[0].mxu0 %vm803_vm6, %v5153_v54 }
 0x122   : > { %5665 = vmatprep.mubr.msk.bf16.mxu0 %vm803_vm6, %v5154_v32  ;;  %6027 = vmatpush3.bf16.msra.mxu0 %v7497_v44 }
 0x123   : > { %6028 = vmatprep.subr.bf16.mxu0 %v6653_v63 }
 0x126   : > { %6030 = vmatpush3.bf16.msra.mxu0 %v7502_v4 }
 0x127   : > { %6031 = vmatprep.subr.bf16.mxu0 %v6653_v63 }
 0x129   : > { %5666 = vmatmul.mubr.msk.bf16.gmra.mrb[4].mxu0 %vm803_vm6, %v5155_v28 }
 0x12a   : > { %6033 = vmatpush3.bf16.msra.mxu0 %v7506_v7  ;;  %5701 = vmatprep.mubr.msk.f32.mxu0 %vm6654_vm13, %v6655_v47 }
 0x12b   : > { %6034 = vmatprep.subr.bf16.mxu0 %v6653_v63 }
 0x12e   : > { %6036 = vmatpush3.bf16.msra.mxu0 %v7510_v15 }
 0x12f   : > { %6037 = vmatprep.subr.bf16.mxu0 %v6653_v63 }
 0x132   : > { %6039 = vmatpush3.bf16.msra.mxu0 %v7514_v13 }
 0x133   : > { %6040 = vmatprep.subr.bf16.mxu0 %v6653_v63 }
 0x136   : > { %6042 = vmatpush3.bf16.msra.mxu0 %v7518_v58 }
 0x137   : > { %6043 = vmatprep.subr.bf16.mxu0 %v6653_v63 }
 0x13a   : > { %6045 = vmatpush3.bf16.msra.mxu0 %v7522_v8 }
 0x13b   : > { %6046 = vmatprep.subr.bf16.mxu0 %v6653_v63 }
 0x13e   : > { %6048 = vmatpush3.bf16.msra.mxu0 %v7525_v27 }
 0x13f   : > { %6049 = vmatprep.subr.bf16.mxu0 %v6653_v63 }
 0x1c8   : > { %v5567_v30 = vpop.f32.mrb[0].mxu1 }
 0x1c9   : > { %v850_v53 = vpop.f32.mrb[1].mxu1 }
 0x1ca   : > { %v5568_v40 = vpop.f32.mrb[2].mxu1 }
 0x1cb   : > { %v853_v2 = vpop.f32.mrb[3].mxu1 }
 0x1d2   : > { %v5571_v26 = vpop.f32.mrb[4].mxu1 }
 0x1d3   : > { %v866_v60 = vpop.f32.mrb[5].mxu1 }
 0x1d4   : > { %v5572_v22 = vpop.f32.mrb[6].mxu1 }
 0x1d5   : > { %v869_v6 = vpop.f32.mrb[7].mxu1 }
 0x1f4   : > { %v5663_v17 = vpop.f32.mrb[0].mxu0 }
 0x1f5   : > { %v6121_v0 = vadd.f32 %v5663_v17, %v5567_v30  ;;  %v2209_v57 = vpop.f32.mrb[1].mxu0 }
 0x1f6   : > { %v6122_v38 = vadd.f32 %v2209_v57, %v850_v53  ;;  %v5664_v25 = vpop.f32.mrb[2].mxu0 }
 0x1f7   : > { %v6123_v21 = vadd.f32 %v5664_v25, %v5568_v40  ;;  %v2212_v19 = vpop.f32.mrb[3].mxu0  ;;  %v2256_v46 = vadd.f32 %v6121_v0, %v5162_v43 }
 0x1f8   : > { %v6124_v51 = vadd.f32 %v2212_v19, %v853_v2  ;;  %v2254_v12 = vadd.f32 %v6122_v38, %v5162_v43 }
 0x1f9   : > { %v2257_v10 = vadd.f32 %v6123_v21, %v5162_v43 }
 0x1fa   : > { %v2255_v18 = vadd.f32 %v6124_v51, %v5162_v43 }
 0x1fc   : > { %v2262_v45 = vadd.f32 %v2255_v18, %v2254_v12  ;;  %v5667_v34 = vpop.f32.mrb[4].mxu0 }
 0x1fd   : > { %v6125_v49 = vadd.f32 %v5667_v34, %v5571_v26  ;;  %v2225_v37 = vpop.f32.mrb[5].mxu0 }
 0x1fe   : > { %v2263_v11 = vadd.f32 %v2262_v45, %v2256_v46  ;;  %v6126_v1 = vadd.f32 %v2225_v37, %v866_v60  ;;  %v5668_v36 = vpop.f32.mrb[6].mxu0 }
 0x1ff   : > { %v6127_v3 = vadd.f32 %v5668_v36, %v5572_v22  ;;  %v2228_v31 = vpop.f32.mrb[7].mxu0  ;;  %v2260_v28 = vadd.f32 %v6125_v49, %v5162_v43 }
 0x200   : > { %v2258_v48 = vadd.f32 %v6126_v1, %v5162_v43  ;;  %v2264_v54 = vadd.f32 %v2263_v11, %v2257_v10  ;;  %v6128_v32 = vadd.f32 %v2228_v31, %v869_v6 }
 0x201   : > { %v2261_v59 = vadd.f32 %v6127_v3, %v5162_v43 }
 0x202   : > { %v2265_v42 = vadd.f32 %v2264_v54, %v2258_v48  ;;  %v2259_v20 = vadd.f32 %v6128_v32, %v5162_v43  ;;  %v6366_v54 = vld [vmem:[#allocation9] sm:$0xff]   ;;  %v6367_v32 = vld [vmem:[#allocation9 + $0x8] sm:$0xff]  }
 0x203   : > { %5763 = vmatprep.subr.bf16.mxu1 %v6366_v54 }
 0x204   : > { %v2266_v62 = vadd.f32 %v2265_v42, %v2259_v20  ;;  %5764 = vmatpush3.bf16.msra.mxu1 %v6366_v54  ;;  %v6368_v42 = vld [vmem:[#allocation9 + $0x10] sm:$0xff]  }
 0x205   : > { %5765 = vmatprep.subr.bf16.mxu1 %v6367_v32 }
 0x206   : > { %v2267_v14 = vadd.f32 %v2266_v62, %v2260_v28  ;;  %v6371_v62 = vld [vmem:[#allocation9 + $0x48] sm:$0xff]  }
 0x208   : > { %v2268_v33 = vadd.f32 %v2267_v14, %v2261_v59  ;;  %5766 = vmatpush3.bf16.msra.mxu1 %v6367_v32  ;;  %v6373_v14 = vld [vmem:[#allocation9 + $0x50] sm:$0xff]  }
 0x209   : > { %5767 = vmatprep.subr.bf16.mxu1 %v6368_v42 }
 0x20a   : > { %v2269_v29 = vrot.slane %v2268_v33, 4 }
 0x20c   : > { %v2270_v41 = vadd.f32 %v2269_v29, %v2268_v33  ;;  %5768 = vmatpush3.bf16.msra.mxu1 %v6368_v42  ;;  %v6374_v33 = vld [vmem:[#allocation9 + $0x28] sm:$0xff]   ;;  %v6375_v29 = vld [vmem:[#allocation9 + $0x58] sm:$0xff]  }
 0x20e   : > { %v2271_v55 = vrot.slane %v2270_v41, 2 }
 0x210   : > { %v2272_v24 = vadd.f32 %v2271_v55, %v2270_v41  ;;  %v6376_v41 = vld [vmem:[#allocation9 + $0x30] sm:$0xff]   ;;  %v6377_v55 = vld [vmem:[#allocation9 + $0x60] sm:$0xff]  }
 0x212   : > { %v2273_v50 = vrot.slane %v2272_v24, 1 }
 0x214   : > { %v2274_v16 = vadd.f32 %v2273_v50, %v2272_v24  ;;  %v6378_v24 = vld [vmem:[#allocation9 + $0x38] sm:$0xff]   ;;  %v6379_v50 = vld [vmem:[#allocation9 + $0x68] sm:$0xff]  }
 0x216   : > { %v2276_v9 = vmul.f32 0.015625, %v2274_v16  ;;  %v7587_v16 = vld [vmem:[#allocation9 + $0x80] sm:$0xff]  }
 0x218   : > { %5702 = vmatmul.mubr.f32.vlgmr.msra.gmra.mrb[8].mxu0 %v2276_v9  ;;  %v6383_v9 = vld [vmem:[#allocation9 + $0x70] sm:$0xff]  }
 0x219   : > { %6051 = vmatpush3.bf16.msra.mxu0 %v7497_v44  ;;  %5736 = vmatprep.mubr.msk.f32.mxu0 %vm6654_vm13, %v6655_v47 }
 0x21a   : > { %6052 = vmatprep.subr.bf16.mxu0 %v6653_v63 }
 0x21d   : > { %6054 = vmatpush3.bf16.msra.mxu0 %v7502_v4 }
 0x21e   : > { %6055 = vmatprep.subr.bf16.mxu0 %v6653_v63 }
 0x221   : > { %6057 = vmatpush3.bf16.msra.mxu0 %v7506_v7 }
 0x222   : > { %6058 = vmatprep.subr.bf16.mxu0 %v6653_v63 }
 0x225   : > { %6060 = vmatpush3.bf16.msra.mxu0 %v7510_v15 }
 0x226   : > { %6061 = vmatprep.subr.bf16.mxu0 %v6653_v63 }
 0x229   : > { %6063 = vmatpush3.bf16.msra.mxu0 %v7514_v13 }
 0x22a   : > { %6064 = vmatprep.subr.bf16.mxu0 %v6653_v63 }
 0x22d   : > { %6066 = vmatpush3.bf16.msra.mxu0 %v7518_v58 }
 0x22e   : > { %6067 = vmatprep.subr.bf16.mxu0 %v6653_v63 }
 0x231   : > { %6069 = vmatpush3.bf16.msra.mxu0 %v7522_v8 }
 0x232   : > { %6070 = vmatprep.subr.bf16.mxu0 %v6653_v63 }
 0x235   : > { %6072 = vmatpush3.bf16.msra.mxu0 %v7525_v27 }
 0x2eb   : > { %v2343_v23 = vpop.f32.mrb[8].mxu0 }
 0x2ec   : > { %v2350_v35 = vrot.slane %v2343_v23, %v7552_v39  ;;  %v5703_v30 = vpop.f32.mrb[9].mxu0 }
 0x2ed   : > { %v7591_v30 = vld [vmem:[#allocation3] sm:$0xf] }
 0x2ee   : > { %v7555_v53 = vsub.f32 %v2254_v12, %v2350_v35  ;;  %v7557_v40 = vsub.f32 %v2255_v18, %v2350_v35  ;;  %v7559_v2 = vsub.f32 %v2256_v46, %v2350_v35  ;;  %v7561_v26 = vsub.f32 %v2257_v10, %v2350_v35 }
 0x2ef   : > { %v7567_v6 = vsub.f32 %v2258_v48, %v2350_v35  ;;  %v7571_v57 = vsub.f32 %v2259_v20, %v2350_v35  ;;  %v7575_v43 = vsub.f32 %v2260_v28, %v2350_v35  ;;  %v7579_v51 = vsub.f32 %v2261_v59, %v2350_v35  ;;  %v6369_v20 = vld [vmem:[#allocation9 + $0x40] sm:$0xff]   ;;  %v6370_v28 = vld [vmem:[#allocation9 + $0x18] sm:$0xff]  }
 0x2f0   : > { %v2359_v60 = vmul.f32 %v7555_v53, %v7555_v53  ;;  %v2360_v22 = vmul.f32 %v7557_v40, %v7557_v40  ;;  %v2361_v17 = vmul.f32 %v7559_v2, %v7559_v2  ;;  %v2362_v38 = vmul.f32 %v7561_v26, %v7561_v26  ;;  %5739 = vmatprep.subr.bf16.mxu0 %v6369_v20  ;;  %v6372_v59 = vld [vmem:[#allocation9 + $0x20] sm:$0xff]  }
 0x2f1   : > { %v2363_v21 = vmul.f32 %v7567_v6, %v7567_v6  ;;  %v2364_v12 = vmul.f32 %v7571_v57, %v7571_v57  ;;  %v2365_v46 = vmul.f32 %v7575_v43, %v7575_v43  ;;  %v2366_v34 = vmul.f32 %v7579_v51, %v7579_v51  ;;  %5769 = vmatprep.subr.bf16.mxu1 %v6370_v28 }
 0x2f2   : > { %v2367_v0 = vadd.f32 %v2360_v22, %v2359_v60  ;;  %5770 = vmatpush3.bf16.msra.mxu1 %v6370_v28  ;;  %v2721_v60 = vshrl.u32 %v7591_v30, 16  ;;  %v2724_v22 = vshll.u32 %v7591_v30, 16 }
 0x2f3   : > { %5771 = vmatprep.subr.bf16.mxu1 %v6372_v59 }
 0x2f4   : > { %v2368_v25 = vadd.f32 %v2367_v0, %v2361_v17  ;;  %v7595_v17 = vrot.slane %v2721_v60, 4  ;;  %v7597_v0 = vrot.slane %v2724_v22, 5 }
 0x2f6   : > { %v2369_v19 = vadd.f32 %v2368_v25, %v2362_v38  ;;  %5772 = vmatpush3.bf16.msra.mxu1 %v6372_v59 }
 0x2f7   : > { %5773 = vmatprep.subr.bf16.mxu1 %v6374_v33 }
 0x2f8   : > { %v2370_v18 = vadd.f32 %v2369_v19, %v2363_v21  ;;  %v7600_v21 = vld [vmem:[#allocation3 + $0x4] sm:$0x1]  ;;  %v5163_v19 = vld [vmem:[%s7987_s4] ss:$0 sm:$0xff] }
 0x2fa   : > { %v2371_v45 = vadd.f32 %v2370_v18, %v2364_v12  ;;  %5774 = vmatpush3.bf16.msra.mxu1 %v6374_v33  ;;  %v2727_v12 = vor.u32 %v7597_v0, %v7595_v17  ;;  %v2730_v18 = vshll.u32 %v7600_v21, 16 }
 0x2fb   : > { %5775 = vmatprep.subr.bf16.mxu1 %v6376_v41 }
 0x2fc   : > { %v2372_v49 = vadd.f32 %v2371_v45, %v2365_v46 }
 0x2fe   : > { %v2373_v37 = vadd.f32 %v2372_v49, %v2366_v34  ;;  %5776 = vmatpush3.bf16.msra.mxu1 %v6376_v41 }
 0x2ff   : > { %5777 = vmatprep.subr.bf16.mxu1 %v6378_v24 }
 0x300   : > { %v2374_v10 = vrot.slane %v2373_v37, 4 }
 0x302   : > { %v2375_v11 = vadd.f32 %v2374_v10, %v2373_v37  ;;  %5778 = vmatpush3.bf16.msra.mxu1 %v6378_v24  ;;  %v5164_v37 = vld [vmem:[%s7988_s5] ss:$0 sm:$0xff] }
 0x303   : > { %5787 = vmatprep.subr.bf16.mxu1 %v7587_v16 }
 0x304   : > { %v2376_v1 = vrot.slane %v2375_v11, 2 }
 0x306   : > { %v2377_v36 = vadd.f32 %v2376_v1, %v2375_v11 }
 0x308   : > { %v2378_v3 = vrot.slane %v2377_v36, 1 }
 0x30a   : > { %v2379_v31 = vadd.f32 %v2378_v3, %v2377_v36 }
 0x30c   : > { %v2380_v48 = vmul.f32 0.015625, %v2379_v31 }
 0x30e   : > { %5737 = vmatmul.mubr.f32.vlgmr.msra.gmra.mrb[10].mxu0 %v2380_v48 }
 0x30f   : > { %5740 = vmatpush3.bf16.msra.mxu0 %v6369_v20 }
 0x310   : > { %5741 = vmatprep.subr.bf16.mxu0 %v6371_v62 }
 0x313   : > { %5742 = vmatpush3.bf16.msra.mxu0 %v6371_v62 }
 0x314   : > { %5743 = vmatprep.subr.bf16.mxu0 %v6373_v14 }
 0x317   : > { %5744 = vmatpush3.bf16.msra.mxu0 %v6373_v14 }
 0x318   : > { %5745 = vmatprep.subr.bf16.mxu0 %v6375_v29 }
 0x31b   : > { %5746 = vmatpush3.bf16.msra.mxu0 %v6375_v29 }
 0x31c   : > { %5747 = vmatprep.subr.bf16.mxu0 %v6377_v55 }
 0x31f   : > { %5748 = vmatpush3.bf16.msra.mxu0 %v6377_v55 }
 0x320   : > { %5749 = vmatprep.subr.bf16.mxu0 %v6379_v50 }
 0x323   : > { %5750 = vmatpush3.bf16.msra.mxu0 %v6379_v50 }
 0x324   : > { %5751 = vmatprep.subr.bf16.mxu0 %v6383_v9 }
 0x327   : > { %5752 = vmatpush3.bf16.msra.mxu0 %v6383_v9 }
 0x328   : > { %5753 = vmatprep.subr.bf16.mxu0 %v6386_v52 }
 0x32b   : > { %5754 = vmatpush3.bf16.msra.mxu0 %v6386_v52 }
 0x32c   : > { %6073 = vmatprep.subr.bf16.mxu0 %v6653_v63 }
 0x3e1   : > { %v2447_v61 = vpop.f32.mrb[10].mxu0 }
 0x3e2   : > { %v2448_v23 = vadd.f32 1e-05, %v2447_v61  ;;  %v5738_v35 = vpop.f32.mrb[11].mxu0 }
 0x3e4   : > { %6450 = vrsqrt.f32 %v2448_v23 }
 0x3ee   : > { %v6451_v38 = vpop.eup %6450 }
 0x3ef   : > { %v2455_v25 = vrot.slane %v6451_v38, %v7552_v39 }
 0x3f1   : > { %v2456_v46 = vmul.f32 %v2455_v25, %v7555_v53  ;;  %v2457_v45 = vmul.f32 %v2455_v25, %v7557_v40  ;;  %v2458_v34 = vmul.f32 %v2455_v25, %v7559_v2  ;;  %v2459_v49 = vmul.f32 %v2455_v25, %v7561_v26 }
 0x3f2   : > { %v2460_v10 = vmul.f32 %v2455_v25, %v7567_v6  ;;  %v2461_v11 = vmul.f32 %v2455_v25, %v7571_v57  ;;  %v2462_v1 = vmul.f32 %v2455_v25, %v7575_v43  ;;  %v2463_v36 = vmul.f32 %v2455_v25, %v7579_v51 }
 0x3f3   : > { %v2470_v53 = vmul.f32 %v5163_v19, %v2456_v46  ;;  %v2471_v3 = vmul.f32 %v5163_v19, %v2457_v45  ;;  %v2472_v40 = vmul.f32 %v5163_v19, %v2458_v34  ;;  %v2473_v31 = vmul.f32 %v5163_v19, %v2459_v49 }
 0x3f4   : > { %v2474_v2 = vmul.f32 %v5163_v19, %v2460_v10  ;;  %v2475_v48 = vmul.f32 %v5163_v19, %v2461_v11  ;;  %v2476_v26 = vmul.f32 %v5163_v19, %v2462_v1  ;;  %v2477_v54 = vmul.f32 %v5163_v19, %v2463_v36  ;;  %v2635_v1 = vld [vmem:[#allocation3 + $0x8] sm:$0xf]  ;;  %v2643_v36 = vld [vmem:[#allocation3 + $0x10] sm:$0xf] }
 0x3f5   : > { %v2484_v32 = vadd.f32 %v5164_v37, %v2470_v53  ;;  %v2485_v42 = vadd.f32 %v5164_v37, %v2471_v3  ;;  %v2486_v20 = vadd.f32 %v5164_v37, %v2472_v40  ;;  %v2487_v6 = vadd.f32 %v5164_v37, %v2473_v31 }
 0x3f6   : > { %v2488_v28 = vadd.f32 %v5164_v37, %v2474_v2  ;;  %v2489_v57 = vadd.f32 %v5164_v37, %v2475_v48  ;;  %v2490_v62 = vadd.f32 %v5164_v37, %v2476_v26  ;;  %v2491_v43 = vadd.f32 %v5164_v37, %v2477_v54  ;;  %v2649_v2 = vld [vmem:[#allocation3 + $0x18] sm:$0xf] }
 0x3f7   : > { %v2492_v59 = vmax.f32 %v2484_v32, 0.0  ;;  %v2493_v51 = vmax.f32 %v2485_v42, 0.0  ;;  %v2494_v14 = vmax.f32 %v2486_v20, 0.0  ;;  %v2495_v33 = vmax.f32 %v2487_v6, 0.0 }
 0x3f8   : > { %v2496_v29 = vmax.f32 %v2488_v28, 0.0  ;;  %v2497_v41 = vmax.f32 %v2489_v57, 0.0  ;;  %v2498_v55 = vmax.f32 %v2490_v62, 0.0  ;;  %v2499_v24 = vmax.f32 %v2491_v43, 0.0  ;;  %v2655_v28 = vld [vmem:[#allocation3 + $0x20] sm:$0xf] }
 0x3f9   : > { %v5322_v50 = vpack.c.bf16 %v2492_v59, %v2492_v59  ;;  %v5323_v9 = vpack.c.bf16 %v2493_v51, %v2493_v51  ;;  %v5324_v52 = vpack.c.bf16 %v2494_v14, %v2494_v14  ;;  %v5325_v61 = vpack.c.bf16 %v2495_v33, %v2495_v33  ;;  %v2640_v62 = vld [vmem:[#allocation3 + $0xc] sm:$0x1]  ;;  %v2661_v33 = vld [vmem:[#allocation3 + $0x28] sm:$0xf] }
 0x3fa   : > { %v5326_v23 = vpack.c.bf16 %v2496_v29, %v2496_v29  ;;  %v5327_v35 = vpack.c.bf16 %v2497_v41, %v2497_v41  ;;  %v7619_v60 = vpack.c.bf16 %v2498_v55, %v2498_v55  ;;  %v7621_v22 = vpack.c.bf16 %v2499_v24, %v2499_v24  ;;  %v2667_v29 = vld [vmem:[#allocation3 + $0x30] sm:$0xf] }
 0x3fb   : > { %v2561_v38 = vshrl.u32 %v5323_v9, 16  ;;  %v2564_v25 = vshll.u32 %v5323_v9, 16  ;;  %v2569_v19 = vshrl.u32 %v5324_v52, 16  ;;  %v2572_v46 = vshll.u32 %v5324_v52, 16  ;;  %v2646_v9 = vld [vmem:[#allocation3 + $0x14] sm:$0x1] }
 0x3fc   : > { %v2553_v45 = vshrl.u32 %v5322_v50, 16  ;;  %v2556_v34 = vshll.u32 %v5322_v50, 16  ;;  %v2577_v49 = vshrl.u32 %v5325_v61, 16  ;;  %v2580_v37 = vshll.u32 %v5325_v61, 16  ;;  %v2652_v52 = vld [vmem:[#allocation3 + $0x1c] sm:$0x1] }
 0x3fd   : > { %v2563_v10 = vrot.slane %v2561_v38, 7  ;;  %v2571_v11 = vrot.slane %v2569_v19, 7  ;;  %v2585_v53 = vshrl.u32 %v5326_v23, 16  ;;  %v2588_v3 = vshll.u32 %v5326_v23, 16  ;;  %v2664_v19 = vld [vmem:[#allocation3 + $0x2c] sm:$0x1] }
 0x3fe   : > { %v2555_v31 = vrot.slane %v2553_v45, 7  ;;  %v2579_v48 = vrot.slane %v2577_v49, 7  ;;  %v2593_v26 = vshrl.u32 %v5327_v35, 16  ;;  %v2596_v54 = vshll.u32 %v5327_v35, 16 }
 0x3ff   : > { %v2566_v32 = vor.u32 %v2564_v25, %v2563_v10  ;;  %v2567_v42 = vrot.slane %v2563_v10, 4  ;;  %v2574_v20 = vor.u32 %v2572_v46, %v2571_v11  ;;  %v2575_v6 = vrot.slane %v2571_v11, 4  ;;  %v2658_v25 = vld [vmem:[#allocation3 + $0x24] sm:$0x1] }
 0x400   : > { %v2558_v43 = vor.u32 %v2556_v34, %v2555_v31  ;;  %v2559_v59 = vrot.slane %v2555_v31, 4  ;;  %v2582_v51 = vor.u32 %v2580_v37, %v2579_v48  ;;  %v2583_v14 = vrot.slane %v2579_v48, 4  ;;  %v2670_v37 = vld [vmem:[#allocation3 + $0x34] sm:$0x1] }
 0x401   : > { %v2644_v41 = vsel %vm7625_vm0, %v2566_v32, %v2643_v36  ;;  %v2650_v55 = vsel %vm7625_vm0, %v2574_v20, %v2649_v2  ;;  %v2587_v24 = vrot.slane %v2585_v53, 7  ;;  %v2595_v50 = vrot.slane %v2593_v26, 7  ;;  %v3115_v53 = vld [vmem:[#allocation3] sm:$0xe]  ;;  %v2673_v2 = vld [vmem:[#allocation3 + $0x38] sm:$0xf] }
 0x402   : > { %v2636_v61 = vsel %vm7625_vm0, %v2558_v43, %v2635_v1  ;;  %2645 = vst [vmem:[#allocation3 + $0x10] sm:$0xf] %v2644_v41  ;;  %2651 = vst [vmem:[#allocation3 + $0x18] sm:$0xf] %v2650_v55  ;;  %v2656_v23 = vsel %vm7625_vm0, %v2582_v51, %v2655_v28  ;;  %v2641_v35 = vsel %vm7631_vm1, %v2559_v59, %v2640_v62  ;;  %v2601_v38 = vshrl.u32 %v7619_v60, 16 }
 0x403   : > { %2637 = vst [vmem:[#allocation3 + $0x8] sm:$0xf] %v2636_v61  ;;  %v2590_v46 = vor.u32 %v2588_v3, %v2587_v24  ;;  %v2591_v45 = vrot.slane %v2587_v24, 4  ;;  %2657 = vst [vmem:[#allocation3 + $0x20] sm:$0xf] %v2656_v23  ;;  %v2598_v34 = vor.u32 %v2596_v54, %v2595_v50  ;;  %v2599_v49 = vrot.slane %v2595_v50, 4 }
 0x404   : > { %2642 = vst [vmem:[#allocation3 + $0xc] sm:$0x1] %v2641_v35  ;;  %v2603_v10 = vrot.slane %v2601_v38, 7  ;;  %v2604_v11 = vshll.u32 %v7619_v60, 16  ;;  %v2647_v1 = vsel %vm7631_vm1, %v2567_v42, %v2646_v9  ;;  %v2653_v36 = vsel %vm7631_vm1, %v2575_v6, %v2652_v52  ;;  %v2676_v26 = vld [vmem:[#allocation3 + $0x3c] sm:$0x1] }
 0x405   : > { %v2662_v31 = vsel %vm7625_vm0, %v2590_v46, %v2661_v33  ;;  %v2668_v3 = vsel %vm7625_vm0, %v2598_v34, %v2667_v29  ;;  %2648 = vst [vmem:[#allocation3 + $0x14] sm:$0x1] %v2647_v1  ;;  %2654 = vst [vmem:[#allocation3 + $0x1c] sm:$0x1] %v2653_v36  ;;  %v2659_v48 = vsel %vm7631_vm1, %v2583_v14, %v2658_v25  ;;  %v2609_v20 = vshrl.u32 %v7621_v22, 16  ;;  %v6385_v61 = vld [vmem:[#allocation9 + $0x88] sm:$0xff]  }
 0x406   : > { %v2665_v60 = vsel %vm7631_vm1, %v2591_v45, %v2664_v19  ;;  %2663 = vst [vmem:[#allocation3 + $0x28] sm:$0xf] %v2662_v31  ;;  %v2606_v54 = vor.u32 %v2604_v11, %v2603_v10  ;;  %v2607_v32 = vrot.slane %v2603_v10, 4  ;;  %2669 = vst [vmem:[#allocation3 + $0x30] sm:$0xf] %v2668_v3  ;;  %v2671_v42 = vsel %vm7631_vm1, %v2599_v49, %v2670_v37  ;;  %v6387_v11 = vld [vmem:[#allocation9 + $0x90] sm:$0xff]  }
 0x407   : > { %2660 = vst [vmem:[#allocation3 + $0x24] sm:$0x1] %v2659_v48  ;;  %2666 = vst [vmem:[#allocation3 + $0x2c] sm:$0x1] %v2665_v60  ;;  %v7665_v6 = vrot.slane %v2727_v12, 4  ;;  %v7669_v28 = vrot.slane %v2730_v18, 5 }
 0x408   : > { %v5197_v62 = vrot.slane %v3115_v53, 9  ;;  %v3141_v43 = vrot.slane %v7600_v21, 5  ;;  %2672 = vst [vmem:[#allocation3 + $0x34] sm:$0x1] %v2671_v42  ;;  %v2674_v59 = vsel %vm7625_vm0, %v2606_v54, %v2673_v2  ;;  %v2677_v51 = vsel %vm7631_vm1, %v2607_v32, %v2676_v26  ;;  %v2679_v18 = vld [vmem:[#allocation3 + $0x40] sm:$0xf] }
 0x409   : > { %v7676_v14 = vrot.slane %v2609_v20, 7  ;;  %v2612_v17 = vshll.u32 %v7621_v22, 16  ;;  %v2690_v0 = vld [vmem:[#allocation3 + $0x10] sm:$0xf]  ;;  %v7679_v12 = vld [vmem:[#allocation3 + $0x18] sm:$0xf]  ;;  %v2733_v46 = vsel %vm7154_vm12, %v7665_v6, %v7669_v28 }
 0x40a   : > { %2675 = vst [vmem:[#allocation3 + $0x38] sm:$0xf] %v2674_v59  ;;  %2678 = vst [vmem:[#allocation3 + $0x3c] sm:$0x1] %v2677_v51  ;;  %v2689_v33 = vld [vmem:[#allocation3 + $0x8] sm:$0xf]  ;;  %v5186_v21 = vcombine.low %v2690_v0, %v7679_v12  ;;  %v7695_v40 = vsel %vm7032_vm9, %v5197_v62, %v3141_v43 }
 0x40b   : > { %v2692_v29 = vld [vmem:[#allocation3 + $0x20] sm:$0xf]  ;;  %v7682_v41 = vld [vmem:[#allocation3 + $0xc] sm:$0x1]  ;;  %v2614_v55 = vor.u32 %v2612_v17, %v7676_v14  ;;  %v2735_v24 = vshrl.u32 %v2689_v33, 16  ;;  %v2738_v50 = vshll.u32 %v2689_v33, 16  ;;  %v5185_v9 = vcombine.low %v7591_v30, %v2689_v33 }
 0x40c   : > { %v2777_v52 = vshrl.u32 %v2692_v29, 16  ;;  %v2780_v22 = vshll.u32 %v2692_v29, 16  ;;  %v2744_v23 = vshll.u32 %v7682_v41, 16  ;;  %v2749_v45 = vshrl.u32 %v2690_v0, 16  ;;  %v7698_v31 = vld [vmem:[#allocation3 + $0x14] sm:$0x1] }
 0x40d   : > { %v2680_v35 = vsel %vm7625_vm0, %v2614_v55, %v2679_v18  ;;  %v2737_v38 = vrot.slane %v2735_v24, 4  ;;  %v2740_v25 = vrot.slane %v2738_v50, 5  ;;  %5779 = vmatprep.mubr.bf16.mxu1 %v5185_v9  ;;  %v2693_v19 = vld [vmem:[#allocation3 + $0x28] sm:$0xf]  ;;  %v2694_v37 = vld [vmem:[#allocation3 + $0x30] sm:$0xf] }
 0x40e   : > { %2681 = vst [vmem:[#allocation3 + $0x40] sm:$0xf] %v2680_v35  ;;  %5780 = vmatmul.mubr.bf16.vlgmr.msra.gmra.mrb[8].mxu1 %v5186_v21  ;;  %v2791_v30 = vshrl.u32 %v2693_v19, 16  ;;  %v2794_v34 = vshll.u32 %v2693_v19, 16  ;;  %v5187_v49 = vcombine.low %v2692_v29, %v2693_v19  ;;  %v2779_v10 = vrot.slane %v2777_v52, 4  ;;  %v6389_v50 = vld [vmem:[#allocation9 + $0x98] sm:$0xff]  }
 0x40f   : > { %5788 = vmatpush3.bf16.msra.mxu1 %v7587_v16  ;;  %v2741_v1 = vor.u32 %v2740_v25, %v2737_v38  ;;  %v2805_v36 = vshrl.u32 %v2694_v37, 16  ;;  %v2808_v53 = vshll.u32 %v2694_v37, 16  ;;  %v2782_v3 = vrot.slane %v2780_v22, 5  ;;  %v7700_v28 = vld [vmem:[#allocation3 + $0x1c] sm:$0x1] }
 0x410   : > { %5783 = vmatprep.mubr.bf16.mxu1 %v5187_v49  ;;  %5789 = vmatprep.subr.bf16.mxu1 %v6385_v61  ;;  %v2746_v2 = vrot.slane %v2744_v23, 5  ;;  %v2751_v60 = vrot.slane %v2749_v45, 4  ;;  %v2752_v26 = vshll.u32 %v2690_v0, 16  ;;  %v2793_v54 = vrot.slane %v2791_v30, 4  ;;  %v3116_v18 = vld [vmem:[#allocation3 + $0x8] sm:$0xe] }
 0x411   : > { %v2695_v48 = vld [vmem:[#allocation3 + $0x38] sm:$0xf]  ;;  %v2796_v32 = vrot.slane %v2794_v34, 5  ;;  %v2742_v42 = vrot.slane %v2741_v1, 4  ;;  %v2807_v6 = vrot.slane %v2805_v36, 4  ;;  %v2758_v43 = vshll.u32 %v7698_v31, 16 }
 0x412   : > { %v2819_v20 = vshrl.u32 %v2695_v48, 16  ;;  %v2822_v16 = vshll.u32 %v2695_v48, 16  ;;  %v2754_v62 = vrot.slane %v2752_v26, 5  ;;  %v2810_v51 = vrot.slane %v2808_v53, 5  ;;  %v7707_v24 = vld [vmem:[#allocation3 + $0x24] sm:$0x1] }
 0x413   : > { %5790 = vmatpush3.bf16.msra.mxu1 %v6385_v61  ;;  %v2747_v59 = vsel %vm7154_vm12, %v2742_v42, %v2746_v2  ;;  %v2763_v17 = vshrl.u32 %v7679_v12, 16  ;;  %v2766_v0 = vshll.u32 %v7679_v12, 16  ;;  %v5188_v29 = vcombine.low %v2694_v37, %v2695_v48  ;;  %v7710_v23 = vld [vmem:[#allocation3 + $0x2c] sm:$0x1]  ;;  %v7714_v34 = vld [vmem:[#allocation3 + $0x34] sm:$0x1] }
 0x414   : > { %5791 = vmatprep.subr.bf16.mxu1 %v6387_v11  ;;  %v5173_v33 = vcombine.low %v2733_v46, %v2747_v59  ;;  %v2821_v21 = vrot.slane %v2819_v20, 4  ;;  %v2755_v55 = vor.u32 %v2754_v62, %v2751_v60  ;;  %v2824_v9 = vrot.slane %v2822_v16, 5  ;;  %v6390_v53 = vld [vmem:[#allocation9 + $0xa0] sm:$0xff]   ;;  %v6397_v57 = vld [vmem:[#allocation3 + $0x8] ss:$8 sps:$4 sm:$0xff]  }
 0x415   : > { %v2765_v52 = vrot.slane %v2763_v17, 4  ;;  %v2768_v22 = vrot.slane %v2766_v0, 5  ;;  %v2772_v61 = vshll.u32 %v7700_v28, 16  ;;  %v2760_v12 = vrot.slane %v2758_v43, 5  ;;  %v6391_v43 = vld [vmem:[#allocation9 + $0xa8] sm:$0xff]  }
 0x416   : > { %5755 = vmatprep.mubr.bf16.mxu0 %v5173_v33  ;;  %5784 = vmatmul.mubr.bf16.gmra.mrb[12].mxu1 %v5188_v29  ;;  %v2756_v35 = vrot.slane %v2755_v55, 4  ;;  %v5198_v38 = vrot.slane %v3116_v18, 9  ;;  %v3145_v25 = vrot.slane %v7682_v41, 5  ;;  %v2783_v45 = vor.u32 %v2782_v3, %v2779_v10  ;;  %v7721_v41 = vld [vmem:[#allocation3 + $0x3c] sm:$0x1]  ;;  %v6392_v18 = vld [vmem:[#allocation9 + $0xb0] sm:$0xff]  }
 0x417   : > { %5792 = vmatpush3.bf16.msra.mxu1 %v6387_v11  ;;  %v2769_v19 = vor.u32 %v2768_v22, %v2765_v52  ;;  %v2774_v46 = vrot.slane %v2772_v61, 5  ;;  %v2786_v30 = vshll.u32 %v7707_v24, 16  ;;  %v2797_v1 = vor.u32 %v2796_v32, %v2793_v54  ;;  %v3117_v29 = vld [vmem:[#allocation3 + $0x10] sm:$0xe]  ;;  %v3118_v55 = vld [vmem:[#allocation3 + $0x18] sm:$0xe] }
 0x418   : > { %v2761_v49 = vsel %vm7154_vm12, %v2756_v35, %v2760_v12  ;;  %v3146_v37 = vsel %vm7032_vm9, %v5198_v38, %v3145_v25  ;;  %v2800_v36 = vshll.u32 %v7710_v23, 16  ;;  %5793 = vmatprep.subr.bf16.mxu1 %v6389_v50  ;;  %v2784_v3 = vrot.slane %v2783_v45, 4  ;;  %v6393_v22 = vld [vmem:[#allocation9 + $0xb8] sm:$0xff]  }
 0x419   : > { %v2770_v11 = vrot.slane %v2769_v19, 4  ;;  %v5205_v10 = vcombine.low %v7695_v40, %v3146_v37  ;;  %v2788_v2 = vrot.slane %v2786_v30, 5  ;;  %v2798_v48 = vrot.slane %v2797_v1, 4  ;;  %v6394_v30 = vld [vmem:[#allocation9 + $0xc0] sm:$0xff]   ;;  %v3122_v37 = vld [vmem:[#allocation3 + $0x38] sm:$0xe] }
 0x41a   : > { %v2802_v60 = vrot.slane %v2800_v36, 5  ;;  %v2811_v26 = vor.u32 %v2810_v51, %v2807_v6  ;;  %v2814_v42 = vshll.u32 %v7714_v34, 16  ;;  %v2825_v32 = vor.u32 %v2824_v9, %v2821_v21  ;;  %v3120_v9 = vld [vmem:[#allocation3 + $0x28] sm:$0xe] }
 0x41b   : > { %v2775_v20 = vsel %vm7154_vm12, %v2770_v11, %v2774_v46  ;;  %5803 = vmatprep.mubr.bf16.mxu1 %v5205_v10  ;;  %v2789_v54 = vsel %vm7154_vm12, %v2784_v3, %v2788_v2  ;;  %5794 = vmatpush3.bf16.msra.mxu1 %v6389_v50  ;;  %v2828_v16 = vshll.u32 %v7721_v41, 16  ;;  %v3119_v50 = vld [vmem:[#allocation3 + $0x20] sm:$0xe]  ;;  %v3149_v61 = vrot.slane %v7698_v31, 5  ;;  %v2682_v10 = vld [vmem:[#allocation3 + $0x44] sm:$0x1] }
 0x41c   : > { %v5174_v62 = vcombine.low %v2761_v49, %v2775_v20  ;;  %v2803_v40 = vsel %vm7154_vm12, %v2798_v48, %v2802_v60  ;;  %5795 = vmatprep.subr.bf16.mxu1 %v6390_v53  ;;  %v2812_v59 = vrot.slane %v2811_v26, 4  ;;  %v2826_v51 = vrot.slane %v2825_v32, 4  ;;  %v3121_v49 = vld [vmem:[#allocation3 + $0x30] sm:$0xe]  ;;  %v6398_v20 = vld [vmem:[#allocation9 + $0xd8] sm:$0xff]   ;;  %v6400_v32 = vld [vmem:[#allocation9 + $0xe8] sm:$0xff]  }
 0x41d   : > { %v5175_v6 = vcombine.low %v2789_v54, %v2803_v40  ;;  %v2816_v17 = vrot.slane %v2814_v42, 5  ;;  %v2830_v0 = vrot.slane %v2828_v16, 5  ;;  %v3153_v35 = vrot.slane %v7700_v28, 5  ;;  %v6396_v26 = vld [vmem:[#allocation9 + $0xd0] sm:$0xff]   ;;  %v6399_v54 = vld [vmem:[#allocation9 + $0xe0] sm:$0xff]  }
 0x41e   : > { %5756 = vmatmul.mubr.bf16.vlgmr.msra.gmra.mrb[12].mxu0 %v5174_v62  ;;  %v5199_v12 = vrot.slane %v3117_v29, 9  ;;  %v5200_v38 = vrot.slane %v3118_v55, 9  ;;  %v5201_v25 = vrot.slane %v3119_v50, 9  ;;  %v3157_v19 = vrot.slane %v7707_v24, 5  ;;  %v3495_v16 = vld [vmem:[#allocation3 + $0x8] sm:$0xf] }
 0x41f   : > { %5759 = vmatprep.mubr.bf16.mxu0 %v5175_v6  ;;  %5796 = vmatpush3.bf16.msra.mxu1 %v6390_v53  ;;  %v2817_v33 = vsel %vm7154_vm12, %v2812_v59, %v2816_v17  ;;  %v2831_v21 = vsel %vm7154_vm12, %v2826_v51, %v2830_v0  ;;  %v5202_v46 = vrot.slane %v3120_v9, 9  ;;  %v3161_v45 = vrot.slane %v7710_v23, 5  ;;  %v6395_v53 = vld [vmem:[#allocation9 + $0xc8] sm:$0xff]   ;;  %v3497_v62 = vld [vmem:[#allocation3 + $0x10] sm:$0xf]  ;;  %v6402_v17 = vld [vmem:[#allocation9 + $0xf8] sm:$0xff]  }
 0x420   : > { %5797 = vmatprep.subr.bf16.mxu1 %v6391_v43  ;;  %6075 = vmatpush3.bf16.msra.mxu0 %v7497_v44  ;;  %v5176_v52 = vcombine.low %v2817_v33, %v2831_v21  ;;  %v3150_v31 = vsel %vm7032_vm9, %v5199_v12, %v3149_v61  ;;  %v3154_v28 = vsel %vm7032_vm9, %v5200_v38, %v3153_v35  ;;  %v2615_v1 = vrot.slane %v7676_v14, 4  ;;  %v6401_v40 = vld [vmem:[#allocation9 + $0xf0] sm:$0xff]   ;;  %v6404_v29 = vld [vmem:[#allocation9 + $0x100] sm:$0xff]   ;;  %v7775_v55 = vld [vmem:[#allocation3 + $0xc] sm:$0x1] }
 0x421   : > { %6076 = vmatprep.subr.bf16.mxu0 %v6653_v63  ;;  %v3158_v24 = vsel %vm7032_vm9, %v5201_v25, %v3157_v19  ;;  %v3162_v23 = vsel %vm7032_vm9, %v5202_v46, %v3161_v45  ;;  %v5206_v36 = vcombine.low %v3150_v31, %v3154_v28  ;;  %v5203_v11 = vrot.slane %v3121_v49, 9  ;;  %v7777_v50 = vld [vmem:[#allocation3 + $0x14] sm:$0x1]  ;;  %v6406_v61 = vld [vmem:[#allocation9 + $0x108] sm:$0xff]   ;;  %v6407_v49 = vld [vmem:[#allocation3 + $0x38] ss:$8 sps:$4 sm:$0xff]  }
 0x422   : > { %v5207_v3 = vcombine.low %v3158_v24, %v3162_v23  ;;  %v3165_v2 = vrot.slane %v7714_v34, 5  ;;  %v5204_v48 = vrot.slane %v3122_v37, 9  ;;  %v3169_v60 = vrot.slane %v7721_v41, 5  ;;  %v6405_v38 = vld [vmem:[#allocation3 + $0x28] ss:$8 sps:$4 sm:$0xff]   ;;  %v6409_v24 = vld [vmem:[#allocation9 + $0x118] sm:$0xff]  }
 0x423   : > { %5798 = vmatpush3.bf16.msra.mxu1 %v6391_v43  ;;  %v2683_v14 = vsel %vm7631_vm1, %v2615_v1, %v2682_v10  ;;  %v3512_v43 = vshrl.u32 %v3495_v16, 16  ;;  %v3515_v6 = vshll.u32 %v3495_v16, 16  ;;  %v3526_v59 = vshrl.u32 %v3497_v62, 16  ;;  %v6408_v46 = vld [vmem:[#allocation9 + $0x110] sm:$0xff]   ;;  %v3499_v37 = vld [vmem:[#allocation3 + $0x18] sm:$0xf] }
 0x424   : > { %5799 = vmatprep.subr.bf16.mxu1 %v6392_v18  ;;  %6078 = vmatpush3.bf16.msra.mxu0 %v7502_v4  ;;  %2684 = vst [vmem:[#allocation3 + $0x44] sm:$0x1] %v2683_v14  ;;  %v3166_v42 = vsel %vm7032_vm9, %v5203_v11, %v3165_v2  ;;  %v3170_v34 = vsel %vm7032_vm9, %v5204_v48, %v3169_v60  ;;  %v3529_v51 = vshll.u32 %v3497_v62, 16  ;;  %v3521_v35 = vshll.u32 %v7775_v55, 16  ;;  %v3501_v1 = vld [vmem:[#allocation3 + $0x20] sm:$0xf] }
 0x425   : > { %6079 = vmatprep.subr.bf16.mxu0 %v6653_v63  ;;  %v5208_v41 = vcombine.low %v3166_v42, %v3170_v34  ;;  %v3514_v0 = vrot.slane %v3512_v43, 4  ;;  %v3528_v33 = vrot.slane %v3526_v59, 4  ;;  %v3535_v12 = vshll.u32 %v7777_v50, 16  ;;  %v6410_v11 = vld [vmem:[#allocation9 + $0x120] sm:$0xff]   ;;  %v6411_v34 = vld [vmem:[#allocation9 + $0x128] sm:$0xff]   ;;  %v6412_v59 = vld [vmem:[#allocation9 + $0x130] sm:$0xff]  }
 0x426   : > { %5760 = vmatmul.mubr.bf16.gmra.mrb[16].mxu0 %v5176_v52  ;;  %v3531_v21 = vrot.slane %v3529_v51, 5  ;;  %v3523_v45 = vrot.slane %v3521_v35, 5  ;;  %v3540_v10 = vshrl.u32 %v3499_v37, 16  ;;  %v3554_v2 = vshrl.u32 %v3501_v1, 16  ;;  %v7785_v51 = vld [vmem:[#allocation3 + $0x1c] sm:$0x1] }
 0x427   : > { %5800 = vmatpush3.bf16.msra.mxu1 %v6392_v18  ;;  %5987 = vmatprep.mubr.msk.f32.mxu0 %vm6654_vm13, %v6655_v47  ;;  %v3517_v18 = vrot.slane %v3515_v6, 5  ;;  %v3557_v48 = vshll.u32 %v3501_v1, 16  ;;  %v3509_v6 = vld [vmem:[#allocation3 + $0x40] sm:$0xf] }
 0x428   : > { %5801 = vmatprep.subr.bf16.mxu1 %v6393_v22  ;;  %6081 = vmatpush3.bf16.msra.mxu0 %v7506_v7  ;;  %v3532_v52 = vor.u32 %v3531_v21, %v3528_v33  ;;  %v7789_v33 = vld [vmem:[#allocation3 + $0x2c] sm:$0x1]  ;;  %v7791_v21 = vld [vmem:[#allocation3 + $0x34] sm:$0x1] }
 0x429   : > { %6082 = vmatprep.subr.bf16.mxu0 %v6653_v63  ;;  %v3518_v9 = vor.u32 %v3517_v18, %v3514_v0 }
 0x42a   : > { %v3533_v19 = vrot.slane %v3532_v52, 4  ;;  %v3610_v52 = vshrl.u32 %v3509_v6, 16 }
 0x42b   : > { %5802 = vmatpush3.bf16.msra.mxu1 %v6393_v22  ;;  %v6403_v22 = vld [vmem:[#allocation3 + $0x18] ss:$8 sps:$4 sm:$0xff]   ;;  %v3519_v25 = vrot.slane %v3518_v9, 4 }
 0x42c   : > { %5811 = vmatprep.subr.bf16.mxu1 %v6394_v30  ;;  %6084 = vmatpush3.bf16.msra.mxu0 %v7510_v15 }
 0x42d   : > { %6085 = vmatprep.subr.bf16.mxu0 %v6653_v63  ;;  %v3524_v31 = vsel %vm7154_vm12, %v3519_v25, %v3523_v45  ;;  %v6413_v25 = vld [vmem:[#allocation9 + $0x138] sm:$0xff]   ;;  %v3577_v45 = vshll.u32 %v7789_v33, 16 }
 0x42e   : > { %5804 = vmatmul.mubr.bf16.vlgmr.msra.gmra.mrb[8].mxu1 %v5206_v36  ;;  %v3503_v36 = vld [vmem:[#allocation3 + $0x28] sm:$0xf] }
 0x42f   : > { %5807 = vmatprep.mubr.bf16.mxu1 %v5207_v3  ;;  %5812 = vmatpush3.bf16.msra.mxu1 %v6394_v30  ;;  %v3537_v30 = vrot.slane %v3535_v12, 5  ;;  %v3543_v3 = vshll.u32 %v3499_v37, 16  ;;  %v3568_v60 = vshrl.u32 %v3503_v36, 16  ;;  %v3571_v14 = vshll.u32 %v3503_v36, 16 }
 0x430   : > { %5813 = vmatprep.subr.bf16.mxu1 %v6395_v53  ;;  %6087 = vmatpush3.bf16.msra.mxu0 %v7514_v13  ;;  %v3549_v12 = vshll.u32 %v7785_v51, 16 }
 0x431   : > { %6088 = vmatprep.subr.bf16.mxu0 %v6653_v63  ;;  %v3538_v28 = vsel %vm7154_vm12, %v3533_v19, %v3537_v30  ;;  %v3570_v16 = vrot.slane %v3568_v60, 4  ;;  %v3573_v62 = vrot.slane %v3571_v14, 5  ;;  %v3591_v30 = vshll.u32 %v7791_v21, 16 }
 0x432   : > { %v5229_v23 = vcombine.low %v3524_v31, %v3538_v28  ;;  %v3551_v1 = vrot.slane %v3549_v12, 5  ;;  %v6417_v12 = vld [vmem:[#allocation9 + $0x158] sm:$0xff]  }
 0x433   : > { %5814 = vmatpush3.bf16.msra.mxu1 %v6395_v53  ;;  %v3505_v53 = vld [vmem:[#allocation3 + $0x30] sm:$0xf] }
 0x434   : > { %5815 = vmatprep.subr.bf16.mxu1 %v6396_v26  ;;  %6090 = vmatpush3.bf16.msra.mxu0 %v7518_v58  ;;  %v3585_v42 = vshll.u32 %v3505_v53, 16 }
 0x435   : > { %6091 = vmatprep.subr.bf16.mxu0 %v6653_v63 }
 0x436   : > { %5808 = vmatmul.mubr.bf16.gmra.mrb[12].mxu1 %v5208_v41  ;;  %v3542_v41 = vrot.slane %v3540_v10, 4  ;;  %v3587_v43 = vrot.slane %v3585_v42, 5  ;;  %v3593_v10 = vrot.slane %v3591_v30, 5  ;;  %v3780_v30 = vld [vmem:[#allocation3 + $0x20] sm:$0xe] }
 0x437   : > { %5816 = vmatpush3.bf16.msra.mxu1 %v6396_v26  ;;  %5827 = vmatprep.mubr.bf16.mxu1 %v6397_v57  ;;  %v3582_v26 = vshrl.u32 %v3505_v53, 16  ;;  %v3556_v57 = vrot.slane %v3554_v2, 4  ;;  %v6414_v53 = vld [vmem:[#allocation9 + $0x140] sm:$0xff]  }
 0x438   : > { %5817 = vmatprep.subr.bf16.mxu1 %v6398_v20  ;;  %6093 = vmatpush3.bf16.msra.mxu0 %v7522_v8  ;;  %v7799_v2 = vld [vmem:[#allocation3 + $0x44] sm:$0x1] }
 0x439   : > { %6094 = vmatprep.subr.bf16.mxu0 %v6653_v63 }
 0x43b   : > { %5818 = vmatpush3.bf16.msra.mxu1 %v6398_v20  ;;  %v3545_v20 = vrot.slane %v3543_v3, 5  ;;  %v7797_v3 = vld [vmem:[#allocation3 + $0x3c] sm:$0x1] }
 0x43c   : > { %5819 = vmatprep.subr.bf16.mxu1 %v6399_v54  ;;  %6096 = vmatpush3.bf16.msra.mxu0 %v7525_v27 }
 0x43d   : > { %6097 = vmatprep.subr.bf16.mxu0 %v6653_v63  ;;  %v3546_v0 = vor.u32 %v3545_v20, %v3542_v41  ;;  %v3605_v41 = vshll.u32 %v7797_v3, 16  ;;  %v3619_v20 = vshll.u32 %v7799_v2, 16 }
 0x43f   : > { %5820 = vmatpush3.bf16.msra.mxu1 %v6399_v54  ;;  %v3559_v54 = vrot.slane %v3557_v48, 5  ;;  %v3547_v19 = vrot.slane %v3546_v0, 4 }
 0x440   : > { %5821 = vmatprep.subr.bf16.mxu1 %v6400_v32 }
 0x441   : > { %v3560_v18 = vor.u32 %v3559_v54, %v3556_v57  ;;  %v3552_v48 = vsel %vm7154_vm12, %v3547_v19, %v3551_v1  ;;  %v3777_v57 = vld [vmem:[#allocation3 + $0x8] sm:$0xe]  ;;  %v3778_v54 = vld [vmem:[#allocation3 + $0x10] sm:$0xe] }
 0x442   : > { %v5242_v0 = vrot.slane %v3778_v54, 9  ;;  %v6419_v19 = vld [vmem:[#allocation9 + $0x168] sm:$0xff]   ;;  %v3831_v54 = vrot.slane %v7799_v2, 5 }
 0x443   : > { %5822 = vmatpush3.bf16.msra.mxu1 %v6400_v32  ;;  %v3507_v32 = vld [vmem:[#allocation3 + $0x38] sm:$0xf]  ;;  %v6428_v2 = vld [vmem:[#allocation9 + $0x1a8] sm:$0xff]  }
 0x444   : > { %5823 = vmatprep.subr.bf16.mxu1 %v6401_v40  ;;  %v3599_v9 = vshll.u32 %v3507_v32, 16 }
 0x446   : > { %v3601_v28 = vrot.slane %v3599_v9, 5  ;;  %v3621_v9 = vrot.slane %v3619_v20, 5  ;;  %v3827_v20 = vrot.slane %v7797_v3, 5  ;;  %v6427_v3 = vld [vmem:[#allocation9 + $0x1a0] sm:$0xff]  }
 0x447   : > { %5824 = vmatpush3.bf16.msra.mxu1 %v6401_v40  ;;  %v3584_v40 = vrot.slane %v3582_v26, 4 }
 0x448   : > { %5825 = vmatprep.subr.bf16.mxu1 %v6402_v17 }
 0x449   : > { %v3588_v35 = vor.u32 %v3587_v43, %v3584_v40 }
 0x44b   : > { %5826 = vmatpush3.bf16.msra.mxu1 %v6402_v17  ;;  %v7787_v17 = vld [vmem:[#allocation3 + $0x24] sm:$0x1]  ;;  %v3589_v37 = vrot.slane %v3588_v35, 4 }
 0x44c   : > { %5835 = vmatprep.subr.bf16.mxu1 %v6404_v29  ;;  %v3815_v1 = vrot.slane %v7787_v17, 5 }
 0x44e   : > { %5828 = vmatmul.mubr.bf16.vlgmr.msra.gmra.mrb[8].mxu1 %v6403_v22  ;;  %v3613_v22 = vshll.u32 %v3509_v6, 16  ;;  %v5241_v6 = vrot.slane %v3777_v57, 9 }
 0x44f   : > { %5831 = vmatprep.mubr.bf16.mxu1 %v6405_v38  ;;  %5836 = vmatpush3.bf16.msra.mxu1 %v6404_v29  ;;  %v3596_v29 = vshrl.u32 %v3507_v32, 16  ;;  %v3563_v38 = vshll.u32 %v7787_v17, 16 }
 0x450   : > { %5837 = vmatprep.subr.bf16.mxu1 %v6406_v61 }
 0x451   : > { %v3598_v31 = vrot.slane %v3596_v29, 4  ;;  %v3565_v36 = vrot.slane %v3563_v38, 5  ;;  %v3607_v29 = vrot.slane %v3605_v41, 5 }
 0x453   : > { %5838 = vmatpush3.bf16.msra.mxu1 %v6406_v61  ;;  %v3574_v61 = vor.u32 %v3573_v62, %v3570_v16  ;;  %v3602_v14 = vor.u32 %v3601_v28, %v3598_v31  ;;  %v6415_v16 = vld [vmem:[#allocation9 + $0x148] sm:$0xff]   ;;  %v3782_v28 = vld [vmem:[#allocation3 + $0x30] sm:$0xe] }
 0x454   : > { %5839 = vmatprep.subr.bf16.mxu1 %v6408_v46  ;;  %v3781_v31 = vld [vmem:[#allocation3 + $0x28] sm:$0xe] }
 0x455   : > { %v3603_v40 = vrot.slane %v3602_v14, 4 }
 0x456   : > { %5832 = vmatmul.mubr.bf16.gmra.mrb[12].mxu1 %v6407_v49  ;;  %v3612_v49 = vrot.slane %v3610_v52, 4  ;;  %v6416_v52 = vld [vmem:[#allocation9 + $0x150] sm:$0xff]  }
 0x457   : > { %5840 = vmatpush3.bf16.msra.mxu1 %v6408_v46  ;;  %5851 = vmatprep.mubr.bf16.mxu1 %v5229_v23  ;;  %v3561_v46 = vrot.slane %v3560_v18, 4  ;;  %v3575_v23 = vrot.slane %v3574_v61, 4  ;;  %v3807_v18 = vrot.slane %v7777_v50, 5 }
 0x458   : > { %5841 = vmatprep.subr.bf16.mxu1 %v6409_v24 }
 0x459   : > { %v3566_v60 = vsel %vm7154_vm12, %v3561_v46, %v3565_v36  ;;  %v6420_v46 = vld [vmem:[#allocation9 + $0x170] sm:$0xff]   ;;  %v5245_v36 = vrot.slane %v3781_v31, 9  ;;  %v6434_v31 = vld [vmem:[#allocation9 + $0x1c8] sm:$0xff]  }
 0x45a   : > { %v5230_v32 = vcombine.low %v3552_v48, %v3566_v60  ;;  %v6422_v48 = vld [vmem:[#allocation9 + $0x180] sm:$0xff]  }
 0x45b   : > { %5842 = vmatpush3.bf16.msra.mxu1 %v6409_v24  ;;  %v3615_v24 = vrot.slane %v3613_v22, 5  ;;  %v3608_v22 = vsel %vm7154_vm12, %v3603_v40, %v3607_v29 }
 0x45c   : > { %5843 = vmatprep.subr.bf16.mxu1 %v6410_v11 }
 0x45d   : > { %v3616_v26 = vor.u32 %v3615_v24, %v3612_v49  ;;  %v6421_v49 = vld [vmem:[#allocation9 + $0x178] sm:$0xff]  }
 0x45f   : > { %5844 = vmatpush3.bf16.msra.mxu1 %v6410_v11  ;;  %v3579_v11 = vrot.slane %v3577_v45, 5  ;;  %v3617_v43 = vrot.slane %v3616_v26, 4  ;;  %v3779_v45 = vld [vmem:[#allocation3 + $0x18] sm:$0xe] }
 0x460   : > { %5845 = vmatprep.subr.bf16.mxu1 %v6411_v34  ;;  %v5243_v24 = vrot.slane %v3779_v45, 9  ;;  %v3783_v26 = vld [vmem:[#allocation3 + $0x38] sm:$0xe] }
 0x461   : > { %v3580_v42 = vsel %vm7154_vm12, %v3575_v23, %v3579_v11  ;;  %v3622_v61 = vsel %vm7154_vm12, %v3617_v43, %v3621_v9  ;;  %v3811_v23 = vrot.slane %v7785_v51, 5  ;;  %v5246_v11 = vrot.slane %v3782_v28, 9  ;;  %v6426_v43 = vld [vmem:[#allocation9 + $0x198] sm:$0xff]  }
 0x462   : > { %v5232_v50 = vcombine.low %v3608_v22, %v3622_v61  ;;  %v6430_v61 = vld [vmem:[#allocation9 + $0x1b8] sm:$0xff]  }
 0x463   : > { %5846 = vmatpush3.bf16.msra.mxu1 %v6411_v34  ;;  %v3594_v34 = vsel %vm7154_vm12, %v3589_v37, %v3593_v10  ;;  %v5244_v37 = vrot.slane %v3780_v30, 9  ;;  %v3823_v10 = vrot.slane %v7791_v21, 5  ;;  %v3812_v60 = vsel %vm7032_vm9, %v5243_v24, %v3811_v23  ;;  %v6423_v21 = vld [vmem:[#allocation9 + $0x188] sm:$0xff]   ;;  %v6433_v24 = vld [vmem:[#allocation3 + $0x30] ss:$8 sps:$4 sm:$0xff]  }
 0x464   : > { %5847 = vmatprep.subr.bf16.mxu1 %v6412_v59  ;;  %v5231_v62 = vcombine.low %v3580_v42, %v3594_v34  ;;  %v5247_v34 = vrot.slane %v3783_v26, 9  ;;  %v6431_v30 = vld [vmem:[#allocation3 + $0x20] ss:$8 sps:$4 sm:$0xff]  }
 0x465   : > { %v3816_v14 = vsel %vm7032_vm9, %v5244_v37, %v3815_v1  ;;  %v3824_v17 = vsel %vm7032_vm9, %v5246_v11, %v3823_v10  ;;  %v6436_v1 = vld [vmem:[#allocation9 + $0x1d0] sm:$0xff]   ;;  %v4162_v26 = vld [vmem:[#allocation3 + $0x20] sm:$0xf] }
 0x466   : > { %v5250_v42 = vcombine.low %v3812_v60, %v3816_v14  ;;  %v6437_v60 = vld [vmem:[#allocation9 + $0x1d8] sm:$0xff]  }
 0x467   : > { %5848 = vmatpush3.bf16.msra.mxu1 %v6412_v59  ;;  %v3803_v59 = vrot.slane %v7775_v55, 5  ;;  %v3808_v55 = vsel %vm7032_vm9, %v5242_v0, %v3807_v18  ;;  %v4160_v0 = vld [vmem:[#allocation3 + $0x18] sm:$0xf]  ;;  %v6429_v18 = vld [vmem:[#allocation9 + $0x1b0] sm:$0xff]  }
 0x468   : > { %5849 = vmatprep.subr.bf16.mxu1 %v6413_v25  ;;  %v4192_v22 = vshll.u32 %v4160_v0, 16 }
 0x469   : > { %v3804_v35 = vsel %vm7032_vm9, %v5241_v6, %v3803_v59  ;;  %v6425_v6 = vld [vmem:[#allocation3 + $0x10] ss:$8 sps:$4 sm:$0xff]  }
 0x46a   : > { %v5249_v38 = vcombine.low %v3804_v35, %v3808_v55  ;;  %v4158_v59 = vld [vmem:[#allocation3 + $0x10] sm:$0xf] }
 0x46b   : > { %5850 = vmatpush3.bf16.msra.mxu1 %v6413_v25  ;;  %v6418_v25 = vld [vmem:[#allocation9 + $0x160] sm:$0xff]   ;;  %v4175_v29 = vshrl.u32 %v4158_v59, 16  ;;  %v4178_v9 = vshll.u32 %v4158_v59, 16 }
 0x46c   : > { %5859 = vmatprep.subr.bf16.mxu1 %v6414_v53 }
 0x46d   : > { %v4177_v35 = vrot.slane %v4175_v29, 4  ;;  %v4180_v55 = vrot.slane %v4178_v9, 5  ;;  %v4170_v9 = vld [vmem:[#allocation3 + $0x40] sm:$0xf] }
 0x46e   : > { %5852 = vmatmul.mubr.bf16.vlgmr.msra.gmra.mrb[8].mxu1 %v5230_v32  ;;  %v6424_v32 = vld [vmem:[#allocation9 + $0x190] sm:$0xff]  }
 0x46f   : > { %5855 = vmatprep.mubr.bf16.mxu1 %v5231_v62  ;;  %5860 = vmatpush3.bf16.msra.mxu1 %v6414_v53  ;;  %v3819_v53 = vrot.slane %v7789_v33, 5  ;;  %v3784_v33 = vld [vmem:[#allocation3 + $0x40] sm:$0xe] }
 0x470   : > { %5861 = vmatprep.subr.bf16.mxu1 %v6415_v16  ;;  %v5248_v57 = vrot.slane %v3784_v33, 9  ;;  %v4168_v33 = vld [vmem:[#allocation3 + $0x38] sm:$0xf] }
 0x471   : > { %v3820_v51 = vsel %vm7032_vm9, %v5245_v36, %v3819_v53 }
 0x472   : > { %v5251_v41 = vcombine.low %v3820_v51, %v3824_v17  ;;  %v3832_v62 = vsel %vm7032_vm9, %v5248_v57, %v3831_v54  ;;  %v4164_v51 = vld [vmem:[#allocation3 + $0x28] sm:$0xf]  ;;  %v4166_v17 = vld [vmem:[#allocation3 + $0x30] sm:$0xf] }
 0x473   : > { %5862 = vmatpush3.bf16.msra.mxu1 %v6415_v16  ;;  %v3828_v16 = vsel %vm7032_vm9, %v5247_v34, %v3827_v20  ;;  %v4206_v34 = vshll.u32 %v4162_v26, 16  ;;  %v4220_v20 = vshll.u32 %v4164_v51, 16  ;;  %v4231_v57 = vshrl.u32 %v4166_v17, 16 }
 0x474   : > { %5863 = vmatprep.subr.bf16.mxu1 %v6416_v52  ;;  %v5252_v40 = vcombine.low %v3828_v16, %v3832_v62  ;;  %v4234_v54 = vshll.u32 %v4166_v17, 16  ;;  %v4248_v16 = vshll.u32 %v4168_v33, 16  ;;  %v6439_v62 = vld [vmem:[#allocation9 + $0x1e8] sm:$0xff]  }
 0x475   : > { %v4233_v59 = vrot.slane %v4231_v57, 4 }
 0x476   : > { %5856 = vmatmul.mubr.bf16.gmra.mrb[12].mxu1 %v5232_v50  ;;  %v4250_v29 = vrot.slane %v4248_v16, 5 }
 0x477   : > { %5864 = vmatpush3.bf16.msra.mxu1 %v6416_v52  ;;  %5875 = vmatprep.mubr.bf16.mxu1 %v5249_v38  ;;  %v4189_v52 = vshrl.u32 %v4160_v0, 16  ;;  %v6432_v38 = vld [vmem:[#allocation9 + $0x1c0] sm:$0xff]   ;;  %v4236_v0 = vrot.slane %v4234_v54, 5 }
 0x478   : > { %5865 = vmatprep.subr.bf16.mxu1 %v6417_v12 }
 0x479   : > { %v4191_v50 = vrot.slane %v4189_v52, 4 }
 0x47b   : > { %5866 = vmatpush3.bf16.msra.mxu1 %v6417_v12  ;;  %v4194_v12 = vrot.slane %v4192_v22, 5  ;;  %v6440_v22 = vld [vmem:[#allocation9 + $0x1f0] sm:$0xff]  }
 0x47c   : > { %5867 = vmatprep.subr.bf16.mxu1 %v6418_v25 }
 0x47d   : > { %v4195_v45 = vor.u32 %v4194_v12, %v4191_v50 }
 0x47f   : > { %5868 = vmatpush3.bf16.msra.mxu1 %v6418_v25  ;;  %v7839_v25 = vld [vmem:[#allocation3 + $0x14] sm:$0x1]  ;;  %v4196_v37 = vrot.slane %v4195_v45, 4  ;;  %v4259_v45 = vshrl.u32 %v4170_v9, 16 }
 0x480   : > { %5869 = vmatprep.subr.bf16.mxu1 %v6419_v19  ;;  %v4184_v28 = vshll.u32 %v7839_v25, 16 }
 0x482   : > { %v4186_v36 = vrot.slane %v4184_v28, 5 }
 0x483   : > { %5870 = vmatpush3.bf16.msra.mxu1 %v6419_v19  ;;  %v7841_v19 = vld [vmem:[#allocation3 + $0x1c] sm:$0x1] }
 0x484   : > { %5871 = vmatprep.subr.bf16.mxu1 %v6420_v46 }
 0x487   : > { %5872 = vmatpush3.bf16.msra.mxu1 %v6420_v46  ;;  %v4181_v46 = vor.u32 %v4180_v55, %v4177_v35  ;;  %v7851_v35 = vld [vmem:[#allocation3 + $0x2c] sm:$0x1] }
 0x488   : > { %5873 = vmatprep.subr.bf16.mxu1 %v6421_v49 }
 0x489   : > { %v4182_v23 = vrot.slane %v4181_v46, 4  ;;  %v7855_v46 = vld [vmem:[#allocation3 + $0x3c] sm:$0x1] }
 0x48b   : > { %5874 = vmatpush3.bf16.msra.mxu1 %v6421_v49  ;;  %v4198_v49 = vshll.u32 %v7841_v19, 16  ;;  %v4187_v11 = vsel %vm7154_vm12, %v4182_v23, %v4186_v36  ;;  %v6441_v23 = vld [vmem:[#allocation9 + $0x1f8] sm:$0xff]  }
 0x48c   : > { %5883 = vmatprep.subr.bf16.mxu1 %v6422_v48 }
 0x48d   : > { %v4200_v53 = vrot.slane %v4198_v49, 5 }
 0x48e   : > { %5876 = vmatmul.mubr.bf16.vlgmr.msra.gmra.mrb[8].mxu1 %v5250_v42  ;;  %v6438_v42 = vld [vmem:[#allocation9 + $0x1e0] sm:$0xff]  }
 0x48f   : > { %5879 = vmatprep.mubr.bf16.mxu1 %v5251_v41  ;;  %5884 = vmatpush3.bf16.msra.mxu1 %v6422_v48  ;;  %v4201_v10 = vsel %vm7154_vm12, %v4196_v37, %v4200_v53  ;;  %v6435_v48 = vld [vmem:[#allocation3 + $0x40] ss:$8 sps:$4 sm:$0xff]   ;;  %v4217_v41 = vshrl.u32 %v4164_v51, 16 }
 0x490   : > { %5885 = vmatprep.subr.bf16.mxu1 %v6423_v21  ;;  %v5273_v14 = vcombine.low %v4187_v11, %v4201_v10 }
 0x493   : > { %5886 = vmatpush3.bf16.msra.mxu1 %v6423_v21  ;;  %v4203_v21 = vshrl.u32 %v4162_v26, 16 }
 0x494   : > { %5887 = vmatprep.subr.bf16.mxu1 %v6424_v32 }
 0x496   : > { %5880 = vmatmul.mubr.bf16.gmra.mrb[12].mxu1 %v5252_v40  ;;  %v4172_v40 = vld [vmem:[#allocation3 + $0x48] sm:$0xf] }
 0x497   : > { %5888 = vmatpush3.bf16.msra.mxu1 %v6424_v32  ;;  %5899 = vmatprep.mubr.bf16.mxu1 %v6425_v6  ;;  %v4245_v32 = vshrl.u32 %v4168_v33, 16  ;;  %v4208_v6 = vrot.slane %v4206_v34, 5  ;;  %v4273_v52 = vshrl.u32 %v4172_v40, 16  ;;  %v4276_v55 = vshll.u32 %v4172_v40, 16  ;;  %v7861_v33 = vld [vmem:[#allocation3 + $0x4c] sm:$0x1] }
 0x498   : > { %5889 = vmatprep.subr.bf16.mxu1 %v6426_v43  ;;  %v4282_v16 = vshll.u32 %v7861_v33, 16 }
 0x499   : > { %v4275_v36 = vrot.slane %v4273_v52, 4  ;;  %v4278_v53 = vrot.slane %v4276_v55, 5 }
 0x49b   : > { %5890 = vmatpush3.bf16.msra.mxu1 %v6426_v43  ;;  %v4205_v43 = vrot.slane %v4203_v21, 4 }
 0x49c   : > { %5891 = vmatprep.subr.bf16.mxu1 %v6427_v3 }
 0x49d   : > { %v4209_v50 = vor.u32 %v4208_v6, %v4205_v43  ;;  %v4440_v6 = vld [vmem:[#allocation3 + $0x10] sm:$0xe] }
 0x49e   : > { %v5285_v52 = vrot.slane %v4440_v6, 9 }
 0x49f   : > { %5892 = vmatpush3.bf16.msra.mxu1 %v6427_v3  ;;  %v4219_v3 = vrot.slane %v4217_v41, 4  ;;  %v4210_v11 = vrot.slane %v4209_v50, 4  ;;  %v7863_v41 = vld [vmem:[#allocation3 + $0x44] sm:$0x1]  ;;  %v4470_v50 = vrot.slane %v7841_v19, 5  ;;  %v6445_v19 = vld [vmem:[#allocation9 + $0x218] sm:$0xff]  }
 0x4a0   : > { %5893 = vmatprep.subr.bf16.mxu1 %v6428_v2  ;;  %v4268_v43 = vshll.u32 %v7863_v41, 16 }
 0x4a3   : > { %5894 = vmatpush3.bf16.msra.mxu1 %v6428_v2  ;;  %v4222_v2 = vrot.slane %v4220_v20, 5  ;;  %v4279_v20 = vor.u32 %v4278_v53, %v4275_v36  ;;  %v4443_v36 = vld [vmem:[#allocation3 + $0x28] sm:$0xe]  ;;  %v4444_v53 = vld [vmem:[#allocation3 + $0x30] sm:$0xe] }
 0x4a4   : > { %5895 = vmatprep.subr.bf16.mxu1 %v6429_v18 }
 0x4a5   : > { %v4223_v12 = vor.u32 %v4222_v2, %v4219_v3  ;;  %v4441_v3 = vld [vmem:[#allocation3 + $0x18] sm:$0xe] }
 0x4a6   : > { %v5286_v55 = vrot.slane %v4441_v3, 9 }
 0x4a7   : > { %5896 = vmatpush3.bf16.msra.mxu1 %v6429_v18  ;;  %v4247_v18 = vrot.slane %v4245_v32, 4  ;;  %v4224_v10 = vrot.slane %v4223_v12, 4  ;;  %v4270_v12 = vrot.slane %v4268_v43, 5 }
 0x4a8   : > { %5897 = vmatprep.subr.bf16.mxu1 %v6430_v61 }
 0x4a9   : > { %v4251_v28 = vor.u32 %v4250_v29, %v4247_v18  ;;  %v4280_v29 = vrot.slane %v4279_v20, 4 }
 0x4ab   : > { %5898 = vmatpush3.bf16.msra.mxu1 %v6430_v61  ;;  %v7849_v61 = vld [vmem:[#allocation3 + $0x24] sm:$0x1]  ;;  %v4252_v26 = vrot.slane %v4251_v28, 4 }
 0x4ac   : > { %5907 = vmatprep.subr.bf16.mxu1 %v6432_v38  ;;  %v4212_v49 = vshll.u32 %v7849_v61, 16 }
 0x4ae   : > { %5900 = vmatmul.mubr.bf16.vlgmr.msra.gmra.mrb[8].mxu1 %v6431_v30  ;;  %v4262_v30 = vshll.u32 %v4170_v9, 16  ;;  %v4214_v51 = vrot.slane %v4212_v49, 5  ;;  %v4284_v9 = vrot.slane %v4282_v16, 5 }
 0x4af   : > { %5903 = vmatprep.mubr.bf16.mxu1 %v6433_v24  ;;  %5908 = vmatpush3.bf16.msra.mxu1 %v6432_v38  ;;  %v7853_v38 = vld [vmem:[#allocation3 + $0x34] sm:$0x1]  ;;  %v4226_v24 = vshll.u32 %v7851_v35, 16 }
 0x4b0   : > { %5909 = vmatprep.subr.bf16.mxu1 %v6434_v31  ;;  %v4240_v37 = vshll.u32 %v7853_v38, 16  ;;  %v4215_v57 = vsel %vm7154_vm12, %v4210_v11, %v4214_v51  ;;  %v4445_v11 = vld [vmem:[#allocation3 + $0x38] sm:$0xe]  ;;  %v5289_v51 = vrot.slane %v4444_v53, 9 }
 0x4b1   : > { %v4228_v17 = vrot.slane %v4226_v24, 5 }
 0x4b2   : > { %v4242_v21 = vrot.slane %v4240_v37, 5  ;;  %v6448_v37 = vld [vmem:[#allocation9 + $0x230] sm:$0xff]  }
 0x4b3   : > { %5910 = vmatpush3.bf16.msra.mxu1 %v6434_v31  ;;  %v4237_v31 = vor.u32 %v4236_v0, %v4233_v59  ;;  %v4229_v54 = vsel %vm7154_vm12, %v4224_v10, %v4228_v17  ;;  %v6443_v59 = vld [vmem:[#allocation9 + $0x208] sm:$0xff]   ;;  %v6449_v10 = vld [vmem:[#allocation9 + $0x238] sm:$0xff]   ;;  %v4482_v17 = vrot.slane %v7853_v38, 5 }
 0x4b4   : > { %5911 = vmatprep.subr.bf16.mxu1 %v6436_v1  ;;  %v5274_v2 = vcombine.low %v4215_v57, %v4229_v54  ;;  %v4447_v57 = vld [vmem:[#allocation3 + $0x48] sm:$0xe]  ;;  %v4446_v54 = vld [vmem:[#allocation3 + $0x40] sm:$0xe] }
 0x4b5   : > { %v5291_v16 = vrot.slane %v4446_v54, 9 }
 0x4b6   : > { %5904 = vmatmul.mubr.bf16.gmra.mrb[12].mxu1 %v6435_v48  ;;  %v4261_v48 = vrot.slane %v4259_v45, 4  ;;  %v6444_v45 = vld [vmem:[#allocation9 + $0x210] sm:$0xff]  }
 0x4b7   : > { %5912 = vmatpush3.bf16.msra.mxu1 %v6436_v1  ;;  %5923 = vmatprep.mubr.bf16.mxu1 %v5273_v14  ;;  %v4254_v1 = vshll.u32 %v7855_v46, 16  ;;  %v4238_v14 = vrot.slane %v4237_v31, 4  ;;  %v4285_v31 = vsel %vm7154_vm12, %v4280_v29, %v4284_v9 }
 0x4b8   : > { %5913 = vmatprep.subr.bf16.mxu1 %v6437_v60 }
 0x4b9   : > { %v4256_v34 = vrot.slane %v4254_v1, 5  ;;  %v4442_v1 = vld [vmem:[#allocation3 + $0x20] sm:$0xe] }
 0x4bb   : > { %5914 = vmatpush3.bf16.msra.mxu1 %v6437_v60  ;;  %v4264_v60 = vrot.slane %v4262_v30, 5  ;;  %v4257_v40 = vsel %vm7154_vm12, %v4252_v26, %v4256_v34  ;;  %v4478_v26 = vrot.slane %v7851_v35, 5 }
 0x4bc   : > { %5915 = vmatprep.subr.bf16.mxu1 %v6438_v42 }
 0x4bd   : > { %v4265_v32 = vor.u32 %v4264_v60, %v4261_v48  ;;  %v5287_v48 = vrot.slane %v4442_v1, 9  ;;  %v4474_v60 = vrot.slane %v7849_v61, 5  ;;  %v4483_v61 = vsel %vm7032_vm9, %v5289_v51, %v4482_v17 }
 0x4bf   : > { %5916 = vmatpush3.bf16.msra.mxu1 %v6438_v42  ;;  %v6442_v42 = vld [vmem:[#allocation9 + $0x200] sm:$0xff]   ;;  %v4266_v18 = vrot.slane %v4265_v32, 4  ;;  %v4475_v34 = vsel %vm7032_vm9, %v5287_v48, %v4474_v60  ;;  %v5292_v32 = vrot.slane %v4447_v57, 9 }
 0x4c0   : > { %5917 = vmatprep.subr.bf16.mxu1 %v6439_v62 }
 0x4c1   : > { %v4271_v30 = vsel %vm7154_vm12, %v4266_v18, %v4270_v12 }
 0x4c2   : > { %v5276_v49 = vcombine.low %v4271_v30, %v4285_v31 }
 0x4c3   : > { %5918 = vmatpush3.bf16.msra.mxu1 %v6439_v62  ;;  %v4243_v62 = vsel %vm7154_vm12, %v4238_v14, %v4242_v21  ;;  %v5288_v14 = vrot.slane %v4443_v36, 9  ;;  %v4486_v21 = vrot.slane %v7855_v46, 5 }
 0x4c4   : > { %5919 = vmatprep.subr.bf16.mxu1 %v6440_v22  ;;  %v5275_v0 = vcombine.low %v4243_v62, %v4257_v40  ;;  %v4490_v62 = vrot.slane %v7863_v41, 5  ;;  %v4494_v40 = vrot.slane %v7861_v33, 5 }
 0x4c5   : > { %v4479_v20 = vsel %vm7032_vm9, %v5288_v14, %v4478_v26 }
 0x4c6   : > { %v5294_v38 = vcombine.low %v4475_v34, %v4479_v20  ;;  %v4491_v6 = vsel %vm7032_vm9, %v5291_v16, %v4490_v62  ;;  %v4495_v3 = vsel %vm7032_vm9, %v5292_v32, %v4494_v40 }
 0x4c7   : > { %5920 = vmatpush3.bf16.msra.mxu1 %v6440_v22  ;;  %v4466_v22 = vrot.slane %v7839_v25, 5  ;;  %v4471_v25 = vsel %vm7032_vm9, %v5286_v55, %v4470_v50  ;;  %v5296_v18 = vcombine.low %v4491_v6, %v4495_v3 }
 0x4c8   : > { %5921 = vmatprep.subr.bf16.mxu1 %v6441_v23 }
 0x4c9   : > { %v4467_v28 = vsel %vm7032_vm9, %v5285_v52, %v4466_v22 }
 0x4ca   : > { %v5293_v24 = vcombine.low %v4467_v28, %v4471_v25 }
 0x4cb   : > { %5922 = vmatpush3.bf16.msra.mxu1 %v6441_v23  ;;  %v6446_v23 = vld [vmem:[#allocation9 + $0x220] sm:$0xff]  }
 0x4cc   : > { %5931 = vmatprep.subr.bf16.mxu1 %v6442_v42 }
 0x4ce   : > { %5924 = vmatmul.mubr.bf16.vlgmr.msra.gmra.mrb[8].mxu1 %v5274_v2 }
 0x4cf   : > { %5927 = vmatprep.mubr.bf16.mxu1 %v5275_v0  ;;  %5932 = vmatpush3.bf16.msra.mxu1 %v6442_v42  ;;  %v5290_v42 = vrot.slane %v4445_v11, 9 }
 0x4d0   : > { %5933 = vmatprep.subr.bf16.mxu1 %v6443_v59 }
 0x4d1   : > { %v4487_v35 = vsel %vm7032_vm9, %v5290_v42, %v4486_v21 }
 0x4d2   : > { %v5295_v46 = vcombine.low %v4483_v61, %v4487_v35 }
 0x4d3   : > { %5934 = vmatpush3.bf16.msra.mxu1 %v6443_v59 }
 0x4d4   : > { %5935 = vmatprep.subr.bf16.mxu1 %v6444_v45 }
 0x4d6   : > { %5928 = vmatmul.mubr.bf16.gmra.mrb[12].mxu1 %v5276_v49 }
 0x4d7   : > { %5936 = vmatpush3.bf16.msra.mxu1 %v6444_v45  ;;  %5947 = vmatprep.mubr.bf16.mxu1 %v5293_v24  ;;  %v5305_v45 = vld [vmem:[%s7989_s6] ss:$0 sm:$0xff] }
 0x4d8   : > { %5937 = vmatprep.subr.bf16.mxu1 %v6445_v19 }
 0x4db   : > { %5938 = vmatpush3.bf16.msra.mxu1 %v6445_v19 }
 0x4dc   : > { %5939 = vmatprep.subr.bf16.mxu1 %v6446_v23 }
 0x4df   : > { %5940 = vmatpush3.bf16.msra.mxu1 %v6446_v23 }
 0x4e0   : > { %5941 = vmatprep.subr.bf16.mxu1 %v6447_v56 }
 0x4e3   : > { %5942 = vmatpush3.bf16.msra.mxu1 %v6447_v56 }
 0x4e4   : > { %5943 = vmatprep.subr.bf16.mxu1 %v6448_v37 }
 0x4e7   : > { %5944 = vmatpush3.bf16.msra.mxu1 %v6448_v37 }
 0x4e8   : > { %5945 = vmatprep.subr.bf16.mxu1 %v6449_v10 }
 0x4eb   : > { %5946 = vmatpush3.bf16.msra.mxu1 %v6449_v10 }
 0x4ee   : > { %5948 = vmatmul.mubr.bf16.vlgmr.msra.gmra.mrb[8].mxu1 %v5294_v38 }
 0x4ef   : > { %5951 = vmatprep.mubr.bf16.mxu1 %v5295_v46 }
 0x4f1   : > { %v5757_v43 = vpop.f32.mrb[12].mxu0 }
 0x4f2   : > { %v2947_v2 = vpop.f32.mrb[13].mxu0 }
 0x4f3   : > { %v5758_v59 = vpop.f32.mrb[14].mxu0 }
 0x4f4   : > { %v2950_v0 = vpop.f32.mrb[15].mxu0 }
 0x4f6   : > { %5952 = vmatmul.mubr.bf16.gmra.mrb[12].mxu1 %v5296_v18 }
 0x4f9   : > { %v5761_v29 = vpop.f32.mrb[16].mxu0 }
 0x4fa   : > { %v2963_v9 = vpop.f32.mrb[17].mxu0 }
 0x4fb   : > { %v5762_v52 = vpop.f32.mrb[18].mxu0 }
 0x4fc   : > { %v2966_v41 = vpop.f32.mrb[19].mxu0 }
 0x5c1   : > { %v5949_v22 = vpop.f32.mrb[8].mxu1 }
 0x5c2   : > { %v6129_v33 = vadd.f32 %v5949_v22, %v5757_v43  ;;  %v4611_v55 = vpop.f32.mrb[9].mxu1 }
 0x5c3   : > { %v6130_v50 = vadd.f32 %v4611_v55, %v2947_v2  ;;  %v5950_v12 = vpop.f32.mrb[10].mxu1 }
 0x5c4   : > { %v6131_v5 = vadd.f32 %v5950_v12, %v5758_v59  ;;  %v4614_v30 = vpop.f32.mrb[11].mxu1  ;;  %v4658_v49 = vadd.f32 %v6129_v33, %v5305_v45 }
 0x5c5   : > { %v6132_v31 = vadd.f32 %v4614_v30, %v2950_v0  ;;  %v4656_v28 = vadd.f32 %v6130_v50, %v5305_v45 }
 0x5c6   : > { %v4659_v37 = vadd.f32 %v6131_v5, %v5305_v45 }
 0x5c7   : > { %v4657_v25 = vadd.f32 %v6132_v31, %v5305_v45 }
 0x5c9   : > { %v4664_v19 = vadd.f32 %v4657_v25, %v4656_v28  ;;  %v5953_v24 = vpop.f32.mrb[12].mxu1 }
 0x5ca   : > { %v6133_v23 = vadd.f32 %v5953_v24, %v5761_v29  ;;  %v4627_v56 = vpop.f32.mrb[13].mxu1 }
 0x5cb   : > { %v4665_v1 = vadd.f32 %v4664_v19, %v4658_v49  ;;  %v6134_v36 = vadd.f32 %v4627_v56, %v2963_v9  ;;  %v5954_v53 = vpop.f32.mrb[14].mxu1 }
 0x5cc   : > { %v6135_v11 = vadd.f32 %v5954_v53, %v5762_v52  ;;  %v4630_v10 = vpop.f32.mrb[15].mxu1  ;;  %v4662_v17 = vadd.f32 %v6133_v23, %v5305_v45  ;;  %v5306_v23 = vld [vmem:[%s7990_s7] ss:$0 sm:$0xff] }
 0x5cd   : > { %v4660_v48 = vadd.f32 %v6134_v36, %v5305_v45  ;;  %v4666_v60 = vadd.f32 %v4665_v1, %v4659_v37  ;;  %v6136_v14 = vadd.f32 %v4630_v10, %v2966_v41  ;;  %v5307_v53 = vld [vmem:[%s8062_s11] ss:$0 sm:$0xff] }
 0x5ce   : > { %v4663_v21 = vadd.f32 %v6135_v11, %v5305_v45 }
 0x5cf   : > { %v4667_v26 = vadd.f32 %v4666_v60, %v4660_v48  ;;  %v4661_v51 = vadd.f32 %v6136_v14, %v5305_v45 }
 0x5d1   : > { %v4668_v42 = vadd.f32 %v4667_v26, %v4661_v51 }
 0x5d3   : > { %v4669_v34 = vadd.f32 %v4668_v42, %v4662_v17 }
 0x5d5   : > { %v4670_v20 = vadd.f32 %v4669_v34, %v4663_v21 }
 0x5d7   : > { %v4671_v57 = vrot.slane %v4670_v20, 4 }
 0x5d9   : > { %v4672_v61 = vadd.f32 %v4671_v57, %v4670_v20 }
 0x5db   : > { %v4673_v35 = vrot.slane %v4672_v61, 2 }
 0x5dd   : > { %v4674_v54 = vadd.f32 %v4673_v35, %v4672_v61 }
 0x5df   : > { %v4675_v38 = vrot.slane %v4674_v54, 1 }
 0x5e1   : > { %v4676_v32 = vadd.f32 %v4675_v38, %v4674_v54 }
 0x5e3   : > { %v4677_v46 = vmul.f32 0.015625, %v4676_v32 }
 0x5e5   : > { %5988 = vmatmul.mubr.f32.vlgmr.msra.gmra.mrb[20].mxu0 %v4677_v46 }
 0x5e6   : > { %6099 = vmatpush3.bf16.msra.mxu0 %v7497_v44  ;;  %6022 = vmatprep.mubr.msk.f32.mxu0 %vm6654_vm13, %v6655_v47 }
 0x5e7   : > { %6100 = vmatprep.subr.bf16.mxu0 %v6653_v63 }
 0x5ea   : > { %6102 = vmatpush3.bf16.msra.mxu0 %v7502_v4 }
 0x5eb   : > { %6103 = vmatprep.subr.bf16.mxu0 %v6653_v63 }
 0x5ee   : > { %6105 = vmatpush3.bf16.msra.mxu0 %v7506_v7 }
 0x5ef   : > { %6106 = vmatprep.subr.bf16.mxu0 %v6653_v63 }
 0x5f2   : > { %6108 = vmatpush3.bf16.msra.mxu0 %v7510_v15 }
 0x5f3   : > { %6109 = vmatprep.subr.bf16.mxu0 %v6653_v63 }
 0x5f6   : > { %6111 = vmatpush3.bf16.msra.mxu0 %v7514_v13 }
 0x5f7   : > { %6112 = vmatprep.subr.bf16.mxu0 %v6653_v63 }
 0x5fa   : > { %6114 = vmatpush3.bf16.msra.mxu0 %v7518_v58 }
 0x5fb   : > { %6115 = vmatprep.subr.bf16.mxu0 %v6653_v63 }
 0x5fe   : > { %6117 = vmatpush3.bf16.msra.mxu0 %v7522_v8 }
 0x5ff   : > { %6118 = vmatprep.subr.bf16.mxu0 %v6653_v63 }
 0x602   : > { %6120 = vmatpush3.bf16.msra.mxu0 %v7525_v27 }
 0x6b8   : > { %v4744_v44 = vpop.f32.mrb[20].mxu0 }
 0x6b9   : > { %v4751_v4 = vrot.slane %v4744_v44, %v7552_v39  ;;  %v5989_v7 = vpop.f32.mrb[21].mxu0 }
 0x6bb   : > { %v4752_v15 = vsub.f32 %v4656_v28, %v4751_v4  ;;  %v4753_v47 = vsub.f32 %v4657_v25, %v4751_v4  ;;  %v4754_v16 = vsub.f32 %v4658_v49, %v4751_v4  ;;  %v4755_v13 = vsub.f32 %v4659_v37, %v4751_v4 }
 0x6bc   : > { %v4756_v43 = vsub.f32 %v4660_v48, %v4751_v4  ;;  %v4757_v3 = vsub.f32 %v4661_v51, %v4751_v4  ;;  %v4758_v59 = vsub.f32 %v4662_v17, %v4751_v4  ;;  %v4759_v27 = vsub.f32 %v4663_v21, %v4751_v4 }
 0x6bd   : > { %v4760_v62 = vmul.f32 %v4752_v15, %v4752_v15  ;;  %v4761_v40 = vmul.f32 %v4753_v47, %v4753_v47  ;;  %v4762_v58 = vmul.f32 %v4754_v16, %v4754_v16  ;;  %v4763_v2 = vmul.f32 %v4755_v13, %v4755_v13 }
 0x6be   : > { %v4764_v63 = vmul.f32 %v4756_v43, %v4756_v43  ;;  %v4765_v18 = vmul.f32 %v4757_v3, %v4757_v3  ;;  %v4766_v9 = vmul.f32 %v4758_v59, %v4758_v59  ;;  %v4767_v41 = vmul.f32 %v4759_v27, %v4759_v27 }
 0x6bf   : > { %v4768_v6 = vadd.f32 %v4761_v40, %v4760_v62 }
 0x6c1   : > { %v4769_v8 = vadd.f32 %v4768_v6, %v4762_v58 }
 0x6c3   : > { %v4770_v0 = vadd.f32 %v4769_v8, %v4763_v2 }
 0x6c5   : > { %v4771_v29 = vadd.f32 %v4770_v0, %v4764_v63 }
 0x6c7   : > { %v4772_v52 = vadd.f32 %v4771_v29, %v4765_v18 }
 0x6c9   : > { %v4773_v22 = vadd.f32 %v4772_v52, %v4766_v9 }
 0x6cb   : > { %v4774_v33 = vadd.f32 %v4773_v22, %v4767_v41 }
 0x6cd   : > { %v4775_v55 = vrot.slane %v4774_v33, 4 }
 0x6cf   : > { %v4776_v50 = vadd.f32 %v4775_v55, %v4774_v33 }
 0x6d1   : > { %v4777_v12 = vrot.slane %v4776_v50, 2 }
 0x6d3   : > { %v4778_v45 = vadd.f32 %v4777_v12, %v4776_v50 }
 0x6d5   : > { %v4779_v5 = vrot.slane %v4778_v45, 1 }
 0x6d7   : > { %v4780_v30 = vadd.f32 %v4779_v5, %v4778_v45 }
 0x6d9   : > { %v4781_v31 = vmul.f32 0.015625, %v4780_v30 }
 0x6db   : > { %6023 = vmatmul.mubr.f32.vlgmr.msra.gmra.mrb[22].mxu0 %v4781_v31 }
 0x7ae   : > { %v4848_v28 = vpop.f32.mrb[22].mxu0 }
 0x7af   : > { %v4849_v25 = vadd.f32 1e-05, %v4848_v28  ;;  %v6024_v49 = vpop.f32.mrb[23].mxu0 }
 0x7b1   : > { %6452 = vrsqrt.f32 %v4849_v25 }
 0x7bb   : > { %v6453_v19 = vpop.eup %6452 }
 0x7bc   : > { %v4856_v24 = vrot.slane %v6453_v19, %v7552_v39 }
 0x7be   : > { %v4857_v56 = vmul.f32 %v4856_v24, %v4752_v15  ;;  %v4858_v37 = vmul.f32 %v4856_v24, %v4753_v47  ;;  %v4859_v1 = vmul.f32 %v4856_v24, %v4754_v16  ;;  %v4860_v36 = vmul.f32 %v4856_v24, %v4755_v13 }
 0x7bf   : > { %v4861_v11 = vmul.f32 %v4856_v24, %v4756_v43  ;;  %v4862_v10 = vmul.f32 %v4856_v24, %v4757_v3  ;;  %v4863_v48 = vmul.f32 %v4856_v24, %v4758_v59  ;;  %v4864_v60 = vmul.f32 %v4856_v24, %v4759_v27 }
 0x7c0   : > { %v4871_v14 = vmul.f32 %v5306_v23, %v4857_v56  ;;  %v4872_v39 = vmul.f32 %v5306_v23, %v4858_v37  ;;  %v4873_v26 = vmul.f32 %v5306_v23, %v4859_v1  ;;  %v4874_v51 = vmul.f32 %v5306_v23, %v4860_v36 }
 0x7c1   : > { %v4875_v17 = vmul.f32 %v5306_v23, %v4861_v11  ;;  %v4876_v42 = vmul.f32 %v5306_v23, %v4862_v10  ;;  %v4877_v21 = vmul.f32 %v5306_v23, %v4863_v48  ;;  %v4878_v34 = vmul.f32 %v5306_v23, %v4864_v60 }
 0x7c2   : > { %v4885_v20 = vadd.f32 %v5307_v53, %v4871_v14  ;;  %v4886_v57 = vadd.f32 %v5307_v53, %v4872_v39  ;;  %v4887_v61 = vadd.f32 %v5307_v53, %v4873_v26  ;;  %v4888_v35 = vadd.f32 %v5307_v53, %v4874_v51 }
 0x7c3   : > { %v4889_v54 = vadd.f32 %v5307_v53, %v4875_v17  ;;  %v4890_v38 = vadd.f32 %v5307_v53, %v4876_v42  ;;  %v4891_v32 = vadd.f32 %v5307_v53, %v4877_v21  ;;  %v4892_v46 = vadd.f32 %v5307_v53, %v4878_v34 }
 0x7c4   : > { %v4893_v44 = vmax.f32 %v4885_v20, 0.0  ;;  %v4894_v4 = vmax.f32 %v4886_v57, 0.0  ;;  %v4895_v7 = vmax.f32 %v4887_v61, 0.0  ;;  %v4896_v15 = vmax.f32 %v4888_v35, 0.0 }
 0x7c5   : > { %v4897_v47 = vmax.f32 %v4889_v54, 0.0  ;;  %v4898_v16 = vmax.f32 %v4890_v38, 0.0  ;;  %v4899_v13 = vmax.f32 %v4891_v32, 0.0  ;;  %v4900_v62 = vmax.f32 %v4892_v46, 0.0 }
 0x7c6   : > { %4901 = vst [vmem:[%s421_s21] sm:$0xff] %v4893_v44  ;;  %4902 = vst [vmem:[%s421_s21 + $0x8] sm:$0xff] %v4894_v4 }
 0x7c7   : > { %4903 = vst [vmem:[%s421_s21 + $0x10] sm:$0xff] %v4895_v7  ;;  %4904 = vst [vmem:[%s421_s21 + $0x18] sm:$0xff] %v4896_v15 }
 0x7c8   : > { %4905 = vst [vmem:[%s421_s21 + $0x20] sm:$0xff] %v4897_v47  ;;  %4906 = vst [vmem:[%s421_s21 + $0x28] sm:$0xff] %v4898_v16 }
 0x7c9   : > { %4907 = vst [vmem:[%s421_s21 + $0x30] sm:$0xff] %v4899_v13  ;;  %4908 = vst [vmem:[%s421_s21 + $0x38] sm:$0xff] %v4900_v62 }
 0x7ca   : > { %6581 = shalt.err (!%p6578_p4)
}
 0x7cb   : > { %s6582_s27 = scalar_lea.hbm %s7937_s17, 1024  ;;  %s6586_s19 = scalar_lea.hbm %s8063_s30, 2048 }
 0x7cc   : > { %p6583_p9 = scmp.ne.s32.totalorder %s7937_s17, %s6582_s27  ;;  %p6587_p8 = scmp.lt.u32.totalorder %s7937_s17, %s8063_s30 }
 0x7cd   : > { %p6588_p13 = scmp.lt.u32.totalorder %s6586_s19, %s6582_s27  ;;  %p6590_p10 = scmp.lt.u32.totalorder %s6582_s27, %s7937_s17 }
 0x7ce   : > { %p6584_p0 = pnand %p6583_p9, %p6862_p5 }
 0x7cf   : > { %p6589_p6 = por %p6588_p13, %p6587_p8 }
 0x7d0   : > { %p6585_p11 = pneg %p6584_p0 }
 0x7d1   : > { %p6591_p3 = por %p6590_p10, %p6589_p6 }
 0x7d3   : > { %p6592_p7 = pnand %p6591_p3, %p6585_p11 }
 0x7d5   : > { %6595 = shalt.err (!%p6592_p7)
}
 0x7d6   : > { %s6657_s29 = smov 128   ;;  %s6658_s10 = smov 8  }
 0x7d7   : > { %6263 = dma.vmem_to_hbm [thread:$0]  (%p6862_p5), %s7939_s26, 1024, %s7937_s17, %s4910_s25, %s6657_s29, %s6657_s29, %s6658_s10  }
 0x7d8 PF: > { %s8064_s12 = sld [smem:[#allocation17_spill]]  ;;  %s8065_s18 = sld [smem:[#allocation18_spill]] }
 0x7d9   : > { %p8067_p2 = scmp.ge.s32.totalorder %s6642_s16, 2 }
 0x7de   : > { %s4938_s28 = sand.u32 1, %s8064_s12   ;;  %p8066_p12 = scmp.ne.s32.totalorder %s8065_s18, 0 }
 0x7df   : > { %s4939_s27 = scalar_lea.sflag [#allocation6], %s4938_s28 }
 0x7e0   : > { %p6280_p1 = pnand %p8067_p2, %p8066_p12 }
 0x7e2   : > { %6625 = dma.done.wait (!%p6280_p1), %s4939_s27, 1024  }
 0x7e3   : > { %6627 = vsyncadd (!%p6280_p1), %s4939_s27, 4294966272  ;;  %p25_p4 = scmp.ge.s32.totalorder %s6848_s8, 4   ;;  %s8068_s13 = smov %s6634_s14 }
 0x7e4   : > { %s8069_s14 = smov %s6638_s15  ;;  %s8070_s15 = smov %s6858_s20 }
 0x7e5   : > { %s8071_s16 = smov %s6848_s8  ;;  %27 = sbr.rel (!%p25_p4) target bundleno = 10 (0xa), region = 137 }
 0x7ec   :  { %4944 = vsyncpa [#allocation5], 1 }
 0x7ed   :  { %4946 = vsyncpa [#allocation5 + $0x1], 1 }
 0x7ee   :  { %4947 = vsyncpa [#allocation8], 1 }
 0x7ef   :  { %4948 = vsyncpa [#allocation11], 1 }
 0x7f0   :  { %4949 = vsyncpa [#allocation6], 1 }
 0x7f1   :  { %4951 = vsyncpa [#allocation6 + $0x1], 1 }

</bundles_post_ra>
